<compile_context>
chip_gen: v7x
topology: tpu7x:2x2x1
jax: 0.10.0
libtpu: 0.0.40
codegen_flags: <defaults>
</compile_context>

<pallas_src>
import functools

import jax
import jax.numpy as jnp
from jax.experimental import pallas as pl
from jax.experimental.pallas import tpu as pltpu


# ----------------------------------------------------------------------------
# Kernel
# ----------------------------------------------------------------------------
def _residual_kernel(*refs, need_skip, TB, H, W, Cin, Cmid, Cout):
    if need_skip:
        (x_ref, bn1s_ref, bn1b_ref, w1_ref, b1_ref,
         bn2s_ref, bn2b_ref, w2_ref, b2_ref,
         bn3s_ref, bn3b_ref, w3_ref, b3_ref,
         wsk_ref, bsk_ref, o_ref, pad_ref) = refs
    else:
        (x_ref, bn1s_ref, bn1b_ref, w1_ref, b1_ref,
         bn2s_ref, bn2b_ref, w2_ref, b2_ref,
         bn3s_ref, bn3b_ref, w3_ref, b3_ref,
         o_ref, pad_ref) = refs
        wsk_ref = bsk_ref = None

    HW = H * W

    # Hoist all (small) parameters out of the batch-row loop.
    bn1s, bn1b = bn1s_ref[...], bn1b_ref[...]
    bn2s, bn2b = bn2s_ref[...], bn2b_ref[...]
    bn3s, bn3b = bn3s_ref[...], bn3b_ref[...]
    w1, b1 = w1_ref[...], b1_ref[...]
    w2, b2 = w2_ref[...], b2_ref[...]          # w2: (9, Cmid, Cmid)
    w3, b3 = w3_ref[...], b3_ref[...]
    if need_skip:
        wsk, bsk = wsk_ref[...], bsk_ref[...]

    # Zero the padded scratch once per grid step; only the interior is
    # rewritten per row, so the 1-pixel border provides the conv zero padding.
    pad_ref[...] = jnp.zeros((H + 2, W + 2, Cmid), jnp.float32)

    # Row-by-row over the batch tile keeps live data well under the vreg file.
    for bi in range(TB):
        x_b = x_ref[bi].reshape(HW, Cin)                                  # (HW, Cin)

        # bn1 -> relu -> conv1 (1x1)
        h1 = jnp.maximum(x_b * bn1s + bn1b, 0.0)
        m1 = jnp.dot(h1, w1, preferred_element_type=jnp.float32) + b1    # (HW, Cmid)

        # bn2 -> relu
        h2 = jnp.maximum(m1 * bn2s + bn2b, 0.0)

        # conv2 (3x3, pad 1): 9 shifted matmuls against the padded scratch.
        pad_ref[pl.ds(1, H), pl.ds(1, W), :] = h2.reshape(H, W, Cmid)
        acc = jnp.zeros((HW, Cmid), jnp.float32)
        for t in range(9):
            dh, dw = t // 3, t % 3
            patch = pad_ref[pl.ds(dh, H), pl.ds(dw, W), :].reshape(HW, Cmid)
            acc = acc + jnp.dot(patch, w2[t], preferred_element_type=jnp.float32)
        m2 = acc + b2

        # bn3 -> relu -> conv3 (1x1)
        h3 = jnp.maximum(m2 * bn3s + bn3b, 0.0)
        out_main = jnp.dot(h3, w3, preferred_element_type=jnp.float32) + b3   # (HW, Cout)

        # Skip path: 1x1 conv when inp_dim != out_dim, identity otherwise.
        if need_skip:
            res = jnp.dot(x_b, wsk, preferred_element_type=jnp.float32) + bsk
        else:
            res = x_b

        o_ref[bi] = (out_main + res).reshape(H, W, Cout)


# ----------------------------------------------------------------------------
# Wrapper
# ----------------------------------------------------------------------------
def residual_forward(
    x_nchw,
    bn1_gamma, bn1_beta, bn1_mean, bn1_var,
    w1, b1,                       # torch layouts: w1 (Cmid, Cin, 1, 1)
    bn2_gamma, bn2_beta, bn2_mean, bn2_var,
    w2, b2,                       # w2 (Cmid, Cmid, 3, 3)
    bn3_gamma, bn3_beta, bn3_mean, bn3_var,
    w3, b3,                       # w3 (Cout, Cmid, 1, 1)
    wskip=None, bskip=None,       # wskip (Cout, Cin, 1, 1) or None (identity skip)
    eps=1e-5,
):
    B, Cin, H, W = x_nchw.shape
    Cmid = w1.shape[0]
    Cout = w3.shape[0]
    need_skip = wskip is not None
    if not need_skip:
        assert Cin == Cout, "identity skip requires inp_dim == out_dim"

    # NCHW -> NHWC: channels on the lane axis.
    x = jnp.transpose(x_nchw, (0, 2, 3, 1)).astype(jnp.float32)

    # Fold BatchNorm (eval mode) into per-channel scale / shift.
    def fold_bn(g, b, m, v):
        s = g / jnp.sqrt(v + eps)
        return (s.reshape(1, -1).astype(jnp.float32),
                (b - m * s).reshape(1, -1).astype(jnp.float32))

    bn1s, bn1sh = fold_bn(bn1_gamma, bn1_beta, bn1_mean, bn1_var)
    bn2s, bn2sh = fold_bn(bn2_gamma, bn2_beta, bn2_mean, bn2_var)
    bn3s, bn3sh = fold_bn(bn3_gamma, bn3_beta, bn3_mean, bn3_var)

    # Torch conv weights -> matmul-friendly layouts (in-channels first).
    w1m = w1[:, :, 0, 0].T                                     # (Cin, Cmid)
    w2m = jnp.transpose(w2, (2, 3, 1, 0)).reshape(9, Cmid, Cmid)  # [t=dh*3+dw] (Cin_mid, Cout_mid)
    w3m = w3[:, :, 0, 0].T                                     # (Cmid, Cout)
    b1m = b1.reshape(1, Cmid).astype(jnp.float32)
    b2m = b2.reshape(1, Cmid).astype(jnp.float32)
    b3m = b3.reshape(1, Cout).astype(jnp.float32)

    operands = [x, bn1s, bn1sh, w1m.astype(jnp.float32), b1m,
                bn2s, bn2sh, w2m.astype(jnp.float32), b2m,
                bn3s, bn3sh, w3m.astype(jnp.float32), b3m]
    if need_skip:
        wsm = wskip[:, :, 0, 0].T.astype(jnp.float32)          # (Cin, Cout)
        bsm = bskip.reshape(1, Cout).astype(jnp.float32)
        operands += [wsm, bsm]

    # Pick the batch tile: keep x+out tile <= ~1 MiB and grid length >= 2
    # (so the "parallel" batch axis can be sharded across TensorCores).
    bytes_per_elem = H * W * (Cin + Cout) * 4
    TB = 1
    for tb in range(1, B + 1):
        if B % tb:
            continue
        if tb * bytes_per_elem <= (1 << 20) and (B // tb) >= min(2, B):
            TB = tb
    grid = (B // TB,)

    def const_spec(a):
        n = a.ndim
        return pl.BlockSpec(a.shape, lambda b, n=n: (0,) * n)

    in_specs = [pl.BlockSpec((TB, H, W, Cin), lambda b: (b, 0, 0, 0))]
    in_specs += [const_spec(a) for a in operands[1:]]
    out_specs = pl.BlockSpec((TB, H, W, Cout), lambda b: (b, 0, 0, 0))

    # VMEM budget: double-buffered x/out tiles + params + padded scratch + headroom.
    x_tile = TB * H * W * Cin * 4
    o_tile = TB * H * W * Cout * 4
    w_bytes = sum(int(a.size) * 4 for a in operands[1:])
    pad_bytes = (H + 2) * (W + 2) * max(Cmid, 128) * 4
    vmem_bytes = 2 * (x_tile + o_tile) + 2 * w_bytes + pad_bytes + (8 << 20)
    vmem_bytes = int(min(max(vmem_bytes, 16 << 20), 64 << 20))

    kernel = functools.partial(
        _residual_kernel, need_skip=need_skip, TB=TB,
        H=H, W=W, Cin=Cin, Cmid=Cmid, Cout=Cout)

    out_nhwc = pl.pallas_call(
        kernel,
        out_shape=jax.ShapeDtypeStruct((B, H, W, Cout), jnp.float32),
        grid_spec=pltpu.PrefetchScalarGridSpec(
            num_scalar_prefetch=0,
            grid=grid,
            in_specs=in_specs,
            out_specs=out_specs,
            scratch_shapes=[pltpu.VMEM((H + 2, W + 2, Cmid), jnp.float32)],
        ),
        compiler_params=pltpu.CompilerParams(
            dimension_semantics=("parallel",),
            vmem_limit_bytes=vmem_bytes,
        ),
    )(*operands)

    return jnp.transpose(out_nhwc, (0, 3, 1, 2))   # back to NCHW


# ----------------------------------------------------------------------------
# Pure-JAX reference (eval-mode BN, explicit convs) for sanity checking.
# ----------------------------------------------------------------------------
def residual_reference(x, bn1, w1, b1, bn2, w2, b2, bn3, w3, b3,
                       wskip=None, bskip=None, eps=1e-5):
    prec = jax.lax.Precision.HIGHEST

    def bn(h, params):
        g, b, m, v = params
        inv = g / jnp.sqrt(v + eps)
        return (h - m[None, :, None, None]) * inv[None, :, None, None] \
            + b[None, :, None, None]

    def conv(h, w, b, pad):
        y = jax.lax.conv_general_dilated(
            h, w, window_strides=(1, 1), padding=[(pad, pad), (pad, pad)],
            dimension_numbers=("NCHW", "OIHW", "NCHW"), precision=prec)
        return y + b[None, :, None, None]

    residual = conv(x, wskip, bskip, 0) if wskip is not None else x
    out = jax.nn.relu(bn(x, bn1))
    out = conv(out, w1, b1, 0)
    out = jax.nn.relu(bn(out, bn2))
    out = conv(out, w2, b2, 1)
    out = jax.nn.relu(bn(out, bn3))
    out = conv(out, w3, b3, 0)
    return out + residual


# ----------------------------------------------------------------------------
# Test
# ----------------------------------------------------------------------------
if __name__ == "__main__":
    B, inp_dim, out_dim, H, W = 4, 64, 128, 16, 16   # inp_dim != out_dim -> skip conv used
    Cmid = inp_dim // 2

    key = jax.random.PRNGKey(0)
    keys = jax.random.split(key, 16)
    x = jax.random.normal(keys[0], (B, inp_dim, H, W), jnp.float32)

    def bn_params(k, c):
        k1, k2, k3, k4 = jax.random.split(k, 4)
        gamma = 1.0 + 0.1 * jax.random.normal(k1, (c,), jnp.float32)
        beta = 0.1 * jax.random.normal(k2, (c,), jnp.float32)
        mean = 0.1 * jax.random.normal(k3, (c,), jnp.float32)
        var = 1.0 + 0.1 * jax.random.uniform(k4, (c,), jnp.float32)
        return gamma, beta, mean, var

    bn1 = bn_params(keys[1], inp_dim)
    bn2 = bn_params(keys[2], Cmid)
    bn3 = bn_params(keys[3], Cmid)

    w1 = 0.1 * jax.random.normal(keys[4], (Cmid, inp_dim, 1, 1), jnp.float32)
    b1 = 0.1 * jax.random.normal(keys[5], (Cmid,), jnp.float32)
    w2 = 0.1 * jax.random.normal(keys[6], (Cmid, Cmid, 3, 3), jnp.float32)
    b2 = 0.1 * jax.random.normal(keys[7], (Cmid,), jnp.float32)
    w3 = 0.1 * jax.random.normal(keys[8], (out_dim, Cmid, 1, 1), jnp.float32)
    b3 = 0.1 * jax.random.normal(keys[9], (out_dim,), jnp.float32)
    wskip = 0.1 * jax.random.normal(keys[10], (out_dim, inp_dim, 1, 1), jnp.float32)
    bskip = 0.1 * jax.random.normal(keys[11], (out_dim,), jnp.float32)

    y = residual_forward(
        x, *bn1, w1, b1, *bn2, w2, b2, *bn3, w3, b3, wskip, bskip)
    y = jax.block_until_ready(y)

    y_ref = residual_reference(x, bn1, w1, b1, bn2, w2, b2, bn3, w3, b3,
                               wskip, bskip)

    assert y.shape == (B, out_dim, H, W), y.shape
    # Loose-ish tolerance: kernel matmuls vs XLA convs accumulate in different
    # orders / MXU passes; real layout/padding bugs show up as O(0.1-1) errors.
    max_err = float(jnp.max(jnp.abs(y - y_ref)))
    assert jnp.allclose(y, y_ref, atol=1e-2, rtol=1e-2), max_err

    print("KERNEL_OK")
</pallas_src>

<mosaic_0001>
module attributes {stable_mosaic.version = 11 : i64} {
  func.func @_residual_kernel(%arg0: i32, %arg1: memref<2x16x16x64xf32, #tpu.memory_space<vmem>>, %arg2: memref<1x64xf32, #tpu.memory_space<vmem>>, %arg3: memref<1x64xf32, #tpu.memory_space<vmem>>, %arg4: memref<64x32xf32, #tpu.memory_space<vmem>>, %arg5: memref<1x32xf32, #tpu.memory_space<vmem>>, %arg6: memref<1x32xf32, #tpu.memory_space<vmem>>, %arg7: memref<1x32xf32, #tpu.memory_space<vmem>>, %arg8: memref<9x32x32xf32, #tpu.memory_space<vmem>>, %arg9: memref<1x32xf32, #tpu.memory_space<vmem>>, %arg10: memref<1x32xf32, #tpu.memory_space<vmem>>, %arg11: memref<1x32xf32, #tpu.memory_space<vmem>>, %arg12: memref<32x128xf32, #tpu.memory_space<vmem>>, %arg13: memref<1x128xf32, #tpu.memory_space<vmem>>, %arg14: memref<64x128xf32, #tpu.memory_space<vmem>>, %arg15: memref<1x128xf32, #tpu.memory_space<vmem>>, %arg16: memref<2x16x16x128xf32, #tpu.memory_space<vmem>>, %arg17: memref<18x18x32xf32, #tpu.memory_space<vmem>>) attributes {dimension_semantics = [#tpu.dimension_semantics<parallel>], iteration_bounds = array<i64: 2>, scalar_prefetch = 0 : i64, scratch_operands = 1 : i64, tpu.core_type = #tpu.core_type<tc>, window_params = [{transform_indices = @transform_0, window_bounds = array<i64: 2, 16, 16, 64>}, {pipeline_mode = #tpu.pipeline_mode<synchronous>, transform_indices = @transform_1, window_bounds = array<i64: 1, 64>}, {pipeline_mode = #tpu.pipeline_mode<synchronous>, transform_indices = @transform_2, window_bounds = array<i64: 1, 64>}, {pipeline_mode = #tpu.pipeline_mode<synchronous>, transform_indices = @transform_3, window_bounds = array<i64: 64, 32>}, {pipeline_mode = #tpu.pipeline_mode<synchronous>, transform_indices = @transform_4, window_bounds = array<i64: 1, 32>}, {pipeline_mode = #tpu.pipeline_mode<synchronous>, transform_indices = @transform_5, window_bounds = array<i64: 1, 32>}, {pipeline_mode = #tpu.pipeline_mode<synchronous>, transform_indices = @transform_6, window_bounds = array<i64: 1, 32>}, {pipeline_mode = #tpu.pipeline_mode<synchronous>, transform_indices = @transform_7, window_bounds = array<i64: 9, 32, 32>}, {pipeline_mode = #tpu.pipeline_mode<synchronous>, transform_indices = @transform_8, window_bounds = array<i64: 1, 32>}, {pipeline_mode = #tpu.pipeline_mode<synchronous>, transform_indices = @transform_9, window_bounds = array<i64: 1, 32>}, {pipeline_mode = #tpu.pipeline_mode<synchronous>, transform_indices = @transform_10, window_bounds = array<i64: 1, 32>}, {pipeline_mode = #tpu.pipeline_mode<synchronous>, transform_indices = @transform_11, window_bounds = array<i64: 32, 128>}, {pipeline_mode = #tpu.pipeline_mode<synchronous>, transform_indices = @transform_12, window_bounds = array<i64: 1, 128>}, {pipeline_mode = #tpu.pipeline_mode<synchronous>, transform_indices = @transform_13, window_bounds = array<i64: 64, 128>}, {pipeline_mode = #tpu.pipeline_mode<synchronous>, transform_indices = @transform_14, window_bounds = array<i64: 1, 128>}, {transform_indices = @transform_15, window_bounds = array<i64: 2, 16, 16, 128>}]} {
    %c0 = arith.constant 0 : index
    %c0_0 = arith.constant 0 : index
    %0 = vector.load %arg2[%c0, %c0_0] : memref<1x64xf32, #tpu.memory_space<vmem>>, vector<1x64xf32>
    %c0_1 = arith.constant 0 : index
    %c0_2 = arith.constant 0 : index
    %1 = vector.load %arg3[%c0_1, %c0_2] : memref<1x64xf32, #tpu.memory_space<vmem>>, vector<1x64xf32>
    %c0_3 = arith.constant 0 : index
    %c0_4 = arith.constant 0 : index
    %2 = vector.load %arg6[%c0_3, %c0_4] : memref<1x32xf32, #tpu.memory_space<vmem>>, vector<1x32xf32>
    %c0_5 = arith.constant 0 : index
    %c0_6 = arith.constant 0 : index
    %3 = vector.load %arg7[%c0_5, %c0_6] : memref<1x32xf32, #tpu.memory_space<vmem>>, vector<1x32xf32>
    %c0_7 = arith.constant 0 : index
    %c0_8 = arith.constant 0 : index
    %4 = vector.load %arg10[%c0_7, %c0_8] : memref<1x32xf32, #tpu.memory_space<vmem>>, vector<1x32xf32>
    %c0_9 = arith.constant 0 : index
    %c0_10 = arith.constant 0 : index
    %5 = vector.load %arg11[%c0_9, %c0_10] : memref<1x32xf32, #tpu.memory_space<vmem>>, vector<1x32xf32>
    %c0_11 = arith.constant 0 : index
    %c0_12 = arith.constant 0 : index
    %6 = vector.load %arg4[%c0_11, %c0_12] : memref<64x32xf32, #tpu.memory_space<vmem>>, vector<64x32xf32>
    %c0_13 = arith.constant 0 : index
    %c0_14 = arith.constant 0 : index
    %7 = vector.load %arg5[%c0_13, %c0_14] : memref<1x32xf32, #tpu.memory_space<vmem>>, vector<1x32xf32>
    %c0_15 = arith.constant 0 : index
    %c0_16 = arith.constant 0 : index
    %c0_17 = arith.constant 0 : index
    %8 = vector.load %arg8[%c0_15, %c0_16, %c0_17] : memref<9x32x32xf32, #tpu.memory_space<vmem>>, vector<9x32x32xf32>
    %c0_18 = arith.constant 0 : index
    %c0_19 = arith.constant 0 : index
    %9 = vector.load %arg9[%c0_18, %c0_19] : memref<1x32xf32, #tpu.memory_space<vmem>>, vector<1x32xf32>
    %c0_20 = arith.constant 0 : index
    %c0_21 = arith.constant 0 : index
    %10 = vector.load %arg12[%c0_20, %c0_21] : memref<32x128xf32, #tpu.memory_space<vmem>>, vector<32x128xf32>
    %c0_22 = arith.constant 0 : index
    %c0_23 = arith.constant 0 : index
    %11 = vector.load %arg13[%c0_22, %c0_23] : memref<1x128xf32, #tpu.memory_space<vmem>>, vector<1x128xf32>
    %c0_24 = arith.constant 0 : index
    %c0_25 = arith.constant 0 : index
    %12 = vector.load %arg14[%c0_24, %c0_25] : memref<64x128xf32, #tpu.memory_space<vmem>>, vector<64x128xf32>
    %c0_26 = arith.constant 0 : index
    %c0_27 = arith.constant 0 : index
    %13 = vector.load %arg15[%c0_26, %c0_27] : memref<1x128xf32, #tpu.memory_space<vmem>>, vector<1x128xf32>
    %cst = arith.constant 0.000000e+00 : f32
    %14 = vector.broadcast %cst : f32 to vector<18x18x32xf32>
    %c0_28 = arith.constant 0 : index
    %c0_29 = arith.constant 0 : index
    %c0_30 = arith.constant 0 : index
    %15 = vector.load %arg17[%c0_28, %c0_29, %c0_30] : memref<18x18x32xf32, #tpu.memory_space<vmem>>, vector<18x18x32xf32>
    tpu.vector_store %arg17[%c0_28, %c0_29, %c0_30], %14 {strides = array<i32>} : memref<18x18x32xf32, #tpu.memory_space<vmem>>, vector<18x18x32xf32>,
    %c0_31 = arith.constant 0 : index
    %c0_32 = arith.constant 0 : index
    %c0_33 = arith.constant 0 : index
    %c0_34 = arith.constant 0 : index
    %16 = vector.load %arg1[%c0_31, %c0_32, %c0_33, %c0_34] : memref<2x16x16x64xf32, #tpu.memory_space<vmem>>, vector<1x16x16x64xf32>
    %17 = vector.shape_cast %16 : vector<1x16x16x64xf32> to vector<16x16x64xf32>
    %18 = vector.shape_cast %17 : vector<16x16x64xf32> to vector<256x64xf32>
    %19 = vector.broadcast %0 : vector<1x64xf32> to vector<256x64xf32>
    %20 = arith.mulf %18, %19 : vector<256x64xf32>
    %21 = vector.broadcast %1 : vector<1x64xf32> to vector<256x64xf32>
    %22 = arith.addf %20, %21 : vector<256x64xf32>
    %cst_35 = arith.constant 0.000000e+00 : f32
    %23 = vector.broadcast %cst_35 : f32 to vector<256x64xf32>
    %24 = arith.maximumf %22, %23 : vector<256x64xf32>
    %cst_36 = arith.constant dense<0.000000e+00> : vector<256x32xf32>
    %25 = tpu.matmul %24, %6, %cst_36 {dimension_numbers = #tpu.dot_dimension_numbers<[1], [0], [0], [1], [0, 0, 1, 1], [], []>} : vector<256x64xf32>, vector<64x32xf32>, vector<256x32xf32> -> vector<256x32xf32>
    %26 = vector.broadcast %7 : vector<1x32xf32> to vector<256x32xf32>
    %27 = arith.addf %25, %26 : vector<256x32xf32>
    %28 = vector.broadcast %2 : vector<1x32xf32> to vector<256x32xf32>
    %29 = arith.mulf %27, %28 : vector<256x32xf32>
    %30 = vector.broadcast %3 : vector<1x32xf32> to vector<256x32xf32>
    %31 = arith.addf %29, %30 : vector<256x32xf32>
    %cst_37 = arith.constant 0.000000e+00 : f32
    %32 = vector.broadcast %cst_37 : f32 to vector<256x32xf32>
    %33 = arith.maximumf %31, %32 : vector<256x32xf32>
    %34 = vector.shape_cast %33 : vector<256x32xf32> to vector<16x16x32xf32>
    %c1 = arith.constant 1 : index
    %c1_38 = arith.constant 1 : index
    %c0_39 = arith.constant 0 : index
    %35 = vector.load %arg17[%c1, %c1_38, %c0_39] : memref<18x18x32xf32, #tpu.memory_space<vmem>>, vector<16x16x32xf32>
    tpu.vector_store %arg17[%c1, %c1_38, %c0_39], %34 {strides = array<i32>} : memref<18x18x32xf32, #tpu.memory_space<vmem>>, vector<16x16x32xf32>,
    %cst_40 = arith.constant 0.000000e+00 : f32
    %36 = vector.broadcast %cst_40 : f32 to vector<256x32xf32>
    %c0_41 = arith.constant 0 : index
    %c0_42 = arith.constant 0 : index
    %c0_43 = arith.constant 0 : index
    %37 = vector.load %arg17[%c0_41, %c0_42, %c0_43] : memref<18x18x32xf32, #tpu.memory_space<vmem>>, vector<16x16x32xf32>
    %38 = vector.shape_cast %37 : vector<16x16x32xf32> to vector<256x32xf32>
    %39 = vector.extract_strided_slice %8 {offsets = [0, 0, 0], sizes = [1, 32, 32], strides = [1, 1, 1]} : vector<9x32x32xf32> to vector<1x32x32xf32>
    %40 = vector.shape_cast %39 : vector<1x32x32xf32> to vector<32x32xf32>
    %cst_44 = arith.constant dense<0.000000e+00> : vector<256x32xf32>
    %41 = tpu.matmul %38, %40, %cst_44 {dimension_numbers = #tpu.dot_dimension_numbers<[1], [0], [0], [1], [0, 0, 1, 1], [], []>} : vector<256x32xf32>, vector<32x32xf32>, vector<256x32xf32> -> vector<256x32xf32>
    %42 = arith.addf %36, %41 : vector<256x32xf32>
    %c0_45 = arith.constant 0 : index
    %c1_46 = arith.constant 1 : index
    %c0_47 = arith.constant 0 : index
    %43 = vector.load %arg17[%c0_45, %c1_46, %c0_47] : memref<18x18x32xf32, #tpu.memory_space<vmem>>, vector<16x16x32xf32>
    %44 = vector.shape_cast %43 : vector<16x16x32xf32> to vector<256x32xf32>
    %45 = vector.extract_strided_slice %8 {offsets = [1, 0, 0], sizes = [1, 32, 32], strides = [1, 1, 1]} : vector<9x32x32xf32> to vector<1x32x32xf32>
    %46 = vector.shape_cast %45 : vector<1x32x32xf32> to vector<32x32xf32>
    %cst_48 = arith.constant dense<0.000000e+00> : vector<256x32xf32>
    %47 = tpu.matmul %44, %46, %cst_48 {dimension_numbers = #tpu.dot_dimension_numbers<[1], [0], [0], [1], [0, 0, 1, 1], [], []>} : vector<256x32xf32>, vector<32x32xf32>, vector<256x32xf32> -> vector<256x32xf32>
    %48 = arith.addf %42, %47 : vector<256x32xf32>
    %c0_49 = arith.constant 0 : index
    %c2 = arith.constant 2 : index
    %c0_50 = arith.constant 0 : index
    %49 = vector.load %arg17[%c0_49, %c2, %c0_50] : memref<18x18x32xf32, #tpu.memory_space<vmem>>, vector<16x16x32xf32>
    %50 = vector.shape_cast %49 : vector<16x16x32xf32> to vector<256x32xf32>
    %51 = vector.extract_strided_slice %8 {offsets = [2, 0, 0], sizes = [1, 32, 32], strides = [1, 1, 1]} : vector<9x32x32xf32> to vector<1x32x32xf32>
    %52 = vector.shape_cast %51 : vector<1x32x32xf32> to vector<32x32xf32>
    %cst_51 = arith.constant dense<0.000000e+00> : vector<256x32xf32>
    %53 = tpu.matmul %50, %52, %cst_51 {dimension_numbers = #tpu.dot_dimension_numbers<[1], [0], [0], [1], [0, 0, 1, 1], [], []>} : vector<256x32xf32>, vector<32x32xf32>, vector<256x32xf32> -> vector<256x32xf32>
    %54 = arith.addf %48, %53 : vector<256x32xf32>
    %c1_52 = arith.constant 1 : index
    %c0_53 = arith.constant 0 : index
    %c0_54 = arith.constant 0 : index
    %55 = vector.load %arg17[%c1_52, %c0_53, %c0_54] : memref<18x18x32xf32, #tpu.memory_space<vmem>>, vector<16x16x32xf32>
    %56 = vector.shape_cast %55 : vector<16x16x32xf32> to vector<256x32xf32>
    %57 = vector.extract_strided_slice %8 {offsets = [3, 0, 0], sizes = [1, 32, 32], strides = [1, 1, 1]} : vector<9x32x32xf32> to vector<1x32x32xf32>
    %58 = vector.shape_cast %57 : vector<1x32x32xf32> to vector<32x32xf32>
    %cst_55 = arith.constant dense<0.000000e+00> : vector<256x32xf32>
    %59 = tpu.matmul %56, %58, %cst_55 {dimension_numbers = #tpu.dot_dimension_numbers<[1], [0], [0], [1], [0, 0, 1, 1], [], []>} : vector<256x32xf32>, vector<32x32xf32>, vector<256x32xf32> -> vector<256x32xf32>
    %60 = arith.addf %54, %59 : vector<256x32xf32>
    %c1_56 = arith.constant 1 : index
    %c1_57 = arith.constant 1 : index
    %c0_58 = arith.constant 0 : index
    %61 = vector.load %arg17[%c1_56, %c1_57, %c0_58] : memref<18x18x32xf32, #tpu.memory_space<vmem>>, vector<16x16x32xf32>
    %62 = vector.shape_cast %61 : vector<16x16x32xf32> to vector<256x32xf32>
    %63 = vector.extract_strided_slice %8 {offsets = [4, 0, 0], sizes = [1, 32, 32], strides = [1, 1, 1]} : vector<9x32x32xf32> to vector<1x32x32xf32>
    %64 = vector.shape_cast %63 : vector<1x32x32xf32> to vector<32x32xf32>
    %cst_59 = arith.constant dense<0.000000e+00> : vector<256x32xf32>
    %65 = tpu.matmul %62, %64, %cst_59 {dimension_numbers = #tpu.dot_dimension_numbers<[1], [0], [0], [1], [0, 0, 1, 1], [], []>} : vector<256x32xf32>, vector<32x32xf32>, vector<256x32xf32> -> vector<256x32xf32>
    %66 = arith.addf %60, %65 : vector<256x32xf32>
    %c1_60 = arith.constant 1 : index
    %c2_61 = arith.constant 2 : index
    %c0_62 = arith.constant 0 : index
    %67 = vector.load %arg17[%c1_60, %c2_61, %c0_62] : memref<18x18x32xf32, #tpu.memory_space<vmem>>, vector<16x16x32xf32>
    %68 = vector.shape_cast %67 : vector<16x16x32xf32> to vector<256x32xf32>
    %69 = vector.extract_strided_slice %8 {offsets = [5, 0, 0], sizes = [1, 32, 32], strides = [1, 1, 1]} : vector<9x32x32xf32> to vector<1x32x32xf32>
    %70 = vector.shape_cast %69 : vector<1x32x32xf32> to vector<32x32xf32>
    %cst_63 = arith.constant dense<0.000000e+00> : vector<256x32xf32>
    %71 = tpu.matmul %68, %70, %cst_63 {dimension_numbers = #tpu.dot_dimension_numbers<[1], [0], [0], [1], [0, 0, 1, 1], [], []>} : vector<256x32xf32>, vector<32x32xf32>, vector<256x32xf32> -> vector<256x32xf32>
    %72 = arith.addf %66, %71 : vector<256x32xf32>
    %c2_64 = arith.constant 2 : index
    %c0_65 = arith.constant 0 : index
    %c0_66 = arith.constant 0 : index
    %73 = vector.load %arg17[%c2_64, %c0_65, %c0_66] : memref<18x18x32xf32, #tpu.memory_space<vmem>>, vector<16x16x32xf32>
    %74 = vector.shape_cast %73 : vector<16x16x32xf32> to vector<256x32xf32>
    %75 = vector.extract_strided_slice %8 {offsets = [6, 0, 0], sizes = [1, 32, 32], strides = [1, 1, 1]} : vector<9x32x32xf32> to vector<1x32x32xf32>
    %76 = vector.shape_cast %75 : vector<1x32x32xf32> to vector<32x32xf32>
    %cst_67 = arith.constant dense<0.000000e+00> : vector<256x32xf32>
    %77 = tpu.matmul %74, %76, %cst_67 {dimension_numbers = #tpu.dot_dimension_numbers<[1], [0], [0], [1], [0, 0, 1, 1], [], []>} : vector<256x32xf32>, vector<32x32xf32>, vector<256x32xf32> -> vector<256x32xf32>
    %78 = arith.addf %72, %77 : vector<256x32xf32>
    %c2_68 = arith.constant 2 : index
    %c1_69 = arith.constant 1 : index
    %c0_70 = arith.constant 0 : index
    %79 = vector.load %arg17[%c2_68, %c1_69, %c0_70] : memref<18x18x32xf32, #tpu.memory_space<vmem>>, vector<16x16x32xf32>
    %80 = vector.shape_cast %79 : vector<16x16x32xf32> to vector<256x32xf32>
    %81 = vector.extract_strided_slice %8 {offsets = [7, 0, 0], sizes = [1, 32, 32], strides = [1, 1, 1]} : vector<9x32x32xf32> to vector<1x32x32xf32>
    %82 = vector.shape_cast %81 : vector<1x32x32xf32> to vector<32x32xf32>
    %cst_71 = arith.constant dense<0.000000e+00> : vector<256x32xf32>
    %83 = tpu.matmul %80, %82, %cst_71 {dimension_numbers = #tpu.dot_dimension_numbers<[1], [0], [0], [1], [0, 0, 1, 1], [], []>} : vector<256x32xf32>, vector<32x32xf32>, vector<256x32xf32> -> vector<256x32xf32>
    %84 = arith.addf %78, %83 : vector<256x32xf32>
    %c2_72 = arith.constant 2 : index
    %c2_73 = arith.constant 2 : index
    %c0_74 = arith.constant 0 : index
    %85 = vector.load %arg17[%c2_72, %c2_73, %c0_74] : memref<18x18x32xf32, #tpu.memory_space<vmem>>, vector<16x16x32xf32>
    %86 = vector.shape_cast %85 : vector<16x16x32xf32> to vector<256x32xf32>
    %87 = vector.extract_strided_slice %8 {offsets = [8, 0, 0], sizes = [1, 32, 32], strides = [1, 1, 1]} : vector<9x32x32xf32> to vector<1x32x32xf32>
    %88 = vector.shape_cast %87 : vector<1x32x32xf32> to vector<32x32xf32>
    %cst_75 = arith.constant dense<0.000000e+00> : vector<256x32xf32>
    %89 = tpu.matmul %86, %88, %cst_75 {dimension_numbers = #tpu.dot_dimension_numbers<[1], [0], [0], [1], [0, 0, 1, 1], [], []>} : vector<256x32xf32>, vector<32x32xf32>, vector<256x32xf32> -> vector<256x32xf32>
    %90 = arith.addf %84, %89 : vector<256x32xf32>
    %91 = vector.broadcast %9 : vector<1x32xf32> to vector<256x32xf32>
    %92 = arith.addf %90, %91 : vector<256x32xf32>
    %93 = vector.broadcast %4 : vector<1x32xf32> to vector<256x32xf32>
    %94 = arith.mulf %92, %93 : vector<256x32xf32>
    %95 = vector.broadcast %5 : vector<1x32xf32> to vector<256x32xf32>
    %96 = arith.addf %94, %95 : vector<256x32xf32>
    %cst_76 = arith.constant 0.000000e+00 : f32
    %97 = vector.broadcast %cst_76 : f32 to vector<256x32xf32>
    %98 = arith.maximumf %96, %97 : vector<256x32xf32>
    %cst_77 = arith.constant dense<0.000000e+00> : vector<256x128xf32>
    %99 = tpu.matmul %98, %10, %cst_77 {dimension_numbers = #tpu.dot_dimension_numbers<[1], [0], [0], [1], [0, 0, 1, 1], [], []>} : vector<256x32xf32>, vector<32x128xf32>, vector<256x128xf32> -> vector<256x128xf32>
    %100 = vector.broadcast %11 : vector<1x128xf32> to vector<256x128xf32>
    %101 = arith.addf %99, %100 : vector<256x128xf32>
    %cst_78 = arith.constant dense<0.000000e+00> : vector<256x128xf32>
    %102 = tpu.matmul %18, %12, %cst_78 {dimension_numbers = #tpu.dot_dimension_numbers<[1], [0], [0], [1], [0, 0, 1, 1], [], []>} : vector<256x64xf32>, vector<64x128xf32>, vector<256x128xf32> -> vector<256x128xf32>
    %103 = vector.broadcast %13 : vector<1x128xf32> to vector<256x128xf32>
    %104 = arith.addf %102, %103 : vector<256x128xf32>
    %105 = arith.addf %101, %104 : vector<256x128xf32>
    %106 = vector.shape_cast %105 : vector<256x128xf32> to vector<16x16x128xf32>
    %c0_79 = arith.constant 0 : index
    %c0_80 = arith.constant 0 : index
    %c0_81 = arith.constant 0 : index
    %c0_82 = arith.constant 0 : index
    %107 = vector.load %arg16[%c0_79, %c0_80, %c0_81, %c0_82] : memref<2x16x16x128xf32, #tpu.memory_space<vmem>>, vector<1x16x16x128xf32>
    %108 = vector.shape_cast %107 : vector<1x16x16x128xf32> to vector<16x16x128xf32>
    %109 = vector.shape_cast %106 : vector<16x16x128xf32> to vector<1x16x16x128xf32>
    tpu.vector_store %arg16[%c0_79, %c0_80, %c0_81, %c0_82], %109 {strides = array<i32>} : memref<2x16x16x128xf32, #tpu.memory_space<vmem>>, vector<1x16x16x128xf32>,
    %c1_83 = arith.constant 1 : index
    %c0_84 = arith.constant 0 : index
    %c0_85 = arith.constant 0 : index
    %c0_86 = arith.constant 0 : index
    %110 = vector.load %arg1[%c1_83, %c0_84, %c0_85, %c0_86] : memref<2x16x16x64xf32, #tpu.memory_space<vmem>>, vector<1x16x16x64xf32>
    %111 = vector.shape_cast %110 : vector<1x16x16x64xf32> to vector<16x16x64xf32>
    %112 = vector.shape_cast %111 : vector<16x16x64xf32> to vector<256x64xf32>
    %113 = vector.broadcast %0 : vector<1x64xf32> to vector<256x64xf32>
    %114 = arith.mulf %112, %113 : vector<256x64xf32>
    %115 = vector.broadcast %1 : vector<1x64xf32> to vector<256x64xf32>
    %116 = arith.addf %114, %115 : vector<256x64xf32>
    %cst_87 = arith.constant 0.000000e+00 : f32
    %117 = vector.broadcast %cst_87 : f32 to vector<256x64xf32>
    %118 = arith.maximumf %116, %117 : vector<256x64xf32>
    %cst_88 = arith.constant dense<0.000000e+00> : vector<256x32xf32>
    %119 = tpu.matmul %118, %6, %cst_88 {dimension_numbers = #tpu.dot_dimension_numbers<[1], [0], [0], [1], [0, 0, 1, 1], [], []>} : vector<256x64xf32>, vector<64x32xf32>, vector<256x32xf32> -> vector<256x32xf32>
    %120 = vector.broadcast %7 : vector<1x32xf32> to vector<256x32xf32>
    %121 = arith.addf %119, %120 : vector<256x32xf32>
    %122 = vector.broadcast %2 : vector<1x32xf32> to vector<256x32xf32>
    %123 = arith.mulf %121, %122 : vector<256x32xf32>
    %124 = vector.broadcast %3 : vector<1x32xf32> to vector<256x32xf32>
    %125 = arith.addf %123, %124 : vector<256x32xf32>
    %cst_89 = arith.constant 0.000000e+00 : f32
    %126 = vector.broadcast %cst_89 : f32 to vector<256x32xf32>
    %127 = arith.maximumf %125, %126 : vector<256x32xf32>
    %128 = vector.shape_cast %127 : vector<256x32xf32> to vector<16x16x32xf32>
    %c1_90 = arith.constant 1 : index
    %c1_91 = arith.constant 1 : index
    %c0_92 = arith.constant 0 : index
    %129 = vector.load %arg17[%c1_90, %c1_91, %c0_92] : memref<18x18x32xf32, #tpu.memory_space<vmem>>, vector<16x16x32xf32>
    tpu.vector_store %arg17[%c1_90, %c1_91, %c0_92], %128 {strides = array<i32>} : memref<18x18x32xf32, #tpu.memory_space<vmem>>, vector<16x16x32xf32>,
    %cst_93 = arith.constant 0.000000e+00 : f32
    %130 = vector.broadcast %cst_93 : f32 to vector<256x32xf32>
    %c0_94 = arith.constant 0 : index
    %c0_95 = arith.constant 0 : index
    %c0_96 = arith.constant 0 : index
    %131 = vector.load %arg17[%c0_94, %c0_95, %c0_96] : memref<18x18x32xf32, #tpu.memory_space<vmem>>, vector<16x16x32xf32>
    %132 = vector.shape_cast %131 : vector<16x16x32xf32> to vector<256x32xf32>
    %133 = vector.extract_strided_slice %8 {offsets = [0, 0, 0], sizes = [1, 32, 32], strides = [1, 1, 1]} : vector<9x32x32xf32> to vector<1x32x32xf32>
    %134 = vector.shape_cast %133 : vector<1x32x32xf32> to vector<32x32xf32>
    %cst_97 = arith.constant dense<0.000000e+00> : vector<256x32xf32>
    %135 = tpu.matmul %132, %134, %cst_97 {dimension_numbers = #tpu.dot_dimension_numbers<[1], [0], [0], [1], [0, 0, 1, 1], [], []>} : vector<256x32xf32>, vector<32x32xf32>, vector<256x32xf32> -> vector<256x32xf32>
    %136 = arith.addf %130, %135 : vector<256x32xf32>
    %c0_98 = arith.constant 0 : index
    %c1_99 = arith.constant 1 : index
    %c0_100 = arith.constant 0 : index
    %137 = vector.load %arg17[%c0_98, %c1_99, %c0_100] : memref<18x18x32xf32, #tpu.memory_space<vmem>>, vector<16x16x32xf32>
    %138 = vector.shape_cast %137 : vector<16x16x32xf32> to vector<256x32xf32>
    %139 = vector.extract_strided_slice %8 {offsets = [1, 0, 0], sizes = [1, 32, 32], strides = [1, 1, 1]} : vector<9x32x32xf32> to vector<1x32x32xf32>
    %140 = vector.shape_cast %139 : vector<1x32x32xf32> to vector<32x32xf32>
    %cst_101 = arith.constant dense<0.000000e+00> : vector<256x32xf32>
    %141 = tpu.matmul %138, %140, %cst_101 {dimension_numbers = #tpu.dot_dimension_numbers<[1], [0], [0], [1], [0, 0, 1, 1], [], []>} : vector<256x32xf32>, vector<32x32xf32>, vector<256x32xf32> -> vector<256x32xf32>
    %142 = arith.addf %136, %141 : vector<256x32xf32>
    %c0_102 = arith.constant 0 : index
    %c2_103 = arith.constant 2 : index
    %c0_104 = arith.constant 0 : index
    %143 = vector.load %arg17[%c0_102, %c2_103, %c0_104] : memref<18x18x32xf32, #tpu.memory_space<vmem>>, vector<16x16x32xf32>
    %144 = vector.shape_cast %143 : vector<16x16x32xf32> to vector<256x32xf32>
    %145 = vector.extract_strided_slice %8 {offsets = [2, 0, 0], sizes = [1, 32, 32], strides = [1, 1, 1]} : vector<9x32x32xf32> to vector<1x32x32xf32>
    %146 = vector.shape_cast %145 : vector<1x32x32xf32> to vector<32x32xf32>
    %cst_105 = arith.constant dense<0.000000e+00> : vector<256x32xf32>
    %147 = tpu.matmul %144, %146, %cst_105 {dimension_numbers = #tpu.dot_dimension_numbers<[1], [0], [0], [1], [0, 0, 1, 1], [], []>} : vector<256x32xf32>, vector<32x32xf32>, vector<256x32xf32> -> vector<256x32xf32>
    %148 = arith.addf %142, %147 : vector<256x32xf32>
    %c1_106 = arith.constant 1 : index
    %c0_107 = arith.constant 0 : index
    %c0_108 = arith.constant 0 : index
    %149 = vector.load %arg17[%c1_106, %c0_107, %c0_108] : memref<18x18x32xf32, #tpu.memory_space<vmem>>, vector<16x16x32xf32>
    %150 = vector.shape_cast %149 : vector<16x16x32xf32> to vector<256x32xf32>
    %151 = vector.extract_strided_slice %8 {offsets = [3, 0, 0], sizes = [1, 32, 32], strides = [1, 1, 1]} : vector<9x32x32xf32> to vector<1x32x32xf32>
    %152 = vector.shape_cast %151 : vector<1x32x32xf32> to vector<32x32xf32>
    %cst_109 = arith.constant dense<0.000000e+00> : vector<256x32xf32>
    %153 = tpu.matmul %150, %152, %cst_109 {dimension_numbers = #tpu.dot_dimension_numbers<[1], [0], [0], [1], [0, 0, 1, 1], [], []>} : vector<256x32xf32>, vector<32x32xf32>, vector<256x32xf32> -> vector<256x32xf32>
    %154 = arith.addf %148, %153 : vector<256x32xf32>
    %c1_110 = arith.constant 1 : index
    %c1_111 = arith.constant 1 : index
    %c0_112 = arith.constant 0 : index
    %155 = vector.load %arg17[%c1_110, %c1_111, %c0_112] : memref<18x18x32xf32, #tpu.memory_space<vmem>>, vector<16x16x32xf32>
    %156 = vector.shape_cast %155 : vector<16x16x32xf32> to vector<256x32xf32>
    %157 = vector.extract_strided_slice %8 {offsets = [4, 0, 0], sizes = [1, 32, 32], strides = [1, 1, 1]} : vector<9x32x32xf32> to vector<1x32x32xf32>
    %158 = vector.shape_cast %157 : vector<1x32x32xf32> to vector<32x32xf32>
    %cst_113 = arith.constant dense<0.000000e+00> : vector<256x32xf32>
    %159 = tpu.matmul %156, %158, %cst_113 {dimension_numbers = #tpu.dot_dimension_numbers<[1], [0], [0], [1], [0, 0, 1, 1], [], []>} : vector<256x32xf32>, vector<32x32xf32>, vector<256x32xf32> -> vector<256x32xf32>
    %160 = arith.addf %154, %159 : vector<256x32xf32>
    %c1_114 = arith.constant 1 : index
    %c2_115 = arith.constant 2 : index
    %c0_116 = arith.constant 0 : index
    %161 = vector.load %arg17[%c1_114, %c2_115, %c0_116] : memref<18x18x32xf32, #tpu.memory_space<vmem>>, vector<16x16x32xf32>
    %162 = vector.shape_cast %161 : vector<16x16x32xf32> to vector<256x32xf32>
    %163 = vector.extract_strided_slice %8 {offsets = [5, 0, 0], sizes = [1, 32, 32], strides = [1, 1, 1]} : vector<9x32x32xf32> to vector<1x32x32xf32>
    %164 = vector.shape_cast %163 : vector<1x32x32xf32> to vector<32x32xf32>
    %cst_117 = arith.constant dense<0.000000e+00> : vector<256x32xf32>
    %165 = tpu.matmul %162, %164, %cst_117 {dimension_numbers = #tpu.dot_dimension_numbers<[1], [0], [0], [1], [0, 0, 1, 1], [], []>} : vector<256x32xf32>, vector<32x32xf32>, vector<256x32xf32> -> vector<256x32xf32>
    %166 = arith.addf %160, %165 : vector<256x32xf32>
    %c2_118 = arith.constant 2 : index
    %c0_119 = arith.constant 0 : index
    %c0_120 = arith.constant 0 : index
    %167 = vector.load %arg17[%c2_118, %c0_119, %c0_120] : memref<18x18x32xf32, #tpu.memory_space<vmem>>, vector<16x16x32xf32>
    %168 = vector.shape_cast %167 : vector<16x16x32xf32> to vector<256x32xf32>
    %169 = vector.extract_strided_slice %8 {offsets = [6, 0, 0], sizes = [1, 32, 32], strides = [1, 1, 1]} : vector<9x32x32xf32> to vector<1x32x32xf32>
    %170 = vector.shape_cast %169 : vector<1x32x32xf32> to vector<32x32xf32>
    %cst_121 = arith.constant dense<0.000000e+00> : vector<256x32xf32>
    %171 = tpu.matmul %168, %170, %cst_121 {dimension_numbers = #tpu.dot_dimension_numbers<[1], [0], [0], [1], [0, 0, 1, 1], [], []>} : vector<256x32xf32>, vector<32x32xf32>, vector<256x32xf32> -> vector<256x32xf32>
    %172 = arith.addf %166, %171 : vector<256x32xf32>
    %c2_122 = arith.constant 2 : index
    %c1_123 = arith.constant 1 : index
    %c0_124 = arith.constant 0 : index
    %173 = vector.load %arg17[%c2_122, %c1_123, %c0_124] : memref<18x18x32xf32, #tpu.memory_space<vmem>>, vector<16x16x32xf32>
    %174 = vector.shape_cast %173 : vector<16x16x32xf32> to vector<256x32xf32>
    %175 = vector.extract_strided_slice %8 {offsets = [7, 0, 0], sizes = [1, 32, 32], strides = [1, 1, 1]} : vector<9x32x32xf32> to vector<1x32x32xf32>
    %176 = vector.shape_cast %175 : vector<1x32x32xf32> to vector<32x32xf32>
    %cst_125 = arith.constant dense<0.000000e+00> : vector<256x32xf32>
    %177 = tpu.matmul %174, %176, %cst_125 {dimension_numbers = #tpu.dot_dimension_numbers<[1], [0], [0], [1], [0, 0, 1, 1], [], []>} : vector<256x32xf32>, vector<32x32xf32>, vector<256x32xf32> -> vector<256x32xf32>
    %178 = arith.addf %172, %177 : vector<256x32xf32>
    %c2_126 = arith.constant 2 : index
    %c2_127 = arith.constant 2 : index
    %c0_128 = arith.constant 0 : index
    %179 = vector.load %arg17[%c2_126, %c2_127, %c0_128] : memref<18x18x32xf32, #tpu.memory_space<vmem>>, vector<16x16x32xf32>
    %180 = vector.shape_cast %179 : vector<16x16x32xf32> to vector<256x32xf32>
    %181 = vector.extract_strided_slice %8 {offsets = [8, 0, 0], sizes = [1, 32, 32], strides = [1, 1, 1]} : vector<9x32x32xf32> to vector<1x32x32xf32>
    %182 = vector.shape_cast %181 : vector<1x32x32xf32> to vector<32x32xf32>
    %cst_129 = arith.constant dense<0.000000e+00> : vector<256x32xf32>
    %183 = tpu.matmul %180, %182, %cst_129 {dimension_numbers = #tpu.dot_dimension_numbers<[1], [0], [0], [1], [0, 0, 1, 1], [], []>} : vector<256x32xf32>, vector<32x32xf32>, vector<256x32xf32> -> vector<256x32xf32>
    %184 = arith.addf %178, %183 : vector<256x32xf32>
    %185 = vector.broadcast %9 : vector<1x32xf32> to vector<256x32xf32>
    %186 = arith.addf %184, %185 : vector<256x32xf32>
    %187 = vector.broadcast %4 : vector<1x32xf32> to vector<256x32xf32>
    %188 = arith.mulf %186, %187 : vector<256x32xf32>
    %189 = vector.broadcast %5 : vector<1x32xf32> to vector<256x32xf32>
    %190 = arith.addf %188, %189 : vector<256x32xf32>
    %cst_130 = arith.constant 0.000000e+00 : f32
    %191 = vector.broadcast %cst_130 : f32 to vector<256x32xf32>
    %192 = arith.maximumf %190, %191 : vector<256x32xf32>
    %cst_131 = arith.constant dense<0.000000e+00> : vector<256x128xf32>
    %193 = tpu.matmul %192, %10, %cst_131 {dimension_numbers = #tpu.dot_dimension_numbers<[1], [0], [0], [1], [0, 0, 1, 1], [], []>} : vector<256x32xf32>, vector<32x128xf32>, vector<256x128xf32> -> vector<256x128xf32>
    %194 = vector.broadcast %11 : vector<1x128xf32> to vector<256x128xf32>
    %195 = arith.addf %193, %194 : vector<256x128xf32>
    %cst_132 = arith.constant dense<0.000000e+00> : vector<256x128xf32>
    %196 = tpu.matmul %112, %12, %cst_132 {dimension_numbers = #tpu.dot_dimension_numbers<[1], [0], [0], [1], [0, 0, 1, 1], [], []>} : vector<256x64xf32>, vector<64x128xf32>, vector<256x128xf32> -> vector<256x128xf32>
    %197 = vector.broadcast %13 : vector<1x128xf32> to vector<256x128xf32>
    %198 = arith.addf %196, %197 : vector<256x128xf32>
    %199 = arith.addf %195, %198 : vector<256x128xf32>
    %200 = vector.shape_cast %199 : vector<256x128xf32> to vector<16x16x128xf32>
    %c1_133 = arith.constant 1 : index
    %c0_134 = arith.constant 0 : index
    %c0_135 = arith.constant 0 : index
    %c0_136 = arith.constant 0 : index
    %201 = vector.load %arg16[%c1_133, %c0_134, %c0_135, %c0_136] : memref<2x16x16x128xf32, #tpu.memory_space<vmem>>, vector<1x16x16x128xf32>
    %202 = vector.shape_cast %201 : vector<1x16x16x128xf32> to vector<16x16x128xf32>
    %203 = vector.shape_cast %200 : vector<16x16x128xf32> to vector<1x16x16x128xf32>
    tpu.vector_store %arg16[%c1_133, %c0_134, %c0_135, %c0_136], %203 {strides = array<i32>} : memref<2x16x16x128xf32, #tpu.memory_space<vmem>>, vector<1x16x16x128xf32>,
    return
  }
  func.func @transform_0(%arg0: i32) -> (i32, i32, i32, i32) {
    %c0_i32 = arith.constant 0 : i32
    %c0_i32_0 = arith.constant 0 : i32
    %c0_i32_1 = arith.constant 0 : i32
    %c0_i32_2 = arith.constant 0 : i32
    return %arg0, %c0_i32, %c0_i32_0, %c0_i32_1 : i32, i32, i32, i32
  }
  func.func @transform_1(%arg0: i32) -> (i32, i32) {
    %c0_i32 = arith.constant 0 : i32
    %c0_i32_0 = arith.constant 0 : i32
    %c0_i32_1 = arith.constant 0 : i32
    return %c0_i32, %c0_i32_0 : i32, i32
  }
  func.func @transform_2(%arg0: i32) -> (i32, i32) {
    %c0_i32 = arith.constant 0 : i32
    %c0_i32_0 = arith.constant 0 : i32
    %c0_i32_1 = arith.constant 0 : i32
    return %c0_i32, %c0_i32_0 : i32, i32
  }
  func.func @transform_3(%arg0: i32) -> (i32, i32) {
    %c0_i32 = arith.constant 0 : i32
    %c0_i32_0 = arith.constant 0 : i32
    %c0_i32_1 = arith.constant 0 : i32
    return %c0_i32, %c0_i32_0 : i32, i32
  }
  func.func @transform_4(%arg0: i32) -> (i32, i32) {
    %c0_i32 = arith.constant 0 : i32
    %c0_i32_0 = arith.constant 0 : i32
    %c0_i32_1 = arith.constant 0 : i32
    return %c0_i32, %c0_i32_0 : i32, i32
  }
  func.func @transform_5(%arg0: i32) -> (i32, i32) {
    %c0_i32 = arith.constant 0 : i32
    %c0_i32_0 = arith.constant 0 : i32
    %c0_i32_1 = arith.constant 0 : i32
    return %c0_i32, %c0_i32_0 : i32, i32
  }
  func.func @transform_6(%arg0: i32) -> (i32, i32) {
    %c0_i32 = arith.constant 0 : i32
    %c0_i32_0 = arith.constant 0 : i32
    %c0_i32_1 = arith.constant 0 : i32
    return %c0_i32, %c0_i32_0 : i32, i32
  }
  func.func @transform_7(%arg0: i32) -> (i32, i32, i32) {
    %c0_i32 = arith.constant 0 : i32
    %c0_i32_0 = arith.constant 0 : i32
    %c0_i32_1 = arith.constant 0 : i32
    %c0_i32_2 = arith.constant 0 : i32
    return %c0_i32, %c0_i32_0, %c0_i32_1 : i32, i32, i32
  }
  func.func @transform_8(%arg0: i32) -> (i32, i32) {
    %c0_i32 = arith.constant 0 : i32
    %c0_i32_0 = arith.constant 0 : i32
    %c0_i32_1 = arith.constant 0 : i32
    return %c0_i32, %c0_i32_0 : i32, i32
  }
  func.func @transform_9(%arg0: i32) -> (i32, i32) {
    %c0_i32 = arith.constant 0 : i32
    %c0_i32_0 = arith.constant 0 : i32
    %c0_i32_1 = arith.constant 0 : i32
    return %c0_i32, %c0_i32_0 : i32, i32
  }
  func.func @transform_10(%arg0: i32) -> (i32, i32) {
    %c0_i32 = arith.constant 0 : i32
    %c0_i32_0 = arith.constant 0 : i32
    %c0_i32_1 = arith.constant 0 : i32
    return %c0_i32, %c0_i32_0 : i32, i32
  }
  func.func @transform_11(%arg0: i32) -> (i32, i32) {
    %c0_i32 = arith.constant 0 : i32
    %c0_i32_0 = arith.constant 0 : i32
    %c0_i32_1 = arith.constant 0 : i32
    return %c0_i32, %c0_i32_0 : i32, i32
  }
  func.func @transform_12(%arg0: i32) -> (i32, i32) {
    %c0_i32 = arith.constant 0 : i32
    %c0_i32_0 = arith.constant 0 : i32
    %c0_i32_1 = arith.constant 0 : i32
    return %c0_i32, %c0_i32_0 : i32, i32
  }
  func.func @transform_13(%arg0: i32) -> (i32, i32) {
    %c0_i32 = arith.constant 0 : i32
    %c0_i32_0 = arith.constant 0 : i32
    %c0_i32_1 = arith.constant 0 : i32
    return %c0_i32, %c0_i32_0 : i32, i32
  }
  func.func @transform_14(%arg0: i32) -> (i32, i32) {
    %c0_i32 = arith.constant 0 : i32
    %c0_i32_0 = arith.constant 0 : i32
    %c0_i32_1 = arith.constant 0 : i32
    return %c0_i32, %c0_i32_0 : i32, i32
  }
  func.func @transform_15(%arg0: i32) -> (i32, i32, i32, i32) {
    %c0_i32 = arith.constant 0 : i32
    %c0_i32_0 = arith.constant 0 : i32
    %c0_i32_1 = arith.constant 0 : i32
    %c0_i32_2 = arith.constant 0 : i32
    return %arg0, %c0_i32, %c0_i32_0, %c0_i32_1 : i32, i32, i32, i32
  }
}

</mosaic_0001>

<bundles_post_ra>
// kernel: tpu_custom_call.1
= control target key start
LH: loop header
LB: loop body
LE: loop exit
PB: predicated region body
PF: predicated region fallthrough
CT: control target
= control target key end

     0   :  { %s17926_s0 = inlined_call_operand.hbm [shape: f32[4,16,16,64], index: 0, kind: input, shape index: {}]   ;;  %s17927_s1 = inlined_call_operand.vmem [shape: f32[1,64], index: 1, kind: input, shape index: {}]   ;;  %s17928_s2 = inlined_call_operand.vmem [shape: f32[1,64], index: 2, kind: input, shape index: {}]   ;;  %s17929_s3 = inlined_call_operand.vmem [shape: f32[64,32], index: 3, kind: input, shape index: {}]   ;;  %s17930_s4 = inlined_call_operand.vmem [shape: f32[1,32], index: 4, kind: input, shape index: {}]   ;;  %s17931_s5 = inlined_call_operand.vmem [shape: f32[1,32], index: 5, kind: input, shape index: {}]   ;;  %s17932_s6 = inlined_call_operand.vmem [shape: f32[1,32], index: 6, kind: input, shape index: {}]   ;;  %s17933_s7 = inlined_call_operand.hbm [shape: f32[9,32,32], index: 7, kind: input, shape index: {}]   ;;  %s17934_s8 = inlined_call_operand.vmem [shape: f32[1,32], index: 8, kind: input, shape index: {}]   ;;  %s17935_s9 = inlined_call_operand.vmem [shape: f32[1,32], index: 9, kind: input, shape index: {}]   ;;  %s17936_s10 = inlined_call_operand.vmem [shape: f32[1,32], index: 10, kind: input, shape index: {}]   ;;  %s17937_s11 = inlined_call_operand.vmem [shape: f32[32,128], index: 11, kind: input, shape index: {}]   ;;  %s17938_s12 = inlined_call_operand.vmem [shape: f32[1,128], index: 12, kind: input, shape index: {}]   ;;  %s17939_s13 = inlined_call_operand.vmem [shape: f32[64,128], index: 13, kind: input, shape index: {}]   ;;  %s17940_s14 = inlined_call_operand.vmem [shape: f32[1,128], index: 14, kind: input, shape index: {}]   ;;  %s17941_s15 = inlined_call_operand.hbm [shape: f32[4,16,16,128], index: 15, kind: output, shape index: {}]  }
   0x1   :  { %18129 = sst [smem:[#allocation66_spill]] %s17935_s9 }
   0x2   :  { %18130 = sst [smem:[#allocation67_spill]] %s17936_s10 }
   0x3   :  { %18131 = sst [smem:[#allocation68_spill]] %s17938_s12 }
   0x4   :  { %18132 = sst [smem:[#allocation69_spill]] %s17940_s14 }
   0x5   :  { %18133 = sst [smem:[#allocation70_spill]] %s17941_s15 }
   0x6   :  { %20 = vsyncpa [#allocation4], 0 }
   0x7   :  { %22 = vsyncpa [#allocation4 + $0x1], 0 }
   0x8   :  { %23 = vsyncpa [#allocation7], 0 }
   0x9   :  { %24 = vsyncpa [#allocation5], 0 }
   0xa   :  { %26 = vsyncpa [#allocation5 + $0x1], 0  ;;  %s14844_s18 = smov 0   ;;  %s14846_s19 = smov 0  }
   0xb   :  { %s14848_s20 = smov 0   ;;  %s14850_s21 = smov 0  }
   0xc LB: > { %18134 = sst [smem:[#allocation12_spill]] %s14742_s18  ;;  %s14865_s22 = sadd.s32 4294967295, %s14754_s21   ;;  %s14754_s21 = sphi %s14850_s21, %s18363_s21   ;;  %s14750_s20 = sphi %s14848_s20, %s18366_s20   ;;  %s14746_s19 = sphi %s14846_s19, %s18365_s19   ;;  %s14742_s18 = sphi %s14844_s18, %s18364_s18  }
   0xd   : > { %s10440_s23 = sadd.s32 4294967294, %s14754_s21   ;;  %p52_p0 = scmp.ne.s32.totalorder %s14746_s19, %s14742_s18 }
   0xe   : > { %p17947_p1 = scmp.eq.s32.totalorder %s14865_s22, 0  ;;  %p376_p3 = scmp.eq.s32.totalorder %s10440_s23, 1 }
   0xf   : > { %p10441_p5 = scmp.ge.s32.totalorder %s14754_s21, 1  ;;  %p383_p7 = scmp.lt.s32.totalorder %s14754_s21, 3 }
  0x10   : > { %p14874_p4 = por %p17947_p1, %p52_p0  ;;  %p14879_p6 = por %p376_p3, %p52_p0 }
  0x11   : > { %p14884_p8 = pnand %p10441_p5, %p383_p7  ;;  %s14756_s27 = smov [#allocation6]  }
  0x12   : > { %s18135_s24 = scalar_select %p14874_p4, 1, 0 }
  0x13   : > { %s18136_s25 = scalar_select %p14879_p6, 1, 0 }
  0x14   : > { %s18138_s26 = scalar_select %p14884_p8, 1, 0 }
  0x15   : > { %18137 = sst [smem:[#allocation13_spill]] %s18136_s25  ;;  %s413_s28 = sshll.u32 %s14756_s27, 4  ;;  %s14888_s28 = int_to_ptr.vmem [resolvable:$true] %s413_s28 }
  0x16   : > { %p14500_p9 = pneg %p14884_p8  ;;  %s14900_s30 = sadd.s32 1, %s14754_s21  }
  0x17   : > { %18140 = sst [smem:[#allocation14_spill]] %s14900_s30  ;;  %s39_s16 = sadd.s32 1, %s14750_s20 }
  0x18   : > { %p14895_p11 = pnand %p14500_p9, %p17947_p1  ;;  %s36_s17 = ssub.s32 %s14754_s21, %s14900_s30 }
  0x19   : > { %s14626_s27 = scalar_lea.hbm %s17933_s7, 4608 }
  0x1a   : > { %p14627_p12 = scmp.ne.s32.totalorder %s17933_s7, %s14626_s27  ;;  %p14628_p13 = pneg %p14895_p11 }
  0x1b   : > { %p14633_p5 = scmp.lt.u32.totalorder %s14626_s27, %s17933_s7 }
  0x1c   : > { %p14629_p0 = pnand %p14628_p13, %p14627_p12 }
  0x1e   : > { %p14630_p3 = pneg %p14629_p0 }
  0x20   : > { %p14635_p7 = pnand %p14633_p5, %p14630_p3 }
  0x22   : > { %14638 = shalt.err (!%p14635_p7)
}
  0x23   : > { %s14639_s30 = scalar_lea.vmem %s14888_s28, 4608  ;;  %p14647_p2 = scmp.lt.s32.totalorder %s14888_s28, %s14888_s28 }
  0x24   : > { %p14640_p9 = scmp.ne.s32.totalorder %s14888_s28, %s14639_s30  ;;  %p14648_p6 = scmp.lt.s32.totalorder %s14639_s30, %s14639_s30 }
  0x26   : > { %p14642_p10 = pnand %p14640_p9, %p14628_p13  ;;  %p14649_p4 = por %p14648_p6, %p14647_p2 }
  0x28   : > { %p14643_p1 = pneg %p14642_p10 }
  0x2a   : > { %p14650_p8 = pnand %p14649_p4, %p14643_p1 }
  0x2c   : > { %14653 = shalt.err (!%p14650_p8)
}
  0x2d   : > { %s17952_s15 = smov 128   ;;  %s14758_s12 = smov 8  }
  0x2e   : > { %14503 = dma.hbm_to_vmem [thread:$0]  (!%p14895_p11), %s17933_s7, 4608, %s14888_s28, [#allocation7], %s17952_s15, %s17952_s15, %s14758_s12  }
  0x2f   : > { %p37_p1 = scmp.eq.s32.totalorder %s36_s17, 0  ;;  %p46_p2 = scmp.ne.s32.totalorder %s14750_s20, %s14746_s19 }
  0x30   : > { %p47_p4 = scmp.eq.s32.totalorder %s14754_s21, 0  ;;  %p14513_p6 = scmp.lt.s32.totalorder %s14754_s21, 2 }
  0x31   : > { %s14934_s25 = scalar_select %p37_p1, %s14750_s20, %s39_s16  }
  0x32   : > { %p48_p8 = por %p47_p4, %p46_p2  ;;  %p18141_p10 = scmp.eq.s32.totalorder %s14865_s22, 1 }
  0x33   : > { %s448_s29 = sand.u32 1, %s14750_s20   ;;  %s11301_s23 = sshll.u32 %s14754_s21, 13 }
  0x34   : > { %p14938_p12 = por %p18141_p10, %p46_p2  ;;  %s10444_s27 = sshll.u32 %s448_s29, 9 }
  0x35   : > { %s14947_s14 = scalar_lea.hbm %s17926_s0, %s11301_s23  ;;  %s452_s28 = scalar_lea.vmem [#allocation3], %s10444_s27 }
  0x36   : > { %s460_s16 = sshll.u32 %s452_s28, 4  ;;  %p14949_p11 = pnand %p14513_p6, %p48_p8  ;;  %s14953_s16 = int_to_ptr.vmem [resolvable:$true] %s460_s16 }
  0x37   : > { %s14955_s18 = scalar_lea.sflag [#allocation4], %s448_s29  ;;  %s14654_s15 = scalar_lea.hbm %s14947_s14, 8192 }
  0x38   : > { %p14655_p13 = scmp.ne.s32.totalorder %s14947_s14, %s14654_s15  ;;  %p14656_p0 = pneg %p14949_p11 }
  0x39   : > { %s14659_s23 = scalar_lea.hbm %s17926_s0, 16384  ;;  %p14660_p7 = scmp.lt.u32.totalorder %s14947_s14, %s17926_s0 }
  0x3a   : > { %p14657_p3 = pnand %p14656_p0, %p14655_p13  ;;  %p14661_p9 = scmp.lt.u32.totalorder %s14659_s23, %s14654_s15 }
  0x3b   : > { %p14663_p2 = scmp.lt.u32.totalorder %s14654_s15, %s14947_s14 }
  0x3c   : > { %p14658_p5 = pneg %p14657_p3  ;;  %p14662_p1 = por %p14661_p9, %p14660_p7 }
  0x3e   : > { %p14664_p4 = por %p14663_p2, %p14662_p1 }
  0x40   : > { %p14665_p6 = pnand %p14664_p4, %p14658_p5 }
  0x42   : > { %14668 = shalt.err (!%p14665_p6)
}
  0x43   : > { %s14669_s29 = scalar_lea.vmem %s14953_s16, 8192  ;;  %s14759_s9 = smov [#allocation3]  }
  0x44   : > { %p14670_p8 = scmp.ne.s32.totalorder %s14953_s16, %s14669_s29  ;;  %s14674_s10 = sshll.u32 %s14759_s9, 4  ;;  %s14675_s10 = int_to_ptr.vmem [resolvable:$false] %s14674_s10 }
  0x45   : > { %s14676_s27 = scalar_lea.vmem %s14675_s10, 16384  ;;  %p14677_p3 = scmp.lt.s32.totalorder %s14953_s16, %s14675_s10 }
  0x46   : > { %p14672_p10 = pnand %p14670_p8, %p14656_p0  ;;  %p14678_p7 = scmp.lt.s32.totalorder %s14676_s27, %s14669_s29 }
  0x48   : > { %p14673_p13 = pneg %p14672_p10  ;;  %p14679_p9 = por %p14678_p7, %p14677_p3 }
  0x4a   : > { %p14680_p1 = pnand %p14679_p9, %p14673_p13 }
  0x4c   : > { %14683 = shalt.err (!%p14680_p1)
}
  0x4d   : > { %s18144_s15 = smov 128   ;;  %p18145_p0 = scmp.ne.s32.totalorder %s18138_s26, 0 }
  0x4e   : > { %14507 = dma.hbm_to_vmem [thread:$0]  (!%p14949_p11), %s14947_s14, 8192, %s14953_s16, %s14955_s18, %s18144_s15, %s18144_s15, %s14758_s12  }
  0x4f   : > { %472 = sbr.rel (%p18145_p0) target bundleno = 2514 (0x9d2), region = 80 }
  0x56   : > { %s14989_s23 = sand.u32 1, %s14746_s19   ;;  %p18146_p5 = scmp.ne.s32.totalorder %s18135_s24, 0 }
  0x57   : > { %s10449_s28 = sshll.u32 %s14989_s23, 9  ;;  %s475_s29 = scalar_lea.sflag [#allocation4], %s14989_s23 }
  0x58   : > { %s14995_s17 = scalar_lea.vmem [#allocation3], %s10449_s28 }
  0x59   : > { %14729 = dma.done.wait (%p18146_p5), %s475_s29, 8192  }
  0x5a   : > { %14731 = vsyncadd (%p18146_p5), %s475_s29, 4294959104  ;;  %p18147_p11 = scmp.eq.s32.totalorder %s14865_s22, 0 }
  0x5c   : > { %14733 = dma.done.wait (%p18147_p11), [#allocation7], 4608   ;;  %p18148_p2 = pmov %p18147_p11 }
  0x5d   : > { %vm597_vm0 = vcmask 261120   ;;  %vm600_vm1 = vcmask 254976   ;;  %v14760_v0 = vmov 0.0   ;;  %v537_v1 = vld [vmem:[%s17929_s3] sm:$0xff]  ;;  %v538_v2 = vld [vmem:[%s17929_s3 + $0x8] sm:$0xff]  ;;  %v539_v3 = vld [vmem:[%s17929_s3 + $0x10] sm:$0xff] }
  0x5e   : > { %14735 = vsyncadd (%p18148_p2), [#allocation7], 4294962688  ;;  %603 = vst.msk [vmem:[#allocation2 + $0x20] sm:$0xff] %vm597_vm0, %v14760_v0  ;;  %v15068_v4 = vpack.c.bf16 %v538_v2, %v537_v1  ;;  %v540_v5 = vld [vmem:[%s17929_s3 + $0x18] sm:$0xff]  ;;  %v541_v7 = vld [vmem:[%s17929_s3 + $0x20] sm:$0xff]  ;;  %vm799_vm2 = vcmask 523264  }
  0x5f   : > { %604 = vst.msk [vmem:[#allocation2 + $0x28] sm:$0x3] %vm600_vm1, %v14760_v0  ;;  %601 = vst.msk [vmem:[#allocation2 + $0x10] sm:$0x3] %vm600_vm1, %v14760_v0  ;;  %v15073_v6 = vpack.c.bf16 %v540_v5, %v539_v3  ;;  %v542_v8 = vld [vmem:[%s17929_s3 + $0x28] sm:$0xff]  ;;  %v653_v11 = vld [vmem:[%s14995_s17] sm:$0xff] }
  0x60   : > { %598 = vst.msk [vmem:[#allocation2] sm:$0xff] %vm597_vm0, %v14760_v0  ;;  %599 = vst.msk [vmem:[#allocation2 + $0x8] sm:$0xff] %vm597_vm0, %v14760_v0  ;;  %v15084_v9 = vld [vmem:[%s17927_s1] ss:$0 sm:$0xff]  ;;  %13561 = vmatprep.subr.bf16.mxu1 %v15068_v4  ;;  %v654_v13 = vld [vmem:[%s14995_s17 + $0x8] sm:$0xff]  ;;  %v15097_v14 = vpack.c.bf16 %v542_v8, %v541_v7  ;;  %s18247_s15 = sld [smem:[#allocation66_spill]] }
  0x61   : > { %602 = vst.msk [vmem:[#allocation2 + $0x18] sm:$0xff] %vm597_vm0, %v14760_v0  ;;  %605 = vst.msk [vmem:[#allocation2 + $0x30] sm:$0xff] %vm597_vm0, %v14760_v0  ;;  %v15090_v10 = vld [vmem:[%s17928_s2] ss:$0 sm:$0xff]  ;;  %13563 = vmatpush3.bf16.msra.mxu1 %v15068_v4  ;;  %v691_v12 = vmul.f32 %v15084_v9, %v653_v11  ;;  %v543_v16 = vld [vmem:[%s17929_s3 + $0x30] sm:$0xff]  ;;  %v692_v19 = vmul.f32 %v15084_v9, %v654_v13  ;;  %s18248_s26 = sld [smem:[#allocation67_spill]] }
  0x62   : > { %606 = vst.msk [vmem:[#allocation2 + $0x38] sm:$0xff] %vm597_vm0, %v14760_v0  ;;  %608 = vst.msk [vmem:[#allocation2 + $0x48] sm:$0xff] %vm597_vm0, %v14760_v0  ;;  %13565 = vmatprep.subr.bf16.mxu1 %v15073_v6  ;;  %v655_v15 = vld [vmem:[%s14995_s17 + $0x10] sm:$0xff]  ;;  %v544_v17 = vld [vmem:[%s17929_s3 + $0x38] sm:$0xff]  ;;  %s18261_s12 = sld [smem:[#allocation68_spill]]  ;;  %s18262_s18 = sld [smem:[#allocation69_spill]] }
  0x63   : > { %607 = vst.msk [vmem:[#allocation2 + $0x40] sm:$0x3] %vm600_vm1, %v14760_v0  ;;  %610 = vst.msk [vmem:[#allocation2 + $0x58] sm:$0x3] %vm600_vm1, %v14760_v0  ;;  %v729_v18 = vadd.f32 %v15090_v10, %v691_v12  ;;  %v693_v21 = vmul.f32 %v15084_v9, %v655_v15  ;;  %v656_v22 = vld [vmem:[%s14995_s17 + $0x18] sm:$0xff]  ;;  %v15112_v23 = vpack.c.bf16 %v544_v17, %v543_v16  ;;  %v657_v24 = vld [vmem:[%s14995_s17 + $0x20] sm:$0xff] }
  0x64   : > { %609 = vst.msk [vmem:[#allocation2 + $0x50] sm:$0xff] %vm597_vm0, %v14760_v0  ;;  %611 = vst.msk [vmem:[#allocation2 + $0x60] sm:$0xff] %vm597_vm0, %v14760_v0  ;;  %v730_v25 = vadd.f32 %v15090_v10, %v692_v19  ;;  %v694_v26 = vmul.f32 %v15084_v9, %v656_v22  ;;  %v695_v28 = vmul.f32 %v15084_v9, %v657_v24  ;;  %v658_v29 = vld [vmem:[%s14995_s17 + $0x28] sm:$0xff]  ;;  %v659_v30 = vld [vmem:[%s14995_s17 + $0x30] sm:$0xff]  ;;  %s16619_s9 = scalar_lea.vmem [#allocation8], %s10449_s28  ;;  %s18358_s14 = sld [smem:[#allocation70_spill]] }
  0x65   : > { %612 = vst.msk [vmem:[#allocation2 + $0x68] sm:$0xff] %vm597_vm0, %v14760_v0  ;;  %614 = vst.msk [vmem:[#allocation2 + $0x78] sm:$0xff] %vm597_vm0, %v14760_v0  ;;  %13567 = vmatpush3.bf16.msra.mxu1 %v15073_v6  ;;  %v761_v20 = vmax.f32 %v729_v18, 0.0  ;;  %v731_v27 = vadd.f32 %v15090_v10, %v693_v21  ;;  %v696_v33 = vmul.f32 %v15084_v9, %v658_v29  ;;  %v660_v37 = vld [vmem:[%s14995_s17 + $0x38] sm:$0xff]  ;;  %v661_v38 = vld [vmem:[%s14995_s17 + $0x40] sm:$0xff]  ;;  %s10357_s29 = sshll.u32 %s16619_s9, 4  ;;  %s17879_s29 = int_to_ptr.vmem [resolvable:$true] %s10357_s29 }
  0x66   : > { %613 = vst.msk [vmem:[#allocation2 + $0x70] sm:$0x3] %vm600_vm1, %v14760_v0  ;;  %616 = vst.msk [vmem:[#allocation2 + $0x88] sm:$0x3] %vm600_vm1, %v14760_v0  ;;  %13569 = vmatprep.subr.bf16.mxu1 %v15097_v14  ;;  %v762_v31 = vmax.f32 %v730_v25, 0.0  ;;  %v732_v32 = vadd.f32 %v15090_v10, %v694_v26  ;;  %v733_v35 = vadd.f32 %v15090_v10, %v695_v28  ;;  %v662_v45 = vld [vmem:[%s14995_s17 + $0x48] sm:$0xff] }
  0x67   : > { %615 = vst.msk [vmem:[#allocation2 + $0x80] sm:$0xff] %vm597_vm0, %v14760_v0  ;;  %617 = vst.msk [vmem:[#allocation2 + $0x90] sm:$0xff] %vm597_vm0, %v14760_v0  ;;  %12200 = vmatprep.mubr.msk.f32.mxu1 %vm799_vm2, %v761_v20  ;;  %v763_v34 = vmax.f32 %v731_v27, 0.0  ;;  %v697_v36 = vmul.f32 %v15084_v9, %v659_v30  ;;  %v734_v40 = vadd.f32 %v15090_v10, %v696_v33  ;;  %v663_v46 = vld [vmem:[%s14995_s17 + $0x50] sm:$0xff]  ;;  %v550_v47 = vld [vmem:[#allocation6 + $0x20] sm:$0xff]  ;;  %s14761_s28 = smov [#allocation8]  }
  0x68   : > { %618 = vst.msk [vmem:[#allocation2 + $0x98] sm:$0xff] %vm597_vm0, %v14760_v0  ;;  %620 = vst.msk [vmem:[#allocation2 + $0xa8] sm:$0xff] %vm597_vm0, %v14760_v0  ;;  %v764_v39 = vmax.f32 %v732_v32, 0.0  ;;  %v698_v41 = vmul.f32 %v15084_v9, %v660_v37  ;;  %v765_v42 = vmax.f32 %v733_v35, 0.0  ;;  %v699_v44 = vmul.f32 %v15084_v9, %v661_v38  ;;  %v551_v48 = vld [vmem:[#allocation6 + $0x28] sm:$0xff]  ;;  %v552_v49 = vld [vmem:[#allocation6 + $0x30] sm:$0xff] }
  0x69   : > { %619 = vst.msk [vmem:[#allocation2 + $0xa0] sm:$0x3] %vm600_vm1, %v14760_v0  ;;  %622 = vst.msk [vmem:[#allocation2 + $0xb8] sm:$0x3] %vm600_vm1, %v14760_v0  ;;  %13571 = vmatpush3.bf16.msra.mxu1 %v15097_v14  ;;  %v735_v43 = vadd.f32 %v15090_v10, %v697_v36  ;;  %v553_v50 = vld [vmem:[#allocation6 + $0x38] sm:$0xff]  ;;  %v766_v51 = vmax.f32 %v734_v40, 0.0  ;;  %v700_v53 = vmul.f32 %v15084_v9, %v662_v45 }
  0x6a   : > { %621 = vst.msk [vmem:[#allocation2 + $0xb0] sm:$0xff] %vm597_vm0, %v14760_v0  ;;  %623 = vst.msk [vmem:[#allocation2 + $0xc0] sm:$0xff] %vm597_vm0, %v14760_v0  ;;  %13573 = vmatprep.subr.bf16.mxu1 %v15112_v23  ;;  %v736_v52 = vadd.f32 %v15090_v10, %v698_v41  ;;  %v737_v55 = vadd.f32 %v15090_v10, %v699_v44  ;;  %v701_v56 = vmul.f32 %v15084_v9, %v663_v46  ;;  %v664_v57 = vld [vmem:[%s14995_s17 + $0x58] sm:$0xff]  ;;  %v665_v59 = vld [vmem:[%s14995_s17 + $0x60] sm:$0xff]  ;;  %s14688_s10 = sshll.u32 %s14761_s28, 4  ;;  %s14689_s10 = int_to_ptr.vmem [resolvable:$false] %s14688_s10 }
  0x6b   : > { %624 = vst.msk [vmem:[#allocation2 + $0xc8] sm:$0xff] %vm597_vm0, %v14760_v0  ;;  %626 = vst.msk [vmem:[#allocation2 + $0xd8] sm:$0xff] %vm597_vm0, %v14760_v0  ;;  %v767_v54 = vmax.f32 %v735_v43, 0.0  ;;  %v15146_v58 = vpack.c.bf16 %v551_v48, %v550_v47  ;;  %v15149_v60 = vpack.c.bf16 %v553_v50, %v552_v49  ;;  %v738_v62 = vadd.f32 %v15090_v10, %v700_v53  ;;  %v666_v3 = vld [vmem:[%s14995_s17 + $0x68] sm:$0xff]  ;;  %v667_v5 = vld [vmem:[%s14995_s17 + $0x70] sm:$0xff]  ;;  %s14690_s27 = scalar_lea.vmem %s14689_s10, 16384  ;;  %p14691_p10 = scmp.lt.s32.totalorder %s17879_s29, %s14689_s10 }
  0x6c   : > { %625 = vst.msk [vmem:[#allocation2 + $0xd0] sm:$0x3] %vm600_vm1, %v14760_v0  ;;  %628 = vst.msk [vmem:[#allocation2 + $0xe8] sm:$0x3] %vm600_vm1, %v14760_v0  ;;  %v768_v61 = vmax.f32 %v736_v52, 0.0  ;;  %v702_v63 = vmul.f32 %v15084_v9, %v664_v57  ;;  %v739_v1 = vadd.f32 %v15090_v10, %v701_v56  ;;  %v703_v2 = vmul.f32 %v15084_v9, %v665_v59  ;;  %v668_v16 = vld [vmem:[%s14995_s17 + $0x78] sm:$0xff] }
  0x6d   : > { %627 = vst.msk [vmem:[#allocation2 + $0xe0] sm:$0xff] %vm597_vm0, %v14760_v0  ;;  %629 = vst.msk [vmem:[#allocation2 + $0xf0] sm:$0xff] %vm597_vm0, %v14760_v0  ;;  %13575 = vmatpush3.bf16.msra.mxu1 %v15112_v23  ;;  %v770_v7 = vmax.f32 %v738_v62, 0.0  ;;  %v704_v11 = vmul.f32 %v15084_v9, %v666_v3  ;;  %v705_v15 = vmul.f32 %v15084_v9, %v667_v5  ;;  %v669_v17 = vld [vmem:[%s14995_s17 + $0x80] sm:$0xff]  ;;  %v670_v25 = vld [vmem:[%s14995_s17 + $0x88] sm:$0xff] }
  0x6e   : > { %630 = vst.msk [vmem:[#allocation2 + $0xf8] sm:$0xff] %vm597_vm0, %v14760_v0  ;;  %632 = vst.msk [vmem:[#allocation2 + $0x108] sm:$0xff] %vm597_vm0, %v14760_v0  ;;  %13577 = vmatprep.subr.bf16.mxu1 %v15146_v58  ;;  %v740_v8 = vadd.f32 %v15090_v10, %v702_v63  ;;  %v771_v12 = vmax.f32 %v739_v1, 0.0  ;;  %v741_v13 = vadd.f32 %v15090_v10, %v703_v2  ;;  %v671_v26 = vld [vmem:[%s14995_s17 + $0x90] sm:$0xff]  ;;  %v672_v33 = vld [vmem:[%s14995_s17 + $0x98] sm:$0xff] }
  0x6f   : > { %631 = vst.msk [vmem:[#allocation2 + $0x100] sm:$0x3] %vm600_vm1, %v14760_v0  ;;  %634 = vst.msk [vmem:[#allocation2 + $0x118] sm:$0x3] %vm600_vm1, %v14760_v0  ;;  %v742_v19 = vadd.f32 %v15090_v10, %v704_v11  ;;  %v706_v20 = vmul.f32 %v15084_v9, %v668_v16  ;;  %v743_v22 = vadd.f32 %v15090_v10, %v705_v15  ;;  %v674_v41 = vld [vmem:[%s14995_s17 + $0xa8] sm:$0xff]  ;;  %v676_v49 = vld [vmem:[%s14995_s17 + $0xb8] sm:$0xff] }
  0x70   : > { %633 = vst.msk [vmem:[#allocation2 + $0x110] sm:$0xff] %vm597_vm0, %v14760_v0  ;;  %635 = vst.msk [vmem:[#allocation2 + $0x120] sm:$0xff] %vm597_vm0, %v14760_v0  ;;  %12201 = vmatmul.mubr.msk.f32.vlgmr.msra.gmra.mrb[0].mxu1 %vm799_vm2, %v762_v31  ;;  %v772_v18 = vmax.f32 %v740_v8, 0.0  ;;  %v773_v21 = vmax.f32 %v741_v13, 0.0  ;;  %v707_v24 = vmul.f32 %v15084_v9, %v669_v17  ;;  %v708_v29 = vmul.f32 %v15084_v9, %v670_v25  ;;  %v677_v50 = vld [vmem:[%s14995_s17 + $0xc0] sm:$0xff]  ;;  %v678_v57 = vld [vmem:[%s14995_s17 + $0xc8] sm:$0xff] }
  0x71   : > { %636 = vst.msk [vmem:[#allocation2 + $0x128] sm:$0xff] %vm597_vm0, %v14760_v0  ;;  %638 = vst.msk [vmem:[#allocation2 + $0x138] sm:$0xff] %vm597_vm0, %v14760_v0  ;;  %12203 = vmatprep.mubr.msk.f32.mxu1 %vm799_vm2, %v763_v34  ;;  %13579 = vmatpush3.bf16.msra.mxu1 %v15146_v58  ;;  %v774_v27 = vmax.f32 %v742_v19, 0.0  ;;  %v744_v28 = vadd.f32 %v15090_v10, %v706_v20  ;;  %v775_v30 = vmax.f32 %v743_v22, 0.0  ;;  %v673_v34 = vld [vmem:[%s14995_s17 + $0xa0] sm:$0xff]  ;;  %v679_v59 = vld [vmem:[%s14995_s17 + $0xd0] sm:$0xff] }
  0x72   : > { %637 = vst.msk [vmem:[#allocation2 + $0x130] sm:$0x3] %vm600_vm1, %v14760_v0  ;;  %640 = vst.msk [vmem:[#allocation2 + $0x148] sm:$0x3] %vm600_vm1, %v14760_v0  ;;  %13581 = vmatprep.subr.bf16.mxu1 %v15149_v60  ;;  %v745_v31 = vadd.f32 %v15090_v10, %v707_v24  ;;  %v709_v32 = vmul.f32 %v15084_v9, %v671_v26  ;;  %v746_v36 = vadd.f32 %v15090_v10, %v708_v29  ;;  %v680_v3 = vld [vmem:[%s14995_s17 + $0xd8] sm:$0xff]  ;;  %v681_v5 = vld [vmem:[%s14995_s17 + $0xe0] sm:$0xff] }
  0x73   : > { %639 = vst.msk [vmem:[#allocation2 + $0x140] sm:$0xff] %vm597_vm0, %v14760_v0  ;;  %641 = vst.msk [vmem:[#allocation2 + $0x150] sm:$0xff] %vm597_vm0, %v14760_v0  ;;  %v776_v35 = vmax.f32 %v744_v28, 0.0  ;;  %v710_v37 = vmul.f32 %v15084_v9, %v672_v33  ;;  %v711_v40 = vmul.f32 %v15084_v9, %v673_v34  ;;  %v712_v45 = vmul.f32 %v15084_v9, %v674_v41  ;;  %v682_v16 = vld [vmem:[%s14995_s17 + $0xe8] sm:$0xff]  ;;  %v684_v29 = vld [vmem:[%s14995_s17 + $0xf8] sm:$0xff] }
  0x74   : > { %642 = vst.msk [vmem:[#allocation2 + $0x158] sm:$0xff] %vm597_vm0, %v14760_v0  ;;  %644 = vst.msk [vmem:[#allocation2 + $0x168] sm:$0xff] %vm597_vm0, %v14760_v0  ;;  %12204 = vmatmul.mubr.msk.f32.gmra.mrb[2].mxu1 %vm799_vm2, %v764_v39  ;;  %v777_v38 = vmax.f32 %v745_v31, 0.0  ;;  %v747_v39 = vadd.f32 %v15090_v10, %v709_v32  ;;  %v778_v43 = vmax.f32 %v746_v36, 0.0  ;;  %v714_v53 = vmul.f32 %v15084_v9, %v676_v49  ;;  %v1295_v36 = vld [vmem:[#allocation2 + $0x9] sm:$0xff] }
  0x75   : > { %643 = vst.msk [vmem:[#allocation2 + $0x160] sm:$0x3] %vm600_vm1, %v14760_v0  ;;  %646 = vst.msk [vmem:[#allocation2 + $0x178] sm:$0x3] %vm600_vm1, %v14760_v0  ;;  %12206 = vmatprep.mubr.msk.f32.mxu1 %vm799_vm2, %v765_v42  ;;  %13583 = vmatpush3.bf16.msra.mxu1 %v15149_v60  ;;  %v675_v42 = vld [vmem:[%s14995_s17 + $0xb0] sm:$0xff]  ;;  %v748_v44 = vadd.f32 %v15090_v10, %v710_v37  ;;  %v749_v47 = vadd.f32 %v15090_v10, %v711_v40  ;;  %v546_v37 = vld [vmem:[#allocation6] sm:$0xff] }
  0x76   : > { %645 = vst.msk [vmem:[#allocation2 + $0x170] sm:$0xff] %vm597_vm0, %v14760_v0  ;;  %647 = vst.msk [vmem:[#allocation2 + $0x180] sm:$0xff] %vm597_vm0, %v14760_v0  ;;  %v779_v46 = vmax.f32 %v747_v39, 0.0  ;;  %v713_v48 = vmul.f32 %v15084_v9, %v675_v42  ;;  %v750_v52 = vadd.f32 %v15090_v10, %v712_v45  ;;  %v715_v56 = vmul.f32 %v15084_v9, %v677_v50  ;;  %v554_v41 = vld [vmem:[#allocation6 + $0x40] sm:$0xff]  ;;  %v555_v42 = vld [vmem:[#allocation6 + $0x48] sm:$0xff] }
  0x77   : > { %648 = vst.msk [vmem:[#allocation2 + $0x188] sm:$0xff] %vm597_vm0, %v14760_v0  ;;  %650 = vst.msk [vmem:[#allocation2 + $0x198] sm:$0xff] %vm597_vm0, %v14760_v0  ;;  %v752_v62 = vadd.f32 %v15090_v10, %v714_v53  ;;  %v716_v63 = vmul.f32 %v15084_v9, %v678_v57  ;;  %v717_v2 = vmul.f32 %v15084_v9, %v679_v59  ;;  %v15266_v45 = vld [vmem:[%s17931_s5] ss:$0 sm:$0xff] }
  0x78   : > { %649 = vst.msk [vmem:[#allocation2 + $0x190] sm:$0x3] %vm600_vm1, %v14760_v0  ;;  %652 = vst.msk [vmem:[#allocation2 + $0x1a8] sm:$0x3] %vm600_vm1, %v14760_v0  ;;  %12207 = vmatmul.mubr.msk.f32.gmra.mrb[4].mxu1 %vm799_vm2, %v766_v51  ;;  %v780_v51 = vmax.f32 %v748_v44, 0.0  ;;  %v753_v1 = vadd.f32 %v15090_v10, %v715_v56  ;;  %v718_v11 = vmul.f32 %v15084_v9, %v680_v3 }
  0x79   : > { %651 = vst.msk [vmem:[#allocation2 + $0x1a0] sm:$0xff] %vm597_vm0, %v14760_v0  ;;  %18149 = vst [vmem:[#allocation15_spill] sm:$0xff] %v15068_v4  ;;  %12209 = vmatprep.mubr.msk.f32.mxu1 %vm799_vm2, %v767_v54  ;;  %v769_v0 = vmax.f32 %v737_v55, 0.0  ;;  %v781_v54 = vmax.f32 %v749_v47, 0.0  ;;  %v751_v55 = vadd.f32 %v15090_v10, %v713_v48  ;;  %v754_v8 = vadd.f32 %v15090_v10, %v716_v63  ;;  %v15261_v44 = vld [vmem:[%s17930_s4] ss:$0 sm:$0xff] }
  0x7a   : > { %18150 = vst [vmem:[#allocation16_spill] sm:$0xff] %v15073_v6  ;;  %18151 = vst [vmem:[#allocation17_spill] sm:$0xff] %v15097_v14  ;;  %v755_v13 = vadd.f32 %v15090_v10, %v717_v2  ;;  %v719_v15 = vmul.f32 %v15084_v9, %v681_v5  ;;  %v720_v19 = vmul.f32 %v15084_v9, %v682_v16  ;;  %v15272_v49 = vld [vmem:[%s17932_s6] ss:$0 sm:$0xff]  ;;  %v561_v4 = vld [vmem:[#allocation6 + $0x78] sm:$0xff] }
  0x7b   : > { %18152 = vst [vmem:[#allocation18_spill] sm:$0xff] %v15112_v23  ;;  %18153 = vst [vmem:[#allocation19_spill] sm:$0xff] %v15146_v58  ;;  %v786_v17 = vmax.f32 %v754_v8, 0.0  ;;  %v1968_v23 = vld [vmem:[#allocation2 + $0x2] sm:$0xff] }
  0x7c   : > { %18154 = vst [vmem:[#allocation20_spill] sm:$0xff] %v15149_v60  ;;  %12210 = vmatmul.mubr.msk.f32.gmra.mrb[6].mxu1 %vm799_vm2, %v768_v61  ;;  %v782_v61 = vmax.f32 %v750_v52, 0.0  ;;  %v787_v20 = vmax.f32 %v755_v13, 0.0  ;;  %v758_v24 = vadd.f32 %v15090_v10, %v720_v19  ;;  %v560_v6 = vld [vmem:[#allocation6 + $0x70] sm:$0xff] }
  0x7d   : > { %12212 = vmatprep.mubr.msk.f32.mxu1 %vm799_vm2, %v769_v0  ;;  %v783_v0 = vmax.f32 %v751_v55, 0.0 }
  0x7e   : > { %v790_v26 = vmax.f32 %v758_v24, 0.0 }
  0x80   : > { %12213 = vmatmul.mubr.msk.f32.gmra.mrb[8].mxu1 %vm799_vm2, %v770_v7  ;;  %v784_v7 = vmax.f32 %v752_v62, 0.0 }
  0x81   : > { %12215 = vmatprep.mubr.msk.f32.mxu1 %vm799_vm2, %v771_v12  ;;  %v785_v12 = vmax.f32 %v753_v1, 0.0 }
  0x84   : > { %12216 = vmatmul.mubr.msk.f32.gmra.mrb[10].mxu1 %vm799_vm2, %v772_v18  ;;  %v756_v18 = vadd.f32 %v15090_v10, %v718_v11 }
  0x85   : > { %12218 = vmatprep.mubr.msk.f32.mxu1 %vm799_vm2, %v773_v21  ;;  %v757_v21 = vadd.f32 %v15090_v10, %v719_v15 }
  0x86   : > { %v788_v22 = vmax.f32 %v756_v18, 0.0 }
  0x87   : > { %v789_v25 = vmax.f32 %v757_v21, 0.0 }
  0x88   : > { %12219 = vmatmul.mubr.msk.f32.gmra.mrb[12].mxu1 %vm799_vm2, %v774_v27  ;;  %v683_v27 = vld [vmem:[%s14995_s17 + $0xf0] sm:$0xff] }
  0x89   : > { %12221 = vmatprep.mubr.msk.f32.mxu1 %vm799_vm2, %v775_v30  ;;  %v721_v28 = vmul.f32 %v15084_v9, %v683_v27  ;;  %v722_v30 = vmul.f32 %v15084_v9, %v684_v29  ;;  %v548_v9 = vld [vmem:[#allocation6 + $0x10] sm:$0xff] }
  0x8b   : > { %v759_v31 = vadd.f32 %v15090_v10, %v721_v28  ;;  %v760_v32 = vadd.f32 %v15090_v10, %v722_v30  ;;  %v549_v10 = vld [vmem:[#allocation6 + $0x18] sm:$0xff] }
  0x8c   : > { %12222 = vmatmul.mubr.msk.f32.gmra.mrb[14].mxu1 %vm799_vm2, %v776_v35  ;;  %v1294_v35 = vld [vmem:[#allocation2 + $0x1] sm:$0xff]  ;;  %v15251_v40 = vpack.c.bf16 %v549_v10, %v548_v9 }
  0x8d   : > { %12224 = vmatprep.mubr.msk.f32.mxu1 %vm799_vm2, %v777_v38  ;;  %v791_v33 = vmax.f32 %v759_v31, 0.0  ;;  %v792_v34 = vmax.f32 %v760_v32, 0.0  ;;  %v547_v38 = vld [vmem:[#allocation6 + $0x8] sm:$0xff] }
  0x8e   : > { %v15247_v39 = vpack.c.bf16 %v547_v38, %v546_v37  ;;  %18156 = vst [vmem:[#allocation22_spill] sm:$0xff] %v15251_v40 }
  0x90   : > { %12225 = vmatmul.mubr.msk.f32.gmra.mrb[16].mxu1 %vm799_vm2, %v778_v43  ;;  %18155 = vst [vmem:[#allocation21_spill] sm:$0xff] %v15247_v39  ;;  %13585 = vmatprep.subr.bf16.mxu1 %v15247_v39  ;;  %v15255_v43 = vpack.c.bf16 %v555_v42, %v554_v41 }
  0x91   : > { %12227 = vmatprep.mubr.msk.f32.mxu1 %vm799_vm2, %v779_v46 }
  0x92   : > { %18157 = vst [vmem:[#allocation23_spill] sm:$0xff] %v15255_v43 }
  0x94   : > { %12228 = vmatmul.mubr.msk.f32.gmra.mrb[18].mxu1 %vm799_vm2, %v780_v51 }
  0x95   : > { %12230 = vmatprep.mubr.msk.f32.mxu1 %vm799_vm2, %v781_v54 }
  0x98   : > { %12231 = vmatmul.mubr.msk.f32.gmra.mrb[20].mxu1 %vm799_vm2, %v782_v61 }
  0x99   : > { %12233 = vmatprep.mubr.msk.f32.mxu1 %vm799_vm2, %v783_v0 }
  0x9c   : > { %12234 = vmatmul.mubr.msk.f32.gmra.mrb[22].mxu1 %vm799_vm2, %v784_v7 }
  0x9d   : > { %12236 = vmatprep.mubr.msk.f32.mxu1 %vm799_vm2, %v785_v12 }
  0xa0   : > { %12237 = vmatmul.mubr.msk.f32.gmra.mrb[24].mxu1 %vm799_vm2, %v786_v17 }
  0xa1   : > { %12239 = vmatprep.mubr.msk.f32.mxu1 %vm799_vm2, %v787_v20 }
  0xa4   : > { %12240 = vmatmul.mubr.msk.f32.gmra.mrb[26].mxu1 %vm799_vm2, %v788_v22 }
  0xa5   : > { %12242 = vmatprep.mubr.msk.f32.mxu1 %vm799_vm2, %v789_v25 }
  0xa8   : > { %12243 = vmatmul.mubr.msk.f32.gmra.mrb[28].mxu1 %vm799_vm2, %v790_v26 }
  0xa9   : > { %12245 = vmatprep.mubr.msk.f32.mxu1 %vm799_vm2, %v791_v33 }
  0xac   : > { %12246 = vmatmul.mubr.msk.f32.gmra.mrb[30].mxu1 %vm799_vm2, %v792_v34 }
  0xad   : > { %12256 = vmatprep.mubr.msk.f32.mxu1 %vm597_vm0, %v1294_v35 }
  0xb0   : > { %12257 = vmatmul.mubr.msk.f32.vlgmr.msra.gmra.mrb[32].mxu1 %vm597_vm0, %v1295_v36 }
  0xb1   : > { %13587 = vmatpush3.bf16.msra.mxu1 %v15247_v39 }
  0xb2   : > { %13589 = vmatprep.subr.bf16.mxu1 %v15251_v40 }
  0xb5   : > { %13591 = vmatpush3.bf16.msra.mxu1 %v15251_v40 }
  0xb6   : > { %13593 = vmatprep.subr.bf16.mxu1 %v15255_v43 }
 0x143   : > { %v12202_v46 = vpop.f32.mrb[0].mxu1 }
 0x144   : > { %v968_v47 = vadd.f32 %v12202_v46, %v15261_v44  ;;  %v962_v48 = vpop.f32.mrb[1].mxu1 }
 0x145   : > { %v963_v50 = vadd.f32 %v15261_v44, %v962_v48 }
 0x146   : > { %v1128_v51 = vmul.f32 %v15266_v45, %v968_v47 }
 0x147   : > { %v1127_v52 = vmul.f32 %v15266_v45, %v963_v50  ;;  %v12205_v53 = vpop.f32.mrb[2].mxu1 }
 0x148   : > { %v1166_v54 = vadd.f32 %v15272_v49, %v1128_v51  ;;  %v978_v55 = vadd.f32 %v12205_v53, %v15261_v44  ;;  %v972_v56 = vpop.f32.mrb[3].mxu1 }
 0x149   : > { %v1165_v57 = vadd.f32 %v15272_v49, %v1127_v52  ;;  %v973_v59 = vadd.f32 %v15261_v44, %v972_v56 }
 0x14a   : > { %v1198_v61 = vmax.f32 %v1166_v54, 0.0  ;;  %v1130_v62 = vmul.f32 %v15266_v45, %v978_v55 }
 0x14b   : > { %v1197_v63 = vmax.f32 %v1165_v57, 0.0  ;;  %v1129_v0 = vmul.f32 %v15266_v45, %v973_v59  ;;  %v12208_v1 = vpop.f32.mrb[4].mxu1 }
 0x14c   : > { %1231 = vst.msk [vmem:[#allocation2 + $0x21] sm:$0xff] %vm597_vm0, %v1198_v61  ;;  %v1168_v2 = vadd.f32 %v15272_v49, %v1130_v62  ;;  %v988_v3 = vadd.f32 %v12208_v1, %v15261_v44  ;;  %v982_v5 = vpop.f32.mrb[5].mxu1 }
 0x14d   : > { %1230 = vst.msk [vmem:[#allocation2 + $0x19] sm:$0xff] %vm597_vm0, %v1197_v63  ;;  %v1167_v7 = vadd.f32 %v15272_v49, %v1129_v0  ;;  %v983_v8 = vadd.f32 %v15261_v44, %v982_v5 }
 0x14e   : > { %v1200_v11 = vmax.f32 %v1168_v2, 0.0  ;;  %v1132_v12 = vmul.f32 %v15266_v45, %v988_v3 }
 0x14f   : > { %v1199_v13 = vmax.f32 %v1167_v7, 0.0  ;;  %v1131_v15 = vmul.f32 %v15266_v45, %v983_v8  ;;  %v12211_v16 = vpop.f32.mrb[6].mxu1 }
 0x150   : > { %1233 = vst.msk [vmem:[#allocation2 + $0x39] sm:$0xff] %vm597_vm0, %v1200_v11  ;;  %v1170_v17 = vadd.f32 %v15272_v49, %v1132_v12  ;;  %v998_v18 = vadd.f32 %v12211_v16, %v15261_v44  ;;  %v992_v19 = vpop.f32.mrb[7].mxu1 }
 0x151   : > { %1232 = vst.msk [vmem:[#allocation2 + $0x31] sm:$0xff] %vm597_vm0, %v1199_v13  ;;  %v1169_v20 = vadd.f32 %v15272_v49, %v1131_v15  ;;  %v993_v21 = vadd.f32 %v15261_v44, %v992_v19 }
 0x152   : > { %v1202_v22 = vmax.f32 %v1170_v17, 0.0  ;;  %v1134_v24 = vmul.f32 %v15266_v45, %v998_v18 }
 0x153   : > { %v1201_v25 = vmax.f32 %v1169_v20, 0.0  ;;  %v1133_v26 = vmul.f32 %v15266_v45, %v993_v21  ;;  %v12214_v27 = vpop.f32.mrb[8].mxu1  ;;  %v15309_v34 = vld [vmem:[#allocation2 + $0x21] sm:$0xff] }
 0x154   : > { %1235 = vst.msk [vmem:[#allocation2 + $0x51] sm:$0xff] %vm597_vm0, %v1202_v22  ;;  %v1172_v28 = vadd.f32 %v15272_v49, %v1134_v24  ;;  %v1008_v29 = vadd.f32 %v12214_v27, %v15261_v44  ;;  %v1002_v30 = vpop.f32.mrb[9].mxu1  ;;  %v15302_v31 = vld [vmem:[#allocation2 + $0x19] sm:$0xff] }
 0x155   : > { %1234 = vst.msk [vmem:[#allocation2 + $0x49] sm:$0xff] %vm597_vm0, %v1201_v25  ;;  %v1171_v32 = vadd.f32 %v15272_v49, %v1133_v26  ;;  %v1003_v33 = vadd.f32 %v15261_v44, %v1002_v30  ;;  %12259 = vmatprep.mubr.msk.f32.mxu1 %vm597_vm0, %v15302_v31 }
 0x156   : > { %v1204_v35 = vmax.f32 %v1172_v28, 0.0  ;;  %v1136_v36 = vmul.f32 %v15266_v45, %v1008_v29  ;;  %12260 = vmatmul.mubr.msk.f32.gmra.mrb[34].mxu1 %vm597_vm0, %v15309_v34 }
 0x157   : > { %v1203_v37 = vmax.f32 %v1171_v32, 0.0  ;;  %v1135_v38 = vmul.f32 %v15266_v45, %v1003_v33  ;;  %v12217_v9 = vpop.f32.mrb[10].mxu1  ;;  %v15325_v50 = vld [vmem:[#allocation2 + $0x39] sm:$0xff] }
 0x158   : > { %1237 = vst.msk [vmem:[#allocation2 + $0x69] sm:$0xff] %vm597_vm0, %v1204_v35  ;;  %v1174_v10 = vadd.f32 %v15272_v49, %v1136_v36  ;;  %v1018_v41 = vadd.f32 %v12217_v9, %v15261_v44  ;;  %v1012_v42 = vpop.f32.mrb[11].mxu1  ;;  %v15318_v46 = vld [vmem:[#allocation2 + $0x31] sm:$0xff] }
 0x159   : > { %1236 = vst.msk [vmem:[#allocation2 + $0x61] sm:$0xff] %vm597_vm0, %v1203_v37  ;;  %v1173_v47 = vadd.f32 %v15272_v49, %v1135_v38  ;;  %v1013_v48 = vadd.f32 %v15261_v44, %v1012_v42  ;;  %12262 = vmatprep.mubr.msk.f32.mxu1 %vm597_vm0, %v15318_v46 }
 0x15a   : > { %v1206_v51 = vmax.f32 %v1174_v10, 0.0  ;;  %v1138_v52 = vmul.f32 %v15266_v45, %v1018_v41  ;;  %12263 = vmatmul.mubr.msk.f32.gmra.mrb[36].mxu1 %vm597_vm0, %v15325_v50 }
 0x15b   : > { %v1205_v53 = vmax.f32 %v1173_v47, 0.0  ;;  %v1137_v54 = vmul.f32 %v15266_v45, %v1013_v48  ;;  %v12220_v55 = vpop.f32.mrb[12].mxu1  ;;  %v15341_v0 = vld [vmem:[#allocation2 + $0x51] sm:$0xff] }
 0x15c   : > { %1239 = vst.msk [vmem:[#allocation2 + $0x81] sm:$0xff] %vm597_vm0, %v1206_v51  ;;  %v1176_v56 = vadd.f32 %v15272_v49, %v1138_v52  ;;  %v1028_v57 = vadd.f32 %v12220_v55, %v15261_v44  ;;  %v1022_v59 = vpop.f32.mrb[13].mxu1  ;;  %v15334_v61 = vld [vmem:[#allocation2 + $0x49] sm:$0xff] }
 0x15d   : > { %1238 = vst.msk [vmem:[#allocation2 + $0x79] sm:$0xff] %vm597_vm0, %v1205_v53  ;;  %v1175_v62 = vadd.f32 %v15272_v49, %v1137_v54  ;;  %v1023_v63 = vadd.f32 %v15261_v44, %v1022_v59  ;;  %12265 = vmatprep.mubr.msk.f32.mxu1 %vm597_vm0, %v15334_v61 }
 0x15e   : > { %v1208_v1 = vmax.f32 %v1176_v56, 0.0  ;;  %v1140_v2 = vmul.f32 %v15266_v45, %v1028_v57  ;;  %12266 = vmatmul.mubr.msk.f32.gmra.mrb[38].mxu1 %vm597_vm0, %v15341_v0 }
 0x15f   : > { %v1207_v3 = vmax.f32 %v1175_v62, 0.0  ;;  %v1139_v5 = vmul.f32 %v15266_v45, %v1023_v63  ;;  %v12223_v7 = vpop.f32.mrb[14].mxu1  ;;  %v15357_v17 = vld [vmem:[#allocation2 + $0x69] sm:$0xff] }
 0x160   : > { %1241 = vst.msk [vmem:[#allocation2 + $0x99] sm:$0xff] %vm597_vm0, %v1208_v1  ;;  %v1178_v8 = vadd.f32 %v15272_v49, %v1140_v2  ;;  %v1038_v11 = vadd.f32 %v12223_v7, %v15261_v44  ;;  %v1032_v12 = vpop.f32.mrb[15].mxu1  ;;  %v15350_v13 = vld [vmem:[#allocation2 + $0x61] sm:$0xff] }
 0x161   : > { %1240 = vst.msk [vmem:[#allocation2 + $0x91] sm:$0xff] %vm597_vm0, %v1207_v3  ;;  %v1177_v15 = vadd.f32 %v15272_v49, %v1139_v5  ;;  %v1033_v16 = vadd.f32 %v15261_v44, %v1032_v12  ;;  %12268 = vmatprep.mubr.msk.f32.mxu1 %vm597_vm0, %v15350_v13 }
 0x162   : > { %v1210_v18 = vmax.f32 %v1178_v8, 0.0  ;;  %v1142_v19 = vmul.f32 %v15266_v45, %v1038_v11  ;;  %12269 = vmatmul.mubr.msk.f32.gmra.mrb[40].mxu1 %vm597_vm0, %v15357_v17 }
 0x163   : > { %v1209_v20 = vmax.f32 %v1177_v15, 0.0  ;;  %v1141_v21 = vmul.f32 %v15266_v45, %v1033_v16  ;;  %v12226_v22 = vpop.f32.mrb[16].mxu1  ;;  %v15373_v30 = vld [vmem:[#allocation2 + $0x81] sm:$0xff] }
 0x164   : > { %1243 = vst.msk [vmem:[#allocation2 + $0xb1] sm:$0xff] %vm597_vm0, %v1210_v18  ;;  %v1180_v24 = vadd.f32 %v15272_v49, %v1142_v19  ;;  %v1048_v25 = vadd.f32 %v12226_v22, %v15261_v44  ;;  %v1042_v26 = vpop.f32.mrb[17].mxu1  ;;  %v15366_v27 = vld [vmem:[#allocation2 + $0x79] sm:$0xff] }
 0x165   : > { %1242 = vst.msk [vmem:[#allocation2 + $0xa9] sm:$0xff] %vm597_vm0, %v1209_v20  ;;  %v1179_v28 = vadd.f32 %v15272_v49, %v1141_v21  ;;  %v1043_v29 = vadd.f32 %v15261_v44, %v1042_v26  ;;  %12271 = vmatprep.mubr.msk.f32.mxu1 %vm597_vm0, %v15366_v27 }
 0x166   : > { %v1212_v32 = vmax.f32 %v1180_v24, 0.0  ;;  %v1144_v33 = vmul.f32 %v15266_v45, %v1048_v25  ;;  %12272 = vmatmul.mubr.msk.f32.gmra.mrb[42].mxu1 %vm597_vm0, %v15373_v30 }
 0x167   : > { %v1211_v35 = vmax.f32 %v1179_v28, 0.0  ;;  %v1143_v36 = vmul.f32 %v15266_v45, %v1043_v29  ;;  %v12229_v37 = vpop.f32.mrb[18].mxu1  ;;  %v15389_v48 = vld [vmem:[#allocation2 + $0x99] sm:$0xff] }
 0x168   : > { %1245 = vst.msk [vmem:[#allocation2 + $0xc9] sm:$0xff] %vm597_vm0, %v1212_v32  ;;  %v1182_v38 = vadd.f32 %v15272_v49, %v1144_v33  ;;  %v1058_v9 = vadd.f32 %v12229_v37, %v15261_v44  ;;  %v1052_v10 = vpop.f32.mrb[19].mxu1  ;;  %v15382_v41 = vld [vmem:[#allocation2 + $0x91] sm:$0xff] }
 0x169   : > { %1244 = vst.msk [vmem:[#allocation2 + $0xc1] sm:$0xff] %vm597_vm0, %v1211_v35  ;;  %v1181_v42 = vadd.f32 %v15272_v49, %v1143_v36  ;;  %v1053_v47 = vadd.f32 %v15261_v44, %v1052_v10  ;;  %12274 = vmatprep.mubr.msk.f32.mxu1 %vm597_vm0, %v15382_v41 }
 0x16a   : > { %v1214_v51 = vmax.f32 %v1182_v38, 0.0  ;;  %v1146_v52 = vmul.f32 %v15266_v45, %v1058_v9  ;;  %12275 = vmatmul.mubr.msk.f32.gmra.mrb[44].mxu1 %vm597_vm0, %v15389_v48 }
 0x16b   : > { %v1213_v53 = vmax.f32 %v1181_v42, 0.0  ;;  %v1145_v54 = vmul.f32 %v15266_v45, %v1053_v47  ;;  %v12232_v55 = vpop.f32.mrb[20].mxu1  ;;  %v15405_v2 = vld [vmem:[#allocation2 + $0xb1] sm:$0xff] }
 0x16c   : > { %1247 = vst.msk [vmem:[#allocation2 + $0xe1] sm:$0xff] %vm597_vm0, %v1214_v51  ;;  %v1184_v56 = vadd.f32 %v15272_v49, %v1146_v52  ;;  %v1068_v57 = vadd.f32 %v12232_v55, %v15261_v44  ;;  %v1062_v59 = vpop.f32.mrb[21].mxu1  ;;  %v15398_v62 = vld [vmem:[#allocation2 + $0xa9] sm:$0xff] }
 0x16d   : > { %1246 = vst.msk [vmem:[#allocation2 + $0xd9] sm:$0xff] %vm597_vm0, %v1213_v53  ;;  %v1183_v63 = vadd.f32 %v15272_v49, %v1145_v54  ;;  %v1063_v1 = vadd.f32 %v15261_v44, %v1062_v59  ;;  %12277 = vmatprep.mubr.msk.f32.mxu1 %vm597_vm0, %v15398_v62 }
 0x16e   : > { %v1216_v3 = vmax.f32 %v1184_v56, 0.0  ;;  %v1148_v5 = vmul.f32 %v15266_v45, %v1068_v57  ;;  %12278 = vmatmul.mubr.msk.f32.gmra.mrb[46].mxu1 %vm597_vm0, %v15405_v2 }
 0x16f   : > { %v1215_v7 = vmax.f32 %v1183_v63, 0.0  ;;  %v1147_v8 = vmul.f32 %v15266_v45, %v1063_v1  ;;  %v12235_v11 = vpop.f32.mrb[22].mxu1  ;;  %v15421_v21 = vld [vmem:[#allocation2 + $0xc9] sm:$0xff] }
 0x170   : > { %1249 = vst.msk [vmem:[#allocation2 + $0xf9] sm:$0xff] %vm597_vm0, %v1216_v3  ;;  %v1186_v12 = vadd.f32 %v15272_v49, %v1148_v5  ;;  %v1078_v15 = vadd.f32 %v12235_v11, %v15261_v44  ;;  %v1072_v16 = vpop.f32.mrb[23].mxu1  ;;  %v15414_v18 = vld [vmem:[#allocation2 + $0xc1] sm:$0xff] }
 0x171   : > { %1248 = vst.msk [vmem:[#allocation2 + $0xf1] sm:$0xff] %vm597_vm0, %v1215_v7  ;;  %v1185_v19 = vadd.f32 %v15272_v49, %v1147_v8  ;;  %v1073_v20 = vadd.f32 %v15261_v44, %v1072_v16  ;;  %12280 = vmatprep.mubr.msk.f32.mxu1 %vm597_vm0, %v15414_v18 }
 0x172   : > { %v1218_v22 = vmax.f32 %v1186_v12, 0.0  ;;  %v1150_v24 = vmul.f32 %v15266_v45, %v1078_v15  ;;  %12281 = vmatmul.mubr.msk.f32.gmra.mrb[48].mxu1 %vm597_vm0, %v15421_v21 }
 0x173   : > { %v1217_v25 = vmax.f32 %v1185_v19, 0.0  ;;  %v1149_v26 = vmul.f32 %v15266_v45, %v1073_v20  ;;  %v12238_v28 = vpop.f32.mrb[24].mxu1  ;;  %v15437_v38 = vld [vmem:[#allocation2 + $0xe1] sm:$0xff] }
 0x174   : > { %1251 = vst.msk [vmem:[#allocation2 + $0x111] sm:$0xff] %vm597_vm0, %v1218_v22  ;;  %v1188_v29 = vadd.f32 %v15272_v49, %v1150_v24  ;;  %v1088_v32 = vadd.f32 %v12238_v28, %v15261_v44  ;;  %v1082_v33 = vpop.f32.mrb[25].mxu1  ;;  %v15430_v35 = vld [vmem:[#allocation2 + $0xd9] sm:$0xff] }
 0x175   : > { %1250 = vst.msk [vmem:[#allocation2 + $0x109] sm:$0xff] %vm597_vm0, %v1217_v25  ;;  %v1187_v36 = vadd.f32 %v15272_v49, %v1149_v26  ;;  %v1083_v37 = vadd.f32 %v15261_v44, %v1082_v33  ;;  %12283 = vmatprep.mubr.msk.f32.mxu1 %vm597_vm0, %v15430_v35 }
 0x176   : > { %v1220_v9 = vmax.f32 %v1188_v29, 0.0  ;;  %v1152_v10 = vmul.f32 %v15266_v45, %v1088_v32  ;;  %12284 = vmatmul.mubr.msk.f32.gmra.mrb[50].mxu1 %vm597_vm0, %v15437_v38 }
 0x177   : > { %v1219_v42 = vmax.f32 %v1187_v36, 0.0  ;;  %v1151_v47 = vmul.f32 %v15266_v45, %v1083_v37  ;;  %v12241_v51 = vpop.f32.mrb[26].mxu1  ;;  %v15453_v59 = vld [vmem:[#allocation2 + $0xf9] sm:$0xff] }
 0x178   : > { %1253 = vst.msk [vmem:[#allocation2 + $0x129] sm:$0xff] %vm597_vm0, %v1220_v9  ;;  %v1190_v52 = vadd.f32 %v15272_v49, %v1152_v10  ;;  %v1098_v53 = vadd.f32 %v12241_v51, %v15261_v44  ;;  %v1092_v54 = vpop.f32.mrb[27].mxu1  ;;  %v15446_v55 = vld [vmem:[#allocation2 + $0xf1] sm:$0xff] }
 0x179   : > { %1252 = vst.msk [vmem:[#allocation2 + $0x121] sm:$0xff] %vm597_vm0, %v1219_v42  ;;  %v1189_v56 = vadd.f32 %v15272_v49, %v1151_v47  ;;  %v1093_v57 = vadd.f32 %v15261_v44, %v1092_v54  ;;  %12286 = vmatprep.mubr.msk.f32.mxu1 %vm597_vm0, %v15446_v55  ;;  %v556_v54 = vld [vmem:[#allocation6 + $0x50] sm:$0xff] }
 0x17a   : > { %v1222_v63 = vmax.f32 %v1190_v52, 0.0  ;;  %v1154_v1 = vmul.f32 %v15266_v45, %v1098_v53  ;;  %12287 = vmatmul.mubr.msk.f32.gmra.mrb[52].mxu1 %vm597_vm0, %v15453_v59  ;;  %v1262_v52 = vld [vmem:[#allocation2] sm:$0xff] }
 0x17b   : > { %v1221_v3 = vmax.f32 %v1189_v56, 0.0  ;;  %v1153_v5 = vmul.f32 %v15266_v45, %v1093_v57  ;;  %v12244_v7 = vpop.f32.mrb[28].mxu1  ;;  %v15469_v20 = vld [vmem:[#allocation2 + $0x111] sm:$0xff]  ;;  %v557_v56 = vld [vmem:[#allocation6 + $0x58] sm:$0xff] }
 0x17c   : > { %1255 = vst.msk [vmem:[#allocation2 + $0x141] sm:$0xff] %vm597_vm0, %v1222_v63  ;;  %v1192_v8 = vadd.f32 %v15272_v49, %v1154_v1  ;;  %v1108_v11 = vadd.f32 %v12244_v7, %v15261_v44  ;;  %v1102_v12 = vpop.f32.mrb[29].mxu1  ;;  %v15462_v15 = vld [vmem:[#allocation2 + $0x109] sm:$0xff]  ;;  %v15514_v63 = vpack.c.bf16 %v557_v56, %v556_v54  ;;  %v15563_v54 = vld [vmem:[#allocation2 + $0x80] sm:$0xff] }
 0x17d   : > { %1254 = vst.msk [vmem:[#allocation2 + $0x139] sm:$0xff] %vm597_vm0, %v1221_v3  ;;  %v1191_v16 = vadd.f32 %v15272_v49, %v1153_v5  ;;  %v1103_v19 = vadd.f32 %v15261_v44, %v1102_v12  ;;  %12289 = vmatprep.mubr.msk.f32.mxu1 %vm597_vm0, %v15462_v15  ;;  %v1263_v57 = vld [vmem:[#allocation2 + $0x8] sm:$0xff]  ;;  %v558_v1 = vld [vmem:[#allocation6 + $0x60] sm:$0xff]  ;;  %v559_v3 = vld [vmem:[#allocation6 + $0x68] sm:$0xff] }
 0x17e   : > { %v1224_v22 = vmax.f32 %v1192_v8, 0.0  ;;  %v1156_v24 = vmul.f32 %v15266_v45, %v1108_v11  ;;  %12290 = vmatmul.mubr.msk.f32.gmra.mrb[54].mxu1 %vm597_vm0, %v15469_v20  ;;  %18165 = vst [vmem:[#allocation31_spill] sm:$0xff] %v15514_v63  ;;  %v15517_v5 = vld [vmem:[#allocation2 + $0x18] sm:$0xff]  ;;  %v15523_v7 = vpack.c.bf16 %v559_v3, %v558_v1  ;;  %v15525_v8 = vld [vmem:[#allocation2 + $0x20] sm:$0xff]  ;;  %v15529_v11 = vld [vmem:[#allocation2 + $0x30] sm:$0xff] }
 0x17f   : > { %v1223_v25 = vmax.f32 %v1191_v16, 0.0  ;;  %v1155_v26 = vmul.f32 %v15266_v45, %v1103_v19  ;;  %v15483_v33 = vld [vmem:[#allocation2 + $0x129] sm:$0xff]  ;;  %v15535_v12 = vld [vmem:[#allocation2 + $0x38] sm:$0xff] }
 0x180   : > { %1257 = vst.msk [vmem:[#allocation2 + $0x159] sm:$0xff] %vm597_vm0, %v1224_v22  ;;  %v1194_v28 = vadd.f32 %v15272_v49, %v1156_v24  ;;  %v15477_v29 = vld [vmem:[#allocation2 + $0x121] sm:$0xff]  ;;  %18158 = vst [vmem:[#allocation24_spill] sm:$0xff] %v15483_v33  ;;  %v15543_v19 = vld [vmem:[#allocation2 + $0x50] sm:$0xff]  ;;  %v12247_v24 = vpop.f32.mrb[30].mxu1 }
 0x181   : > { %1256 = vst.msk [vmem:[#allocation2 + $0x151] sm:$0xff] %vm597_vm0, %v1223_v25  ;;  %v1193_v32 = vadd.f32 %v15272_v49, %v1155_v26  ;;  %12292 = vmatprep.mubr.msk.f32.mxu1 %vm597_vm0, %v15477_v29  ;;  %18166 = vst [vmem:[#allocation32_spill] sm:$0xff] %v15523_v7  ;;  %v15539_v16 = vld [vmem:[#allocation2 + $0x48] sm:$0xff]  ;;  %v15547_v22 = vld [vmem:[#allocation2 + $0x60] sm:$0xff]  ;;  %v1118_v26 = vadd.f32 %v12247_v24, %v15261_v44 }
 0x182   : > { %v1226_v36 = vmax.f32 %v1194_v28, 0.0  ;;  %12293 = vmatmul.mubr.msk.f32.gmra.mrb[56].mxu1 %vm597_vm0, %v15483_v33  ;;  %v15551_v25 = vld [vmem:[#allocation2 + $0x68] sm:$0xff]  ;;  %v1112_v28 = vpop.f32.mrb[31].mxu1  ;;  %v15573_v24 = vld [vmem:[#allocation2 + $0x98] sm:$0xff] }
 0x183   : > { %v1225_v37 = vmax.f32 %v1193_v32, 0.0  ;;  %v15493_v10 = vld [vmem:[#allocation2 + $0x141] sm:$0xff]  ;;  %v15556_v32 = vld [vmem:[#allocation2 + $0x78] sm:$0xff] }
 0x184   : > { %1259 = vst.msk [vmem:[#allocation2 + $0x171] sm:$0xff] %vm597_vm0, %v1226_v36  ;;  %v15488_v9 = vld [vmem:[#allocation2 + $0x139] sm:$0xff]  ;;  %18160 = vst [vmem:[#allocation26_spill] sm:$0xff] %v15493_v10  ;;  %v1113_v36 = vadd.f32 %v15261_v44, %v1112_v28  ;;  %v15591_v28 = vld [vmem:[#allocation2 + $0xc8] sm:$0xff] }
 0x185   : > { %18159 = vst [vmem:[#allocation25_spill] sm:$0xff] %v15488_v9  ;;  %1258 = vst.msk [vmem:[#allocation2 + $0x169] sm:$0xff] %vm597_vm0, %v1225_v37  ;;  %12295 = vmatprep.mubr.msk.f32.mxu1 %vm597_vm0, %v15488_v9  ;;  %v1158_v37 = vmul.f32 %v15266_v45, %v1118_v26  ;;  %v15587_v26 = vld [vmem:[#allocation2 + $0xc0] sm:$0xff] }
 0x186   : > { %12296 = vmatmul.mubr.msk.f32.gmra.mrb[58].mxu1 %vm597_vm0, %v15493_v10  ;;  %v15631_v40 = vld [vmem:[#allocation2 + $0x140] sm:$0xff] }
 0x187   : > { %v15501_v47 = vld [vmem:[#allocation2 + $0x159] sm:$0xff]  ;;  %v1196_v56 = vadd.f32 %v15272_v49, %v1158_v37  ;;  %v15663_v33 = vld [vmem:[#allocation2 + $0x22] sm:$0xff] }
 0x188   : > { %v15497_v42 = vld [vmem:[#allocation2 + $0x151] sm:$0xff]  ;;  %18162 = vst [vmem:[#allocation28_spill] sm:$0xff] %v15501_v47  ;;  %v15599_v37 = vld [vmem:[#allocation2 + $0xe0] sm:$0xff] }
 0x189   : > { %18161 = vst [vmem:[#allocation27_spill] sm:$0xff] %v15497_v42  ;;  %12298 = vmatprep.mubr.msk.f32.mxu1 %vm597_vm0, %v15497_v42  ;;  %v1228_v44 = vmax.f32 %v1196_v56, 0.0  ;;  %v15607_v56 = vld [vmem:[#allocation2 + $0xf8] sm:$0xff]  ;;  %v15635_v39 = vld [vmem:[#allocation2 + $0x150] sm:$0xff] }
 0x18a   : > { %12299 = vmatmul.mubr.msk.f32.gmra.mrb[60].mxu1 %vm597_vm0, %v15501_v47  ;;  %v15639_v60 = vld [vmem:[#allocation2 + $0x158] sm:$0xff]  ;;  %v562_v47 = vld [vmem:[#allocation6 + $0x80] sm:$0xff] }
 0x18b   : > { %v15509_v53 = vld [vmem:[#allocation2 + $0x171] sm:$0xff]  ;;  %1261 = vst.msk [vmem:[#allocation2 + $0x189] sm:$0xff] %vm597_vm0, %v1228_v44  ;;  %v15655_v10 = vld [vmem:[#allocation2 + $0x1a] sm:$0xff] }
 0x18c   : > { %v15505_v51 = vld [vmem:[#allocation2 + $0x169] sm:$0xff]  ;;  %18164 = vst [vmem:[#allocation30_spill] sm:$0xff] %v15509_v53  ;;  %v563_v42 = vld [vmem:[#allocation6 + $0x88] sm:$0xff] }
 0x18d   : > { %18163 = vst [vmem:[#allocation29_spill] sm:$0xff] %v15505_v51  ;;  %12301 = vmatprep.mubr.msk.f32.mxu1 %vm597_vm0, %v15505_v51  ;;  %v15615_v44 = vld [vmem:[#allocation2 + $0x110] sm:$0xff]  ;;  %v15643_v58 = vld [vmem:[#allocation2 + $0x168] sm:$0xff]  ;;  %v15652_v51 = vpack.c.bf16 %v561_v4, %v560_v6  ;;  %v15661_v9 = vpack.c.bf16 %v563_v42, %v562_v47  ;;  %v15673_v6 = vld [vmem:[#allocation2 + $0x3a] sm:$0xff] }
 0x18e   : > { %12302 = vmatmul.mubr.msk.f32.gmra.mrb[62].mxu1 %vm597_vm0, %v15509_v53  ;;  %v15647_v14 = vld [vmem:[#allocation2 + $0x170] sm:$0xff]  ;;  %18170 = vst [vmem:[#allocation36_spill] sm:$0xff] %v15673_v6  ;;  %v15685_v47 = vld [vmem:[#allocation2 + $0x62] sm:$0xff] }
 0x18f   : > { %12312 = vmatprep.mubr.msk.f32.mxu1 %vm597_vm0, %v1262_v52  ;;  %v1157_v52 = vmul.f32 %v15266_v45, %v1113_v36  ;;  %v15578_v45 = vld [vmem:[#allocation2 + $0xa8] sm:$0xff]  ;;  %v15595_v36 = vld [vmem:[#allocation2 + $0xd8] sm:$0xff]  ;;  %18167 = vst [vmem:[#allocation33_spill] sm:$0xff] %v15652_v51  ;;  %18168 = vst [vmem:[#allocation34_spill] sm:$0xff] %v15661_v9 }
 0x190   : > { %v1969_v53 = vld [vmem:[#allocation2 + $0xa] sm:$0xff]  ;;  %v15667_v4 = vld [vmem:[#allocation2 + $0x32] sm:$0xff]  ;;  %18173 = vst [vmem:[#allocation39_spill] sm:$0xff] %v15685_v47 }
 0x191   : > { %v1195_v1 = vadd.f32 %v15272_v49, %v1157_v52  ;;  %v15583_v49 = vld [vmem:[#allocation2 + $0xb0] sm:$0xff]  ;;  %18169 = vst [vmem:[#allocation35_spill] sm:$0xff] %v15667_v4 }
 0x192   : > { %12313 = vmatmul.mubr.msk.f32.vlgmr.msra.gmra.mrb[32].mxu1 %vm597_vm0, %v1263_v57  ;;  %v15568_v57 = vld [vmem:[#allocation2 + $0x90] sm:$0xff] }
 0x193   : > { %13595 = vmatpush3.bf16.msra.mxu1 %v15255_v43  ;;  %12315 = vmatprep.mubr.msk.f32.mxu1 %vm597_vm0, %v15517_v5  ;;  %v1227_v3 = vmax.f32 %v1195_v1, 0.0  ;;  %v15603_v52 = vld [vmem:[#allocation2 + $0xf0] sm:$0xff]  ;;  %v15611_v1 = vld [vmem:[#allocation2 + $0x108] sm:$0xff]  ;;  %v15627_v43 = vld [vmem:[#allocation2 + $0x138] sm:$0xff] }
 0x194   : > { %13597 = vmatprep.subr.bf16.mxu1 %v15514_v63  ;;  %v15681_v42 = vld [vmem:[#allocation2 + $0x52] sm:$0xff] }
 0x195   : > { %1260 = vst.msk [vmem:[#allocation2 + $0x181] sm:$0xff] %vm597_vm0, %v1227_v3  ;;  %v15619_v3 = vld [vmem:[#allocation2 + $0x120] sm:$0xff]  ;;  %18172 = vst [vmem:[#allocation38_spill] sm:$0xff] %v15681_v42 }
 0x196   : > { %12316 = vmatmul.mubr.msk.f32.gmra.mrb[34].mxu1 %vm597_vm0, %v15525_v8 }
 0x197   : > { %12318 = vmatprep.mubr.msk.f32.mxu1 %vm597_vm0, %v15529_v11  ;;  %13599 = vmatpush3.bf16.msra.mxu1 %v15514_v63  ;;  %v15623_v63 = vld [vmem:[#allocation2 + $0x128] sm:$0xff] }
 0x198   : > { %13601 = vmatprep.subr.bf16.mxu1 %v15523_v7 }
 0x19a   : > { %12319 = vmatmul.mubr.msk.f32.gmra.mrb[36].mxu1 %vm597_vm0, %v15535_v12 }
 0x19b   : > { %12321 = vmatprep.mubr.msk.f32.mxu1 %vm597_vm0, %v15539_v16 }
 0x19e   : > { %12322 = vmatmul.mubr.msk.f32.gmra.mrb[38].mxu1 %vm597_vm0, %v15543_v19 }
 0x19f   : > { %12324 = vmatprep.mubr.msk.f32.mxu1 %vm597_vm0, %v15547_v22 }
 0x1a2   : > { %12325 = vmatmul.mubr.msk.f32.gmra.mrb[40].mxu1 %vm597_vm0, %v15551_v25 }
 0x1a3   : > { %12327 = vmatprep.mubr.msk.f32.mxu1 %vm597_vm0, %v15556_v32 }
 0x1a6   : > { %12328 = vmatmul.mubr.msk.f32.gmra.mrb[42].mxu1 %vm597_vm0, %v15563_v54 }
 0x1a7   : > { %12330 = vmatprep.mubr.msk.f32.mxu1 %vm597_vm0, %v15568_v57 }
 0x1aa   : > { %12331 = vmatmul.mubr.msk.f32.gmra.mrb[44].mxu1 %vm597_vm0, %v15573_v24 }
 0x1ab   : > { %12333 = vmatprep.mubr.msk.f32.mxu1 %vm597_vm0, %v15578_v45 }
 0x1ae   : > { %12334 = vmatmul.mubr.msk.f32.gmra.mrb[46].mxu1 %vm597_vm0, %v15583_v49 }
 0x1af   : > { %12336 = vmatprep.mubr.msk.f32.mxu1 %vm597_vm0, %v15587_v26 }
 0x1b2   : > { %12337 = vmatmul.mubr.msk.f32.gmra.mrb[48].mxu1 %vm597_vm0, %v15591_v28 }
 0x1b3   : > { %12339 = vmatprep.mubr.msk.f32.mxu1 %vm597_vm0, %v15595_v36 }
 0x1b6   : > { %12340 = vmatmul.mubr.msk.f32.gmra.mrb[50].mxu1 %vm597_vm0, %v15599_v37 }
 0x1b7   : > { %12342 = vmatprep.mubr.msk.f32.mxu1 %vm597_vm0, %v15603_v52 }
 0x1ba   : > { %12343 = vmatmul.mubr.msk.f32.gmra.mrb[52].mxu1 %vm597_vm0, %v15607_v56 }
 0x1bb   : > { %12345 = vmatprep.mubr.msk.f32.mxu1 %vm597_vm0, %v15611_v1 }
 0x1be   : > { %12346 = vmatmul.mubr.msk.f32.gmra.mrb[54].mxu1 %vm597_vm0, %v15615_v44 }
 0x1bf   : > { %12348 = vmatprep.mubr.msk.f32.mxu1 %vm597_vm0, %v15619_v3 }
 0x1c2   : > { %12349 = vmatmul.mubr.msk.f32.gmra.mrb[56].mxu1 %vm597_vm0, %v15623_v63 }
 0x1c3   : > { %12351 = vmatprep.mubr.msk.f32.mxu1 %vm597_vm0, %v15627_v43 }
 0x1c6   : > { %12352 = vmatmul.mubr.msk.f32.gmra.mrb[58].mxu1 %vm597_vm0, %v15631_v40 }
 0x1c7   : > { %12354 = vmatprep.mubr.msk.f32.mxu1 %vm597_vm0, %v15635_v39 }
 0x1ca   : > { %12355 = vmatmul.mubr.msk.f32.gmra.mrb[60].mxu1 %vm597_vm0, %v15639_v60 }
 0x1cb   : > { %12357 = vmatprep.mubr.msk.f32.mxu1 %vm597_vm0, %v15643_v58 }
 0x1ce   : > { %12358 = vmatmul.mubr.msk.f32.gmra.mrb[62].mxu1 %vm597_vm0, %v15647_v14 }
 0x1cf   : > { %12368 = vmatprep.mubr.msk.f32.mxu1 %vm597_vm0, %v1968_v23  ;;  %v15677_v23 = vld [vmem:[#allocation2 + $0x4a] sm:$0xff] }
 0x1d0   : > { %18171 = vst [vmem:[#allocation37_spill] sm:$0xff] %v15677_v23 }
 0x1d2   : > { %12369 = vmatmul.mubr.msk.f32.vlgmr.msra.gmra.mrb[32].mxu1 %vm597_vm0, %v1969_v53  ;;  %v15689_v53 = vld [vmem:[#allocation2 + $0x6a] sm:$0xff] }
 0x1d3   : > { %13603 = vmatpush3.bf16.msra.mxu1 %v15523_v7  ;;  %12371 = vmatprep.mubr.msk.f32.mxu1 %vm597_vm0, %v15655_v10  ;;  %18174 = vst [vmem:[#allocation40_spill] sm:$0xff] %v15689_v53  ;;  %v15697_v7 = vld [vmem:[#allocation2 + $0x82] sm:$0xff] }
 0x1d4   : > { %13605 = vmatprep.subr.bf16.mxu1 %v15652_v51  ;;  %18176 = vst [vmem:[#allocation42_spill] sm:$0xff] %v15697_v7 }
 0x1d6   : > { %12372 = vmatmul.mubr.msk.f32.gmra.mrb[34].mxu1 %vm597_vm0, %v15663_v33 }
 0x1d7   : > { %12374 = vmatprep.mubr.msk.f32.mxu1 %vm597_vm0, %v15667_v4  ;;  %13607 = vmatpush3.bf16.msra.mxu1 %v15652_v51  ;;  %v15693_v51 = vld [vmem:[#allocation2 + $0x7a] sm:$0xff] }
 0x1d8   : > { %13609 = vmatprep.subr.bf16.mxu1 %v15661_v9  ;;  %18175 = vst [vmem:[#allocation41_spill] sm:$0xff] %v15693_v51  ;;  %v567_v4 = vld [vmem:[#allocation6 + $0xa8] sm:$0xff] }
 0x1da   : > { %12375 = vmatmul.mubr.msk.f32.gmra.mrb[36].mxu1 %vm597_vm0, %v15673_v6  ;;  %v565_v6 = vld [vmem:[#allocation6 + $0x98] sm:$0xff] }
 0x1db   : > { %12377 = vmatprep.mubr.msk.f32.mxu1 %vm597_vm0, %v15677_v23  ;;  %v564_v23 = vld [vmem:[#allocation6 + $0x90] sm:$0xff] }
 0x1de   : > { %12378 = vmatmul.mubr.msk.f32.gmra.mrb[38].mxu1 %vm597_vm0, %v15681_v42  ;;  %v15701_v42 = vld [vmem:[#allocation2 + $0x92] sm:$0xff] }
 0x1df   : > { %12380 = vmatprep.mubr.msk.f32.mxu1 %vm597_vm0, %v15685_v47  ;;  %18177 = vst [vmem:[#allocation43_spill] sm:$0xff] %v15701_v42  ;;  %v15705_v47 = vld [vmem:[#allocation2 + $0x9a] sm:$0xff] }
 0x1e0   : > { %18178 = vst [vmem:[#allocation44_spill] sm:$0xff] %v15705_v47 }
 0x1e2   : > { %12381 = vmatmul.mubr.msk.f32.gmra.mrb[40].mxu1 %vm597_vm0, %v15689_v53  ;;  %v15709_v53 = vld [vmem:[#allocation2 + $0xaa] sm:$0xff] }
 0x1e3   : > { %12383 = vmatprep.mubr.msk.f32.mxu1 %vm597_vm0, %v15693_v51  ;;  %18179 = vst [vmem:[#allocation45_spill] sm:$0xff] %v15709_v53  ;;  %v15713_v51 = vld [vmem:[#allocation2 + $0xb2] sm:$0xff] }
 0x1e4   : > { %18180 = vst [vmem:[#allocation46_spill] sm:$0xff] %v15713_v51 }
 0x1e6   : > { %12384 = vmatmul.mubr.msk.f32.gmra.mrb[42].mxu1 %vm597_vm0, %v15697_v7  ;;  %v15717_v7 = vld [vmem:[#allocation2 + $0xc2] sm:$0xff] }
 0x1e7   : > { %12386 = vmatprep.mubr.msk.f32.mxu1 %vm597_vm0, %v15701_v42  ;;  %18181 = vst [vmem:[#allocation47_spill] sm:$0xff] %v15717_v7  ;;  %v15721_v42 = vld [vmem:[#allocation2 + $0xca] sm:$0xff] }
 0x1e8   : > { %18182 = vst [vmem:[#allocation48_spill] sm:$0xff] %v15721_v42 }
 0x1ea   : > { %12387 = vmatmul.mubr.msk.f32.gmra.mrb[44].mxu1 %vm597_vm0, %v15705_v47  ;;  %v15725_v47 = vld [vmem:[#allocation2 + $0xda] sm:$0xff] }
 0x1eb   : > { %12389 = vmatprep.mubr.msk.f32.mxu1 %vm597_vm0, %v15709_v53  ;;  %18183 = vst [vmem:[#allocation49_spill] sm:$0xff] %v15725_v47  ;;  %v15729_v53 = vld [vmem:[#allocation2 + $0xe2] sm:$0xff] }
 0x1ec   : > { %18184 = vst [vmem:[#allocation50_spill] sm:$0xff] %v15729_v53 }
 0x1ee   : > { %12390 = vmatmul.mubr.msk.f32.gmra.mrb[46].mxu1 %vm597_vm0, %v15713_v51  ;;  %v15733_v51 = vld [vmem:[#allocation2 + $0xf2] sm:$0xff] }
 0x1ef   : > { %12392 = vmatprep.mubr.msk.f32.mxu1 %vm597_vm0, %v15717_v7  ;;  %18185 = vst [vmem:[#allocation51_spill] sm:$0xff] %v15733_v51  ;;  %v15737_v7 = vld [vmem:[#allocation2 + $0xfa] sm:$0xff] }
 0x1f0   : > { %18186 = vst [vmem:[#allocation52_spill] sm:$0xff] %v15737_v7 }
 0x1f2   : > { %12393 = vmatmul.mubr.msk.f32.gmra.mrb[48].mxu1 %vm597_vm0, %v15721_v42  ;;  %v15741_v42 = vld [vmem:[#allocation2 + $0x10a] sm:$0xff] }
 0x1f3   : > { %12395 = vmatprep.mubr.msk.f32.mxu1 %vm597_vm0, %v15725_v47  ;;  %18187 = vst [vmem:[#allocation53_spill] sm:$0xff] %v15741_v42  ;;  %v15745_v47 = vld [vmem:[#allocation2 + $0x112] sm:$0xff] }
 0x1f4   : > { %18188 = vst [vmem:[#allocation54_spill] sm:$0xff] %v15745_v47 }
 0x1f6   : > { %12396 = vmatmul.mubr.msk.f32.gmra.mrb[50].mxu1 %vm597_vm0, %v15729_v53  ;;  %v15749_v53 = vld [vmem:[#allocation2 + $0x122] sm:$0xff] }
 0x1f7   : > { %12398 = vmatprep.mubr.msk.f32.mxu1 %vm597_vm0, %v15733_v51  ;;  %18189 = vst [vmem:[#allocation55_spill] sm:$0xff] %v15749_v53  ;;  %v15753_v51 = vld [vmem:[#allocation2 + $0x12a] sm:$0xff] }
 0x1f8   : > { %18190 = vst [vmem:[#allocation56_spill] sm:$0xff] %v15753_v51 }
 0x1fa   : > { %12399 = vmatmul.mubr.msk.f32.gmra.mrb[52].mxu1 %vm597_vm0, %v15737_v7  ;;  %v15757_v7 = vld [vmem:[#allocation2 + $0x13a] sm:$0xff] }
 0x1fb   : > { %12401 = vmatprep.mubr.msk.f32.mxu1 %vm597_vm0, %v15741_v42  ;;  %18191 = vst [vmem:[#allocation57_spill] sm:$0xff] %v15757_v7  ;;  %v15761_v42 = vld [vmem:[#allocation2 + $0x142] sm:$0xff] }
 0x1fc   : > { %18192 = vst [vmem:[#allocation58_spill] sm:$0xff] %v15761_v42 }
 0x1fe   : > { %12402 = vmatmul.mubr.msk.f32.gmra.mrb[54].mxu1 %vm597_vm0, %v15745_v47  ;;  %v15765_v47 = vld [vmem:[#allocation2 + $0x152] sm:$0xff] }
 0x1ff   : > { %12404 = vmatprep.mubr.msk.f32.mxu1 %vm597_vm0, %v15749_v53  ;;  %18193 = vst [vmem:[#allocation59_spill] sm:$0xff] %v15765_v47  ;;  %v15769_v53 = vld [vmem:[#allocation2 + $0x15a] sm:$0xff] }
 0x200   : > { %18194 = vst [vmem:[#allocation60_spill] sm:$0xff] %v15769_v53 }
 0x202   : > { %12405 = vmatmul.mubr.msk.f32.gmra.mrb[56].mxu1 %vm597_vm0, %v15753_v51  ;;  %v15773_v51 = vld [vmem:[#allocation2 + $0x16a] sm:$0xff] }
 0x203   : > { %12407 = vmatprep.mubr.msk.f32.mxu1 %vm597_vm0, %v15757_v7  ;;  %18195 = vst [vmem:[#allocation61_spill] sm:$0xff] %v15773_v51  ;;  %v15777_v7 = vld [vmem:[#allocation2 + $0x172] sm:$0xff] }
 0x206   : > { %12408 = vmatmul.mubr.msk.f32.gmra.mrb[58].mxu1 %vm597_vm0, %v15761_v42  ;;  %v566_v42 = vld [vmem:[#allocation6 + $0xa0] sm:$0xff] }
 0x207   : > { %12410 = vmatprep.mubr.msk.f32.mxu1 %vm597_vm0, %v15765_v47  ;;  %v15783_v47 = vpack.c.bf16 %v565_v6, %v564_v23  ;;  %v569_v6 = vld [vmem:[#allocation6 + $0xb8] sm:$0xff] }
 0x209   : > { %18196 = vst [vmem:[#allocation62_spill] sm:$0xff] %v15783_v47 }
 0x20a   : > { %12411 = vmatmul.mubr.msk.f32.gmra.mrb[60].mxu1 %vm597_vm0, %v15769_v53 }
 0x20b   : > { %12413 = vmatprep.mubr.msk.f32.mxu1 %vm597_vm0, %v15773_v51  ;;  %v15791_v51 = vpack.c.bf16 %v567_v4, %v566_v42  ;;  %v568_v4 = vld [vmem:[#allocation6 + $0xb0] sm:$0xff]  ;;  %v570_v42 = vld [vmem:[#allocation6 + $0xc0] sm:$0xff] }
 0x20c   : > { %v15859_v23 = vpack.c.bf16 %v569_v6, %v568_v4  ;;  %v18220_v4 = vld [vmem:[#allocation46_spill] sm:$0xff]  ;;  %v18221_v6 = vld [vmem:[#allocation47_spill] sm:$0xff] }
 0x20d   : > { %18197 = vst [vmem:[#allocation63_spill] sm:$0xff] %v15791_v51 }
 0x20e   : > { %12414 = vmatmul.mubr.msk.f32.gmra.mrb[62].mxu1 %vm597_vm0, %v15777_v7  ;;  %18198 = vst [vmem:[#allocation64_spill] sm:$0xff] %v15859_v23 }
 0x20f   : > { %12424 = vmatprep.mubr.msk.f32.mxu1 %vm597_vm0, %v15517_v5  ;;  %v15849_v5 = vld [vmem:[#allocation2 + $0x180] sm:$0xff] }
 0x212   : > { %12425 = vmatmul.mubr.msk.f32.vlgmr.msra.gmra.mrb[32].mxu1 %vm597_vm0, %v15525_v8  ;;  %v15853_v8 = vld [vmem:[#allocation2 + $0x188] sm:$0xff] }
 0x213   : > { %13611 = vmatpush3.bf16.msra.mxu1 %v15661_v9  ;;  %12427 = vmatprep.mubr.msk.f32.mxu1 %vm597_vm0, %v15529_v11 }
 0x214   : > { %13613 = vmatprep.subr.bf16.mxu1 %v15783_v47 }
 0x216   : > { %12428 = vmatmul.mubr.msk.f32.gmra.mrb[34].mxu1 %vm597_vm0, %v15535_v12 }
 0x217   : > { %12430 = vmatprep.mubr.msk.f32.mxu1 %vm597_vm0, %v15539_v16  ;;  %13615 = vmatpush3.bf16.msra.mxu1 %v15783_v47  ;;  %v571_v47 = vld [vmem:[#allocation6 + $0xc8] sm:$0xff] }
 0x218   : > { %13617 = vmatprep.subr.bf16.mxu1 %v15791_v51  ;;  %v15867_v9 = vpack.c.bf16 %v571_v47, %v570_v42  ;;  %v18219_v47 = vld [vmem:[#allocation45_spill] sm:$0xff]  ;;  %v18222_v42 = vld [vmem:[#allocation48_spill] sm:$0xff] }
 0x21a   : > { %12431 = vmatmul.mubr.msk.f32.gmra.mrb[36].mxu1 %vm597_vm0, %v15543_v19  ;;  %18199 = vst [vmem:[#allocation65_spill] sm:$0xff] %v15867_v9 }
 0x21b   : > { %12433 = vmatprep.mubr.msk.f32.mxu1 %vm597_vm0, %v15547_v22 }
 0x21e   : > { %12434 = vmatmul.mubr.msk.f32.gmra.mrb[38].mxu1 %vm597_vm0, %v15551_v25 }
 0x21f   : > { %12436 = vmatprep.mubr.msk.f32.mxu1 %vm597_vm0, %v15556_v32 }
 0x222   : > { %12437 = vmatmul.mubr.msk.f32.gmra.mrb[40].mxu1 %vm597_vm0, %v15563_v54 }
 0x223   : > { %12439 = vmatprep.mubr.msk.f32.mxu1 %vm597_vm0, %v15568_v57 }
 0x226   : > { %12440 = vmatmul.mubr.msk.f32.gmra.mrb[42].mxu1 %vm597_vm0, %v15573_v24 }
 0x227   : > { %12442 = vmatprep.mubr.msk.f32.mxu1 %vm597_vm0, %v15578_v45 }
 0x22a   : > { %12443 = vmatmul.mubr.msk.f32.gmra.mrb[44].mxu1 %vm597_vm0, %v15583_v49 }
 0x22b   : > { %12445 = vmatprep.mubr.msk.f32.mxu1 %vm597_vm0, %v15587_v26 }
 0x22e   : > { %12446 = vmatmul.mubr.msk.f32.gmra.mrb[46].mxu1 %vm597_vm0, %v15591_v28 }
 0x22f   : > { %12448 = vmatprep.mubr.msk.f32.mxu1 %vm597_vm0, %v15595_v36 }
 0x232   : > { %12449 = vmatmul.mubr.msk.f32.gmra.mrb[48].mxu1 %vm597_vm0, %v15599_v37 }
 0x233   : > { %12451 = vmatprep.mubr.msk.f32.mxu1 %vm597_vm0, %v15603_v52 }
 0x236   : > { %12452 = vmatmul.mubr.msk.f32.gmra.mrb[50].mxu1 %vm597_vm0, %v15607_v56 }
 0x237   : > { %12454 = vmatprep.mubr.msk.f32.mxu1 %vm597_vm0, %v15611_v1 }
 0x23a   : > { %12455 = vmatmul.mubr.msk.f32.gmra.mrb[52].mxu1 %vm597_vm0, %v15615_v44 }
 0x23b   : > { %12457 = vmatprep.mubr.msk.f32.mxu1 %vm597_vm0, %v15619_v3 }
 0x23e   : > { %12458 = vmatmul.mubr.msk.f32.gmra.mrb[54].mxu1 %vm597_vm0, %v15623_v63 }
 0x23f   : > { %12460 = vmatprep.mubr.msk.f32.mxu1 %vm597_vm0, %v15627_v43 }
 0x242   : > { %12461 = vmatmul.mubr.msk.f32.gmra.mrb[56].mxu1 %vm597_vm0, %v15631_v40 }
 0x243   : > { %12463 = vmatprep.mubr.msk.f32.mxu1 %vm597_vm0, %v15635_v39 }
 0x246   : > { %12464 = vmatmul.mubr.msk.f32.gmra.mrb[58].mxu1 %vm597_vm0, %v15639_v60 }
 0x247   : > { %12466 = vmatprep.mubr.msk.f32.mxu1 %vm597_vm0, %v15643_v58 }
 0x24a   : > { %12467 = vmatmul.mubr.msk.f32.gmra.mrb[60].mxu1 %vm597_vm0, %v15647_v14 }
 0x24b   : > { %12469 = vmatprep.mubr.msk.f32.mxu1 %vm597_vm0, %v15849_v5 }
 0x24e   : > { %12470 = vmatmul.mubr.msk.f32.gmra.mrb[62].mxu1 %vm597_vm0, %v15853_v8 }
 0x24f   : > { %12480 = vmatprep.mubr.msk.f32.mxu1 %vm597_vm0, %v15302_v31  ;;  %v18200_v31 = vld [vmem:[#allocation24_spill] sm:$0xff] }
 0x252   : > { %12481 = vmatmul.mubr.msk.f32.vlgmr.msra.gmra.mrb[32].mxu1 %vm597_vm0, %v15309_v34  ;;  %v18201_v34 = vld [vmem:[#allocation25_spill] sm:$0xff] }
 0x253   : > { %13619 = vmatpush3.bf16.msra.mxu1 %v15791_v51  ;;  %12483 = vmatprep.mubr.msk.f32.mxu1 %vm597_vm0, %v15318_v46  ;;  %v18202_v46 = vld [vmem:[#allocation26_spill] sm:$0xff]  ;;  %v576_v51 = vld [vmem:[#allocation6 + $0xf0] sm:$0xff] }
 0x254   : > { %13621 = vmatprep.subr.bf16.mxu1 %v15859_v23 }
 0x256   : > { %12484 = vmatmul.mubr.msk.f32.gmra.mrb[34].mxu1 %vm597_vm0, %v15325_v50  ;;  %v18203_v50 = vld [vmem:[#allocation27_spill] sm:$0xff] }
 0x257   : > { %12486 = vmatprep.mubr.msk.f32.mxu1 %vm597_vm0, %v15334_v61  ;;  %13623 = vmatpush3.bf16.msra.mxu1 %v15859_v23  ;;  %v18204_v61 = vld [vmem:[#allocation28_spill] sm:$0xff]  ;;  %v16005_v23 = vld [vmem:[#allocation2 + $0x18a] sm:$0xff] }
 0x258   : > { %13625 = vmatprep.subr.bf16.mxu1 %v15867_v9 }
 0x25a   : > { %12487 = vmatmul.mubr.msk.f32.gmra.mrb[36].mxu1 %vm597_vm0, %v15341_v0  ;;  %v18205_v0 = vld [vmem:[#allocation29_spill] sm:$0xff] }
 0x25b   : > { %12489 = vmatprep.mubr.msk.f32.mxu1 %vm597_vm0, %v15350_v13  ;;  %v18206_v13 = vld [vmem:[#allocation30_spill] sm:$0xff] }
 0x25e   : > { %12490 = vmatmul.mubr.msk.f32.gmra.mrb[38].mxu1 %vm597_vm0, %v15357_v17  ;;  %v15925_v17 = vld [vmem:[#allocation2 + $0x181] sm:$0xff] }
 0x25f   : > { %12492 = vmatprep.mubr.msk.f32.mxu1 %vm597_vm0, %v15366_v27  ;;  %v15929_v27 = vld [vmem:[#allocation2 + $0x189] sm:$0xff] }
 0x262   : > { %12493 = vmatmul.mubr.msk.f32.gmra.mrb[40].mxu1 %vm597_vm0, %v15373_v30  ;;  %v572_v30 = vld [vmem:[#allocation6 + $0xd0] sm:$0xff] }
 0x263   : > { %12495 = vmatprep.mubr.msk.f32.mxu1 %vm597_vm0, %v15382_v41  ;;  %v573_v41 = vld [vmem:[#allocation6 + $0xd8] sm:$0xff] }
 0x266   : > { %12496 = vmatmul.mubr.msk.f32.gmra.mrb[42].mxu1 %vm597_vm0, %v15389_v48  ;;  %v15935_v48 = vpack.c.bf16 %v573_v41, %v572_v30  ;;  %v18230_v30 = vld [vmem:[#allocation56_spill] sm:$0xff]  ;;  %v18231_v41 = vld [vmem:[#allocation57_spill] sm:$0xff] }
 0x267   : > { %12498 = vmatprep.mubr.msk.f32.mxu1 %vm597_vm0, %v15398_v62  ;;  %v574_v62 = vld [vmem:[#allocation6 + $0xe0] sm:$0xff] }
 0x268   : > { %18207 = vst [vmem:[#allocation24_spill] sm:$0xff] %v15935_v48 }
 0x26a   : > { %12499 = vmatmul.mubr.msk.f32.gmra.mrb[44].mxu1 %vm597_vm0, %v15405_v2  ;;  %v575_v2 = vld [vmem:[#allocation6 + $0xe8] sm:$0xff] }
 0x26b   : > { %12501 = vmatprep.mubr.msk.f32.mxu1 %vm597_vm0, %v15414_v18  ;;  %v18208_v18 = vld [vmem:[#allocation35_spill] sm:$0xff] }
 0x26e   : > { %12502 = vmatmul.mubr.msk.f32.gmra.mrb[46].mxu1 %vm597_vm0, %v15421_v21  ;;  %v15943_v21 = vpack.c.bf16 %v575_v2, %v574_v62  ;;  %v18232_v62 = vld [vmem:[#allocation58_spill] sm:$0xff]  ;;  %v18233_v2 = vld [vmem:[#allocation59_spill] sm:$0xff] }
 0x26f   : > { %12504 = vmatprep.mubr.msk.f32.mxu1 %vm597_vm0, %v15430_v35  ;;  %v18210_v35 = vld [vmem:[#allocation36_spill] sm:$0xff] }
 0x270   : > { %18209 = vst [vmem:[#allocation25_spill] sm:$0xff] %v15943_v21 }
 0x272   : > { %12505 = vmatmul.mubr.msk.f32.gmra.mrb[48].mxu1 %vm597_vm0, %v15437_v38  ;;  %v18211_v38 = vld [vmem:[#allocation37_spill] sm:$0xff] }
 0x273   : > { %12507 = vmatprep.mubr.msk.f32.mxu1 %vm597_vm0, %v15446_v55  ;;  %v18212_v55 = vld [vmem:[#allocation38_spill] sm:$0xff] }
 0x276   : > { %12508 = vmatmul.mubr.msk.f32.gmra.mrb[50].mxu1 %vm597_vm0, %v15453_v59  ;;  %v18213_v59 = vld [vmem:[#allocation39_spill] sm:$0xff] }
 0x277   : > { %12510 = vmatprep.mubr.msk.f32.mxu1 %vm597_vm0, %v15462_v15  ;;  %v18214_v15 = vld [vmem:[#allocation40_spill] sm:$0xff] }
 0x27a   : > { %12511 = vmatmul.mubr.msk.f32.gmra.mrb[52].mxu1 %vm597_vm0, %v15469_v20  ;;  %v18215_v20 = vld [vmem:[#allocation41_spill] sm:$0xff] }
 0x27b   : > { %12513 = vmatprep.mubr.msk.f32.mxu1 %vm597_vm0, %v15477_v29  ;;  %v18216_v29 = vld [vmem:[#allocation42_spill] sm:$0xff] }
 0x27e   : > { %12514 = vmatmul.mubr.msk.f32.gmra.mrb[54].mxu1 %vm597_vm0, %v18200_v31  ;;  %v18223_v31 = vld [vmem:[#allocation49_spill] sm:$0xff] }
 0x27f   : > { %12516 = vmatprep.mubr.msk.f32.mxu1 %vm597_vm0, %v18201_v34  ;;  %v18224_v34 = vld [vmem:[#allocation50_spill] sm:$0xff] }
 0x282   : > { %12517 = vmatmul.mubr.msk.f32.gmra.mrb[56].mxu1 %vm597_vm0, %v18202_v46  ;;  %v18225_v46 = vld [vmem:[#allocation51_spill] sm:$0xff] }
 0x283   : > { %12519 = vmatprep.mubr.msk.f32.mxu1 %vm597_vm0, %v18203_v50  ;;  %v18226_v50 = vld [vmem:[#allocation52_spill] sm:$0xff] }
 0x286   : > { %12520 = vmatmul.mubr.msk.f32.gmra.mrb[58].mxu1 %vm597_vm0, %v18204_v61  ;;  %v18227_v61 = vld [vmem:[#allocation53_spill] sm:$0xff] }
 0x287   : > { %12522 = vmatprep.mubr.msk.f32.mxu1 %vm597_vm0, %v18205_v0  ;;  %v18228_v0 = vld [vmem:[#allocation54_spill] sm:$0xff] }
 0x28a   : > { %12523 = vmatmul.mubr.msk.f32.gmra.mrb[60].mxu1 %vm597_vm0, %v18206_v13  ;;  %v18229_v13 = vld [vmem:[#allocation55_spill] sm:$0xff] }
 0x28b   : > { %12525 = vmatprep.mubr.msk.f32.mxu1 %vm597_vm0, %v15925_v17 }
 0x28e   : > { %12526 = vmatmul.mubr.msk.f32.gmra.mrb[62].mxu1 %vm597_vm0, %v15929_v27 }
 0x28f   : > { %12536 = vmatprep.mubr.msk.f32.mxu1 %vm597_vm0, %v15655_v10  ;;  %v18218_v10 = vld [vmem:[#allocation44_spill] sm:$0xff] }
 0x292   : > { %12537 = vmatmul.mubr.msk.f32.vlgmr.msra.gmra.mrb[32].mxu1 %vm597_vm0, %v15663_v33  ;;  %v18217_v33 = vld [vmem:[#allocation43_spill] sm:$0xff] }
 0x293   : > { %13627 = vmatpush3.bf16.msra.mxu1 %v15867_v9  ;;  %12539 = vmatprep.mubr.msk.f32.mxu1 %vm597_vm0, %v18208_v18  ;;  %v16001_v9 = vld [vmem:[#allocation2 + $0x182] sm:$0xff] }
 0x294   : > { %13629 = vmatprep.subr.bf16.mxu1 %v15935_v48  ;;  %18235 = vst [vmem:[#allocation26_spill] sm:$0xff] %v16001_v9 }
 0x296   : > { %12540 = vmatmul.mubr.msk.f32.gmra.mrb[34].mxu1 %vm597_vm0, %v18210_v35 }
 0x297   : > { %12542 = vmatprep.mubr.msk.f32.mxu1 %vm597_vm0, %v18211_v38  ;;  %13631 = vmatpush3.bf16.msra.mxu1 %v15935_v48  ;;  %v18234_v48 = vld [vmem:[#allocation61_spill] sm:$0xff] }
 0x298   : > { %13633 = vmatprep.subr.bf16.mxu1 %v15943_v21 }
 0x29a   : > { %12543 = vmatmul.mubr.msk.f32.gmra.mrb[36].mxu1 %vm597_vm0, %v18212_v55 }
 0x29b   : > { %12545 = vmatprep.mubr.msk.f32.mxu1 %vm597_vm0, %v18213_v59 }
 0x29e   : > { %12546 = vmatmul.mubr.msk.f32.gmra.mrb[38].mxu1 %vm597_vm0, %v18214_v15 }
 0x29f   : > { %12548 = vmatprep.mubr.msk.f32.mxu1 %vm597_vm0, %v18215_v20 }
 0x2a2   : > { %12549 = vmatmul.mubr.msk.f32.gmra.mrb[40].mxu1 %vm597_vm0, %v18216_v29 }
 0x2a3   : > { %12551 = vmatprep.mubr.msk.f32.mxu1 %vm597_vm0, %v18217_v33 }
 0x2a6   : > { %12552 = vmatmul.mubr.msk.f32.gmra.mrb[42].mxu1 %vm597_vm0, %v18218_v10 }
 0x2a7   : > { %12554 = vmatprep.mubr.msk.f32.mxu1 %vm597_vm0, %v18219_v47 }
 0x2aa   : > { %12555 = vmatmul.mubr.msk.f32.gmra.mrb[44].mxu1 %vm597_vm0, %v18220_v4 }
 0x2ab   : > { %12557 = vmatprep.mubr.msk.f32.mxu1 %vm597_vm0, %v18221_v6 }
 0x2ae   : > { %12558 = vmatmul.mubr.msk.f32.gmra.mrb[46].mxu1 %vm597_vm0, %v18222_v42 }
 0x2af   : > { %12560 = vmatprep.mubr.msk.f32.mxu1 %vm597_vm0, %v18223_v31 }
 0x2b2   : > { %12561 = vmatmul.mubr.msk.f32.gmra.mrb[48].mxu1 %vm597_vm0, %v18224_v34 }
 0x2b3   : > { %12563 = vmatprep.mubr.msk.f32.mxu1 %vm597_vm0, %v18225_v46 }
 0x2b6   : > { %12564 = vmatmul.mubr.msk.f32.gmra.mrb[50].mxu1 %vm597_vm0, %v18226_v50 }
 0x2b7   : > { %12566 = vmatprep.mubr.msk.f32.mxu1 %vm597_vm0, %v18227_v61 }
 0x2ba   : > { %12567 = vmatmul.mubr.msk.f32.gmra.mrb[52].mxu1 %vm597_vm0, %v18228_v0 }
 0x2bb   : > { %12569 = vmatprep.mubr.msk.f32.mxu1 %vm597_vm0, %v18229_v13 }
 0x2be   : > { %12570 = vmatmul.mubr.msk.f32.gmra.mrb[54].mxu1 %vm597_vm0, %v18230_v30 }
 0x2bf   : > { %12572 = vmatprep.mubr.msk.f32.mxu1 %vm597_vm0, %v18231_v41 }
 0x2c2   : > { %12573 = vmatmul.mubr.msk.f32.gmra.mrb[56].mxu1 %vm597_vm0, %v18232_v62  ;;  %v577_v62 = vld [vmem:[#allocation6 + $0xf8] sm:$0xff] }
 0x2c3   : > { %12575 = vmatprep.mubr.msk.f32.mxu1 %vm597_vm0, %v18233_v2  ;;  %v579_v2 = vld [vmem:[#allocation6 + $0x108] sm:$0xff] }
 0x2c6   : > { %12576 = vmatmul.mubr.msk.f32.gmra.mrb[58].mxu1 %vm597_vm0, %v15769_v53  ;;  %v16011_v53 = vpack.c.bf16 %v577_v62, %v576_v51  ;;  %v3539_v51 = vld [vmem:[#allocation2 + $0x198] sm:$0xff] }
 0x2c7   : > { %12578 = vmatprep.mubr.msk.f32.mxu1 %vm597_vm0, %v18234_v48  ;;  %v578_v48 = vld [vmem:[#allocation6 + $0x100] sm:$0xff] }
 0x2c8   : > { %18236 = vst [vmem:[#allocation27_spill] sm:$0xff] %v16011_v53  ;;  %v3921_v62 = vld [vmem:[#allocation2 + $0x171] sm:$0xff] }
 0x2ca   : > { %12579 = vmatmul.mubr.msk.f32.gmra.mrb[60].mxu1 %vm597_vm0, %v15777_v7 }
 0x2cb   : > { %12581 = vmatprep.mubr.msk.f32.mxu1 %vm597_vm0, %v16001_v9  ;;  %v16019_v9 = vpack.c.bf16 %v579_v2, %v578_v48  ;;  %v3920_v48 = vld [vmem:[#allocation2 + $0x169] sm:$0xff]  ;;  %v3924_v2 = vld [vmem:[#allocation2 + $0x199] sm:$0xff] }
 0x2cd   : > { %18237 = vst [vmem:[#allocation28_spill] sm:$0xff] %v16019_v9 }
 0x2ce   : > { %12582 = vmatmul.mubr.msk.f32.gmra.mrb[62].mxu1 %vm597_vm0, %v16005_v23 }
 0x2cf   : > { %12592 = vmatprep.mubr.msk.f32.mxu1 %vm597_vm0, %v15529_v11  ;;  %v3897_v11 = vld [vmem:[#allocation2 + $0x51] sm:$0xff] }
 0x2d2   : > { %12593 = vmatmul.mubr.msk.f32.vlgmr.msra.gmra.mrb[32].mxu1 %vm597_vm0, %v15535_v12  ;;  %v3898_v12 = vld [vmem:[#allocation2 + $0x61] sm:$0xff] }
 0x2d3   : > { %13635 = vmatpush3.bf16.msra.mxu1 %v15943_v21  ;;  %12595 = vmatprep.mubr.msk.f32.mxu1 %vm597_vm0, %v15539_v16  ;;  %v3899_v16 = vld [vmem:[#allocation2 + $0x69] sm:$0xff] }
 0x2d4   : > { %13637 = vmatprep.subr.bf16.mxu1 %v16011_v53 }
 0x2d6   : > { %12596 = vmatmul.mubr.msk.f32.gmra.mrb[34].mxu1 %vm597_vm0, %v15543_v19  ;;  %v3900_v19 = vld [vmem:[#allocation2 + $0x79] sm:$0xff] }
 0x2d7   : > { %12598 = vmatprep.mubr.msk.f32.mxu1 %vm597_vm0, %v15547_v22  ;;  %13639 = vmatpush3.bf16.msra.mxu1 %v16011_v53  ;;  %v3901_v22 = vld [vmem:[#allocation2 + $0x81] sm:$0xff]  ;;  %v6813_v53 = vld [vmem:[#allocation2 + $0xa] sm:$0xff] }
 0x2d8   : > { %13641 = vmatprep.subr.bf16.mxu1 %v16019_v9 }
 0x2da   : > { %12599 = vmatmul.mubr.msk.f32.gmra.mrb[36].mxu1 %vm597_vm0, %v15551_v25  ;;  %v3902_v25 = vld [vmem:[#allocation2 + $0x91] sm:$0xff] }
 0x2db   : > { %12601 = vmatprep.mubr.msk.f32.mxu1 %vm597_vm0, %v15556_v32  ;;  %v3903_v32 = vld [vmem:[#allocation2 + $0x99] sm:$0xff] }
 0x2de   : > { %12602 = vmatmul.mubr.msk.f32.gmra.mrb[38].mxu1 %vm597_vm0, %v15563_v54  ;;  %v3904_v54 = vld [vmem:[#allocation2 + $0xa9] sm:$0xff] }
 0x2df   : > { %12604 = vmatprep.mubr.msk.f32.mxu1 %vm597_vm0, %v15568_v57  ;;  %v3905_v57 = vld [vmem:[#allocation2 + $0xb1] sm:$0xff] }
 0x2e2   : > { %12605 = vmatmul.mubr.msk.f32.gmra.mrb[40].mxu1 %vm597_vm0, %v15573_v24  ;;  %v3906_v24 = vld [vmem:[#allocation2 + $0xc1] sm:$0xff] }
 0x2e3   : > { %12607 = vmatprep.mubr.msk.f32.mxu1 %vm597_vm0, %v15578_v45  ;;  %v3907_v45 = vld [vmem:[#allocation2 + $0xc9] sm:$0xff] }
 0x2e6   : > { %12608 = vmatmul.mubr.msk.f32.gmra.mrb[42].mxu1 %vm597_vm0, %v15583_v49  ;;  %v3908_v49 = vld [vmem:[#allocation2 + $0xd9] sm:$0xff] }
 0x2e7   : > { %12610 = vmatprep.mubr.msk.f32.mxu1 %vm597_vm0, %v15587_v26  ;;  %v3909_v26 = vld [vmem:[#allocation2 + $0xe1] sm:$0xff] }
 0x2ea   : > { %12611 = vmatmul.mubr.msk.f32.gmra.mrb[44].mxu1 %vm597_vm0, %v15591_v28  ;;  %v3910_v28 = vld [vmem:[#allocation2 + $0xf1] sm:$0xff] }
 0x2eb   : > { %12613 = vmatprep.mubr.msk.f32.mxu1 %vm597_vm0, %v15595_v36  ;;  %v3911_v36 = vld [vmem:[#allocation2 + $0xf9] sm:$0xff] }
 0x2ee   : > { %12614 = vmatmul.mubr.msk.f32.gmra.mrb[46].mxu1 %vm597_vm0, %v15599_v37  ;;  %v3912_v37 = vld [vmem:[#allocation2 + $0x109] sm:$0xff] }
 0x2ef   : > { %12616 = vmatprep.mubr.msk.f32.mxu1 %vm597_vm0, %v15603_v52  ;;  %v3913_v52 = vld [vmem:[#allocation2 + $0x111] sm:$0xff] }
 0x2f2   : > { %12617 = vmatmul.mubr.msk.f32.gmra.mrb[48].mxu1 %vm597_vm0, %v15607_v56  ;;  %v3914_v56 = vld [vmem:[#allocation2 + $0x121] sm:$0xff] }
 0x2f3   : > { %12619 = vmatprep.mubr.msk.f32.mxu1 %vm597_vm0, %v15611_v1  ;;  %v3915_v1 = vld [vmem:[#allocation2 + $0x129] sm:$0xff] }
 0x2f6   : > { %12620 = vmatmul.mubr.msk.f32.gmra.mrb[50].mxu1 %vm597_vm0, %v15615_v44  ;;  %v3916_v44 = vld [vmem:[#allocation2 + $0x139] sm:$0xff] }
 0x2f7   : > { %12622 = vmatprep.mubr.msk.f32.mxu1 %vm597_vm0, %v15619_v3  ;;  %v3917_v3 = vld [vmem:[#allocation2 + $0x141] sm:$0xff] }
 0x2fa   : > { %12623 = vmatmul.mubr.msk.f32.gmra.mrb[52].mxu1 %vm597_vm0, %v15623_v63  ;;  %v3896_v63 = vld [vmem:[#allocation2 + $0x49] sm:$0xff] }
 0x2fb   : > { %12625 = vmatprep.mubr.msk.f32.mxu1 %vm597_vm0, %v15627_v43  ;;  %v581_v43 = vld [vmem:[#allocation6 + $0x118] sm:$0xff] }
 0x2fe   : > { %12626 = vmatmul.mubr.msk.f32.gmra.mrb[54].mxu1 %vm597_vm0, %v15631_v40  ;;  %v3540_v40 = vld [vmem:[#allocation2 + $0x1a0] sm:$0xff] }
 0x2ff   : > { %12628 = vmatprep.mubr.msk.f32.mxu1 %vm597_vm0, %v15635_v39  ;;  %v580_v39 = vld [vmem:[#allocation6 + $0x110] sm:$0xff] }
 0x302   : > { %12629 = vmatmul.mubr.msk.f32.gmra.mrb[56].mxu1 %vm597_vm0, %v15639_v60  ;;  %v3894_v60 = vld [vmem:[#allocation2 + $0x31] sm:$0xff] }
 0x303   : > { %12631 = vmatprep.mubr.msk.f32.mxu1 %vm597_vm0, %v15643_v58  ;;  %v16080_v58 = vpack.c.bf16 %v581_v43, %v580_v39 }
 0x305   : > { %18238 = vst [vmem:[#allocation29_spill] sm:$0xff] %v16080_v58 }
 0x306   : > { %12632 = vmatmul.mubr.msk.f32.gmra.mrb[58].mxu1 %vm597_vm0, %v15647_v14  ;;  %v3895_v14 = vld [vmem:[#allocation2 + $0x39] sm:$0xff] }
 0x307   : > { %12634 = vmatprep.mubr.msk.f32.mxu1 %vm597_vm0, %v15849_v5  ;;  %v3918_v5 = vld [vmem:[#allocation2 + $0x151] sm:$0xff] }
 0x30a   : > { %12635 = vmatmul.mubr.msk.f32.gmra.mrb[60].mxu1 %vm597_vm0, %v15853_v8  ;;  %v3919_v8 = vld [vmem:[#allocation2 + $0x159] sm:$0xff] }
 0x30b   : > { %12637 = vmatprep.mubr.msk.f32.mxu1 %vm597_vm0, %v3539_v51  ;;  %v3925_v51 = vld [vmem:[#allocation2 + $0x1a1] sm:$0xff] }
 0x30e   : > { %12638 = vmatmul.mubr.msk.f32.gmra.mrb[62].mxu1 %vm597_vm0, %v3540_v40 }
 0x30f   : > { %12648 = vmatprep.mubr.msk.f32.mxu1 %vm597_vm0, %v3894_v60 }
 0x312   : > { %12649 = vmatmul.mubr.msk.f32.vlgmr.msra.gmra.mrb[32].mxu1 %vm597_vm0, %v3895_v14  ;;  %v590_v14 = vld [vmem:[%s17939_s13 + $0x10] sm:$0xff] }
 0x313   : > { %13643 = vmatpush3.bf16.msra.mxu1 %v16019_v9  ;;  %12651 = vmatprep.mubr.msk.f32.mxu1 %vm597_vm0, %v3896_v63  ;;  %v591_v63 = vld [vmem:[%s17939_s13 + $0x18] sm:$0xff] }
 0x314   : > { %13645 = vmatprep.subr.bf16.mxu1 %v16080_v58 }
 0x316   : > { %12652 = vmatmul.mubr.msk.f32.gmra.mrb[34].mxu1 %vm597_vm0, %v3897_v11 }
 0x317   : > { %12654 = vmatprep.mubr.msk.f32.mxu1 %vm597_vm0, %v3898_v12  ;;  %13647 = vmatpush3.bf16.msra.mxu1 %v16080_v58  ;;  %v6812_v58 = vld [vmem:[#allocation2 + $0x2] sm:$0xff] }
 0x31a   : > { %12655 = vmatmul.mubr.msk.f32.gmra.mrb[36].mxu1 %vm597_vm0, %v3899_v16 }
 0x31b   : > { %12657 = vmatprep.mubr.msk.f32.mxu1 %vm597_vm0, %v3900_v19 }
 0x31e   : > { %12658 = vmatmul.mubr.msk.f32.gmra.mrb[38].mxu1 %vm597_vm0, %v3901_v22 }
 0x31f   : > { %12660 = vmatprep.mubr.msk.f32.mxu1 %vm597_vm0, %v3902_v25 }
 0x322   : > { %12661 = vmatmul.mubr.msk.f32.gmra.mrb[40].mxu1 %vm597_vm0, %v3903_v32 }
 0x323   : > { %12663 = vmatprep.mubr.msk.f32.mxu1 %vm597_vm0, %v3904_v54 }
 0x326   : > { %12664 = vmatmul.mubr.msk.f32.gmra.mrb[42].mxu1 %vm597_vm0, %v3905_v57  ;;  %v16247_v57 = vpack.c.bf16 %v591_v63, %v590_v14 }
 0x327   : > { %12666 = vmatprep.mubr.msk.f32.mxu1 %vm597_vm0, %v3906_v24 }
 0x328   : > { %18249 = vst [vmem:[#allocation37_spill] sm:$0xff] %v16247_v57 }
 0x32a   : > { %12667 = vmatmul.mubr.msk.f32.gmra.mrb[44].mxu1 %vm597_vm0, %v3907_v45 }
 0x32b   : > { %12669 = vmatprep.mubr.msk.f32.mxu1 %vm597_vm0, %v3908_v49  ;;  %v592_v49 = vld [vmem:[%s17939_s13 + $0x20] sm:$0xff] }
 0x32e   : > { %12670 = vmatmul.mubr.msk.f32.gmra.mrb[46].mxu1 %vm597_vm0, %v3909_v26  ;;  %v593_v26 = vld [vmem:[%s17939_s13 + $0x28] sm:$0xff] }
 0x32f   : > { %12672 = vmatprep.mubr.msk.f32.mxu1 %vm597_vm0, %v3910_v28 }
 0x332   : > { %12673 = vmatmul.mubr.msk.f32.gmra.mrb[48].mxu1 %vm597_vm0, %v3911_v36 }
 0x333   : > { %12675 = vmatprep.mubr.msk.f32.mxu1 %vm597_vm0, %v3912_v37 }
 0x336   : > { %12676 = vmatmul.mubr.msk.f32.gmra.mrb[50].mxu1 %vm597_vm0, %v3913_v52 }
 0x337   : > { %12678 = vmatprep.mubr.msk.f32.mxu1 %vm597_vm0, %v3914_v56 }
 0x33a   : > { %12679 = vmatmul.mubr.msk.f32.gmra.mrb[52].mxu1 %vm597_vm0, %v3915_v1 }
 0x33b   : > { %12681 = vmatprep.mubr.msk.f32.mxu1 %vm597_vm0, %v3916_v44 }
 0x33e   : > { %12682 = vmatmul.mubr.msk.f32.gmra.mrb[54].mxu1 %vm597_vm0, %v3917_v3 }
 0x33f   : > { %12684 = vmatprep.mubr.msk.f32.mxu1 %vm597_vm0, %v3918_v5  ;;  %v16265_v5 = vpack.c.bf16 %v593_v26, %v592_v49 }
 0x341   : > { %18250 = vst [vmem:[#allocation38_spill] sm:$0xff] %v16265_v5 }
 0x342   : > { %12685 = vmatmul.mubr.msk.f32.gmra.mrb[56].mxu1 %vm597_vm0, %v3919_v8 }
 0x343   : > { %12687 = vmatprep.mubr.msk.f32.mxu1 %vm597_vm0, %v3920_v48 }
 0x346   : > { %12688 = vmatmul.mubr.msk.f32.gmra.mrb[58].mxu1 %vm597_vm0, %v3921_v62  ;;  %v594_v62 = vld [vmem:[%s17939_s13 + $0x30] sm:$0xff] }
 0x347   : > { %12690 = vmatprep.mubr.msk.f32.mxu1 %vm597_vm0, %v15925_v17  ;;  %v18239_v17 = vld [vmem:[#allocation58_spill] sm:$0xff] }
 0x34a   : > { %12691 = vmatmul.mubr.msk.f32.gmra.mrb[60].mxu1 %vm597_vm0, %v15929_v27  ;;  %v18240_v27 = vld [vmem:[#allocation59_spill] sm:$0xff] }
 0x34b   : > { %12693 = vmatprep.mubr.msk.f32.mxu1 %vm597_vm0, %v3924_v2  ;;  %v595_v2 = vld [vmem:[%s17939_s13 + $0x38] sm:$0xff] }
 0x34e   : > { %12694 = vmatmul.mubr.msk.f32.gmra.mrb[62].mxu1 %vm597_vm0, %v3925_v51 }
 0x34f   : > { %12704 = vmatprep.mubr.msk.f32.mxu1 %vm597_vm0, %v18208_v18  ;;  %v18241_v18 = vld [vmem:[#allocation60_spill] sm:$0xff] }
 0x352   : > { %12705 = vmatmul.mubr.msk.f32.vlgmr.msra.gmra.mrb[32].mxu1 %vm597_vm0, %v18210_v35  ;;  %v18242_v35 = vld [vmem:[#allocation61_spill] sm:$0xff] }
 0x353   : > { %12707 = vmatprep.mubr.msk.f32.mxu1 %vm597_vm0, %v18211_v38  ;;  %v18243_v38 = vld [vmem:[#allocation26_spill] sm:$0xff] }
 0x356   : > { %12708 = vmatmul.mubr.msk.f32.gmra.mrb[34].mxu1 %vm597_vm0, %v18212_v55  ;;  %v4309_v55 = vld [vmem:[#allocation2 + $0x19a] sm:$0xff] }
 0x357   : > { %12710 = vmatprep.mubr.msk.f32.mxu1 %vm597_vm0, %v18213_v59  ;;  %v4310_v59 = vld [vmem:[#allocation2 + $0x1a2] sm:$0xff] }
 0x35a   : > { %12711 = vmatmul.mubr.msk.f32.gmra.mrb[36].mxu1 %vm597_vm0, %v18214_v15  ;;  %v583_v15 = vld [vmem:[%s17937_s11] sm:$0xff] }
 0x35b   : > { %12713 = vmatprep.mubr.msk.f32.mxu1 %vm597_vm0, %v18215_v20 }
 0x35e   : > { %12714 = vmatmul.mubr.msk.f32.gmra.mrb[38].mxu1 %vm597_vm0, %v18216_v29  ;;  %v586_v29 = vld [vmem:[%s17937_s11 + $0x18] sm:$0xff] }
 0x35f   : > { %12716 = vmatprep.mubr.msk.f32.mxu1 %vm597_vm0, %v18217_v33 }
 0x362   : > { %12717 = vmatmul.mubr.msk.f32.gmra.mrb[40].mxu1 %vm597_vm0, %v18218_v10  ;;  %v588_v10 = vld [vmem:[%s17939_s13] sm:$0xff] }
 0x363   : > { %12719 = vmatprep.mubr.msk.f32.mxu1 %vm597_vm0, %v18219_v47  ;;  %v589_v47 = vld [vmem:[%s17939_s13 + $0x8] sm:$0xff] }
 0x366   : > { %12720 = vmatmul.mubr.msk.f32.gmra.mrb[42].mxu1 %vm597_vm0, %v18220_v4  ;;  %v16210_v4 = vpack.c.bf16 %v589_v47, %v588_v10 }
 0x367   : > { %12722 = vmatprep.mubr.msk.f32.mxu1 %vm597_vm0, %v18221_v6  ;;  %v16217_v6 = vld [vmem:[%s17934_s8] ss:$0 sm:$0xff] }
 0x368   : > { %18246 = vst [vmem:[#allocation36_spill] sm:$0xff] %v16210_v4 }
 0x36a   : > { %12723 = vmatmul.mubr.msk.f32.gmra.mrb[44].mxu1 %vm597_vm0, %v18222_v42  ;;  %v16222_v42 = vld [vmem:[%s18247_s15] ss:$0 sm:$0xff] }
 0x36b   : > { %12725 = vmatprep.mubr.msk.f32.mxu1 %vm597_vm0, %v18223_v31 }
 0x36e   : > { %12726 = vmatmul.mubr.msk.f32.gmra.mrb[46].mxu1 %vm597_vm0, %v18224_v34 }
 0x36f   : > { %12728 = vmatprep.mubr.msk.f32.mxu1 %vm597_vm0, %v18225_v46 }
 0x372   : > { %12729 = vmatmul.mubr.msk.f32.gmra.mrb[48].mxu1 %vm597_vm0, %v18226_v50  ;;  %v16228_v50 = vld [vmem:[%s18248_s26] ss:$0 sm:$0xff] }
 0x373   : > { %12731 = vmatprep.mubr.msk.f32.mxu1 %vm597_vm0, %v18227_v61 }
 0x376   : > { %12732 = vmatmul.mubr.msk.f32.gmra.mrb[50].mxu1 %vm597_vm0, %v18228_v0 }
 0x377   : > { %12734 = vmatprep.mubr.msk.f32.mxu1 %vm597_vm0, %v18229_v13 }
 0x37a   : > { %12735 = vmatmul.mubr.msk.f32.gmra.mrb[52].mxu1 %vm597_vm0, %v18230_v30 }
 0x37b   : > { %12737 = vmatprep.mubr.msk.f32.mxu1 %vm597_vm0, %v18231_v41 }
 0x37e   : > { %12738 = vmatmul.mubr.msk.f32.gmra.mrb[54].mxu1 %vm597_vm0, %v18239_v17 }
 0x37f   : > { %12740 = vmatprep.mubr.msk.f32.mxu1 %vm597_vm0, %v18240_v27 }
 0x382   : > { %12741 = vmatmul.mubr.msk.f32.gmra.mrb[56].mxu1 %vm597_vm0, %v18241_v18 }
 0x383   : > { %12743 = vmatprep.mubr.msk.f32.mxu1 %vm597_vm0, %v18242_v35 }
 0x386   : > { %12744 = vmatmul.mubr.msk.f32.gmra.mrb[58].mxu1 %vm597_vm0, %v15777_v7  ;;  %v584_v7 = vld [vmem:[%s17937_s11 + $0x8] sm:$0xff] }
 0x387   : > { %12746 = vmatprep.mubr.msk.f32.mxu1 %vm597_vm0, %v18243_v38  ;;  %v16186_v20 = vpack.c.bf16 %v584_v7, %v583_v15  ;;  %v16283_v15 = vpack.c.bf16 %v595_v2, %v594_v62 }
 0x389   : > { %18244 = vst [vmem:[#allocation30_spill] sm:$0xff] %v16186_v20  ;;  %13649 = vmatprep.subr.bf16.mxu0 %v16186_v20  ;;  %13784 = vmatprep.subr.bf16.mxu1 %v16186_v20  ;;  %18251 = vst [vmem:[#allocation39_spill] sm:$0xff] %v16283_v15 }
 0x38a   : > { %12747 = vmatmul.mubr.msk.f32.gmra.mrb[60].mxu1 %vm597_vm0, %v16005_v23  ;;  %13651 = vmatpush3.bf16.msra.mxu0 %v16186_v20  ;;  %v585_v23 = vld [vmem:[%s17937_s11 + $0x10] sm:$0xff] }
 0x38b   : > { %12749 = vmatprep.mubr.msk.f32.mxu1 %vm597_vm0, %v4309_v55  ;;  %13786 = vmatpush3.bf16.msra.mxu1 %v16186_v20  ;;  %v16198_v33 = vpack.c.bf16 %v586_v29, %v585_v23 }
 0x38d   : > { %18245 = vst [vmem:[#allocation35_spill] sm:$0xff] %v16198_v33  ;;  %13653 = vmatprep.subr.bf16.mxu0 %v16198_v33  ;;  %13785 = vmatprep.subr.bf16.mxu1 %v16198_v33 }
 0x38e   : > { %12750 = vmatmul.mubr.msk.f32.gmra.mrb[62].mxu1 %vm597_vm0, %v4310_v59  ;;  %13655 = vmatpush3.bf16.msra.mxu0 %v16198_v33 }
 0x38f   : > { %13787 = vmatpush3.bf16.msra.mxu1 %v16198_v33  ;;  %13657 = vmatprep.subr.bf16.mxu0 %v16210_v4 }
 0x390   : > { %13769 = vmatprep.subr.bf16.mxu1 %v16210_v4 }
 0x425   : > { %v12706_v31 = vpop.f32.mrb[32].mxu1 }
 0x426   : > { %v4671_v34 = vadd.f32 %v12706_v31, %v16217_v6  ;;  %v4473_v46 = vpop.f32.mrb[33].mxu1 }
 0x427   : > { %v4670_v61 = vadd.f32 %v16217_v6, %v4473_v46 }
 0x428   : > { %v4709_v0 = vmul.f32 %v16222_v42, %v4671_v34 }
 0x429   : > { %v4708_v13 = vmul.f32 %v16222_v42, %v4670_v61  ;;  %v12709_v30 = vpop.f32.mrb[34].mxu1 }
 0x42a   : > { %v4747_v41 = vadd.f32 %v16228_v50, %v4709_v0  ;;  %v4673_v40 = vadd.f32 %v12709_v30, %v16217_v6  ;;  %v4483_v39 = vpop.f32.mrb[35].mxu1 }
 0x42b   : > { %v4672_v43 = vadd.f32 %v16217_v6, %v4483_v39  ;;  %v4746_v60 = vadd.f32 %v16228_v50, %v4708_v13 }
 0x42c   : > { %v4711_v11 = vmul.f32 %v16222_v42, %v4673_v40  ;;  %v4779_v22 = vmax.f32 %v4747_v41, 0.0 }
 0x42d   : > { %v4710_v12 = vmul.f32 %v16222_v42, %v4672_v43  ;;  %v12712_v16 = vpop.f32.mrb[36].mxu1  ;;  %v4778_v19 = vmax.f32 %v4746_v60, 0.0 }
 0x42e   : > { %v4749_v25 = vadd.f32 %v16228_v50, %v4711_v11  ;;  %v4675_v32 = vadd.f32 %v12712_v16, %v16217_v6  ;;  %v4493_v54 = vpop.f32.mrb[37].mxu1 }
 0x42f   : > { %v4748_v24 = vadd.f32 %v16228_v50, %v4710_v12  ;;  %v4674_v45 = vadd.f32 %v16217_v6, %v4493_v54  ;;  %12760 = vmatprep.mubr.msk.f32.mxu0 %vm597_vm0, %v4778_v19  ;;  %v18252_v12 = vld [vmem:[#allocation15_spill] sm:$0xff] }
 0x430   : > { %v4713_v28 = vmul.f32 %v16222_v42, %v4675_v32  ;;  %12761 = vmatmul.mubr.msk.f32.vlgmr.msra.gmra.mrb[0].mxu0 %vm597_vm0, %v4779_v22  ;;  %v4781_v56 = vmax.f32 %v4749_v25, 0.0 }
 0x431   : > { %v4780_v36 = vmax.f32 %v4748_v24, 0.0  ;;  %v4712_v37 = vmul.f32 %v16222_v42, %v4674_v45  ;;  %13659 = vmatpush3.bf16.msra.mxu0 %v16210_v4  ;;  %v12715_v52 = vpop.f32.mrb[38].mxu1 }
 0x432   : > { %v4751_v1 = vadd.f32 %v16228_v50, %v4713_v28  ;;  %v4677_v44 = vadd.f32 %v12715_v52, %v16217_v6  ;;  %v4503_v3 = vpop.f32.mrb[39].mxu1  ;;  %13661 = vmatprep.subr.bf16.mxu0 %v16247_v57 }
 0x433   : > { %v4750_v8 = vadd.f32 %v16228_v50, %v4712_v37  ;;  %v4676_v48 = vadd.f32 %v16217_v6, %v4503_v3  ;;  %12763 = vmatprep.mubr.msk.f32.mxu0 %vm597_vm0, %v4780_v36 }
 0x434   : > { %v4715_v51 = vmul.f32 %v16222_v42, %v4677_v44  ;;  %12764 = vmatmul.mubr.msk.f32.gmra.mrb[2].mxu0 %vm597_vm0, %v4781_v56  ;;  %v4783_v35 = vmax.f32 %v4751_v1, 0.0 }
 0x435   : > { %v4782_v17 = vmax.f32 %v4750_v8, 0.0  ;;  %v4714_v27 = vmul.f32 %v16222_v42, %v4676_v48  ;;  %v12718_v18 = vpop.f32.mrb[40].mxu1  ;;  %13663 = vmatpush3.bf16.msra.mxu0 %v16247_v57 }
 0x436   : > { %v4753_v38 = vadd.f32 %v16228_v50, %v4715_v51  ;;  %v4679_v55 = vadd.f32 %v12718_v18, %v16217_v6  ;;  %v4513_v59 = vpop.f32.mrb[41].mxu1  ;;  %13665 = vmatprep.subr.bf16.mxu0 %v16265_v5 }
 0x437   : > { %v4752_v7 = vadd.f32 %v16228_v50, %v4714_v27  ;;  %v4678_v23 = vadd.f32 %v16217_v6, %v4513_v59  ;;  %12766 = vmatprep.mubr.msk.f32.mxu0 %vm597_vm0, %v4782_v17 }
 0x438   : > { %v4717_v29 = vmul.f32 %v16222_v42, %v4679_v55  ;;  %12767 = vmatmul.mubr.msk.f32.gmra.mrb[4].mxu0 %vm597_vm0, %v4783_v35  ;;  %v4785_v34 = vmax.f32 %v4753_v38, 0.0 }
 0x439   : > { %v4784_v10 = vmax.f32 %v4752_v7, 0.0  ;;  %v4716_v47 = vmul.f32 %v16222_v42, %v4678_v23  ;;  %v12721_v31 = vpop.f32.mrb[42].mxu1  ;;  %13667 = vmatpush3.bf16.msra.mxu0 %v16265_v5 }
 0x43a   : > { %v4755_v46 = vadd.f32 %v16228_v50, %v4717_v29  ;;  %v4681_v61 = vadd.f32 %v12721_v31, %v16217_v6  ;;  %v4523_v0 = vpop.f32.mrb[43].mxu1  ;;  %13669 = vmatprep.subr.bf16.mxu0 %v16283_v15 }
 0x43b   : > { %v4754_v13 = vadd.f32 %v16228_v50, %v4716_v47  ;;  %v4680_v30 = vadd.f32 %v16217_v6, %v4523_v0  ;;  %12769 = vmatprep.mubr.msk.f32.mxu0 %vm597_vm0, %v4784_v10 }
 0x43c   : > { %v4719_v41 = vmul.f32 %v16222_v42, %v4681_v61  ;;  %12770 = vmatmul.mubr.msk.f32.gmra.mrb[6].mxu0 %vm597_vm0, %v4785_v34  ;;  %v4787_v60 = vmax.f32 %v4755_v46, 0.0 }
 0x43d   : > { %v4786_v40 = vmax.f32 %v4754_v13, 0.0  ;;  %v4718_v39 = vmul.f32 %v16222_v42, %v4680_v30  ;;  %v12724_v43 = vpop.f32.mrb[44].mxu1  ;;  %13671 = vmatpush3.bf16.msra.mxu0 %v16283_v15 }
 0x43e   : > { %v4757_v14 = vadd.f32 %v16228_v50, %v4719_v41  ;;  %v4683_v63 = vadd.f32 %v12724_v43, %v16217_v6  ;;  %v4533_v11 = vpop.f32.mrb[45].mxu1  ;;  %13673 = vmatprep.subr.bf16.mxu0 %v18252_v12 }
 0x43f   : > { %v4756_v16 = vadd.f32 %v16228_v50, %v4718_v39  ;;  %v4682_v19 = vadd.f32 %v16217_v6, %v4533_v11  ;;  %12772 = vmatprep.mubr.msk.f32.mxu0 %vm597_vm0, %v4786_v40 }
 0x440   : > { %v4721_v22 = vmul.f32 %v16222_v42, %v4683_v63  ;;  %12773 = vmatmul.mubr.msk.f32.gmra.mrb[8].mxu0 %vm597_vm0, %v4787_v60  ;;  %v4789_v24 = vmax.f32 %v4757_v14, 0.0 }
 0x441   : > { %v4788_v25 = vmax.f32 %v4756_v16, 0.0  ;;  %v4720_v32 = vmul.f32 %v16222_v42, %v4682_v19  ;;  %v12727_v54 = vpop.f32.mrb[46].mxu1 }
 0x442   : > { %v4759_v45 = vadd.f32 %v16228_v50, %v4721_v22  ;;  %v4685_v49 = vadd.f32 %v12727_v54, %v16217_v6  ;;  %v4543_v26 = vpop.f32.mrb[47].mxu1 }
 0x443   : > { %v4758_v28 = vadd.f32 %v16228_v50, %v4720_v32  ;;  %v4684_v36 = vadd.f32 %v16217_v6, %v4543_v26  ;;  %12775 = vmatprep.mubr.msk.f32.mxu0 %vm597_vm0, %v4788_v25 }
 0x444   : > { %v4723_v37 = vmul.f32 %v16222_v42, %v4685_v49  ;;  %12776 = vmatmul.mubr.msk.f32.gmra.mrb[10].mxu0 %vm597_vm0, %v4789_v24  ;;  %v4791_v44 = vmax.f32 %v4759_v45, 0.0 }
 0x445   : > { %v4790_v52 = vmax.f32 %v4758_v28, 0.0  ;;  %v4722_v56 = vmul.f32 %v16222_v42, %v4684_v36  ;;  %v12730_v1 = vpop.f32.mrb[48].mxu1 }
 0x446   : > { %v4761_v3 = vadd.f32 %v16228_v50, %v4723_v37  ;;  %v4687_v8 = vadd.f32 %v12730_v1, %v16217_v6  ;;  %v4553_v48 = vpop.f32.mrb[49].mxu1 }
 0x447   : > { %v4760_v62 = vadd.f32 %v16228_v50, %v4722_v56  ;;  %v4686_v2 = vadd.f32 %v16217_v6, %v4553_v48  ;;  %12778 = vmatprep.mubr.msk.f32.mxu0 %vm597_vm0, %v4790_v52 }
 0x448   : > { %v4725_v51 = vmul.f32 %v16222_v42, %v4687_v8  ;;  %12779 = vmatmul.mubr.msk.f32.gmra.mrb[12].mxu0 %vm597_vm0, %v4791_v44  ;;  %v4793_v35 = vmax.f32 %v4761_v3, 0.0 }
 0x449   : > { %v4792_v17 = vmax.f32 %v4760_v62, 0.0  ;;  %v4724_v27 = vmul.f32 %v16222_v42, %v4686_v2  ;;  %v12733_v18 = vpop.f32.mrb[50].mxu1 }
 0x44a   : > { %v4763_v38 = vadd.f32 %v16228_v50, %v4725_v51  ;;  %v4689_v55 = vadd.f32 %v12733_v18, %v16217_v6  ;;  %v4563_v59 = vpop.f32.mrb[51].mxu1 }
 0x44b   : > { %v4762_v7 = vadd.f32 %v16228_v50, %v4724_v27  ;;  %v4688_v23 = vadd.f32 %v16217_v6, %v4563_v59  ;;  %12781 = vmatprep.mubr.msk.f32.mxu0 %vm597_vm0, %v4792_v17 }
 0x44c   : > { %v4727_v29 = vmul.f32 %v16222_v42, %v4689_v55  ;;  %12782 = vmatmul.mubr.msk.f32.gmra.mrb[14].mxu0 %vm597_vm0, %v4793_v35  ;;  %v4795_v34 = vmax.f32 %v4763_v38, 0.0 }
 0x44d   : > { %v4794_v10 = vmax.f32 %v4762_v7, 0.0  ;;  %v4726_v47 = vmul.f32 %v16222_v42, %v4688_v23  ;;  %v12736_v31 = vpop.f32.mrb[52].mxu1 }
 0x44e   : > { %v4765_v46 = vadd.f32 %v16228_v50, %v4727_v29  ;;  %v4691_v61 = vadd.f32 %v12736_v31, %v16217_v6  ;;  %v4573_v0 = vpop.f32.mrb[53].mxu1 }
 0x44f   : > { %v4764_v13 = vadd.f32 %v16228_v50, %v4726_v47  ;;  %v4690_v30 = vadd.f32 %v16217_v6, %v4573_v0  ;;  %12784 = vmatprep.mubr.msk.f32.mxu0 %vm597_vm0, %v4794_v10 }
 0x450   : > { %v4729_v41 = vmul.f32 %v16222_v42, %v4691_v61  ;;  %12785 = vmatmul.mubr.msk.f32.gmra.mrb[16].mxu0 %vm597_vm0, %v4795_v34  ;;  %v4797_v60 = vmax.f32 %v4765_v46, 0.0 }
 0x451   : > { %v4796_v40 = vmax.f32 %v4764_v13, 0.0  ;;  %v4728_v39 = vmul.f32 %v16222_v42, %v4690_v30  ;;  %v12739_v43 = vpop.f32.mrb[54].mxu1 }
 0x452   : > { %v4767_v14 = vadd.f32 %v16228_v50, %v4729_v41  ;;  %v4693_v63 = vadd.f32 %v12739_v43, %v16217_v6  ;;  %v4583_v11 = vpop.f32.mrb[55].mxu1 }
 0x453   : > { %v4766_v16 = vadd.f32 %v16228_v50, %v4728_v39  ;;  %v4692_v19 = vadd.f32 %v16217_v6, %v4583_v11  ;;  %12787 = vmatprep.mubr.msk.f32.mxu0 %vm597_vm0, %v4796_v40  ;;  %v14554_v11 = vld [vmem:[%s14995_s17] sm:$0xff] }
 0x454   : > { %v4731_v22 = vmul.f32 %v16222_v42, %v4693_v63  ;;  %12788 = vmatmul.mubr.msk.f32.gmra.mrb[18].mxu0 %vm597_vm0, %v4797_v60  ;;  %v4799_v24 = vmax.f32 %v4767_v14, 0.0 }
 0x455   : > { %v4798_v25 = vmax.f32 %v4766_v16, 0.0  ;;  %v4730_v32 = vmul.f32 %v16222_v42, %v4692_v19  ;;  %v12742_v54 = vpop.f32.mrb[56].mxu1  ;;  %v18253_v16 = vld [vmem:[#allocation16_spill] sm:$0xff]  ;;  %v14557_v19 = vld [vmem:[%s14995_s17 + $0x18] sm:$0xff] }
 0x456   : > { %v4769_v45 = vadd.f32 %v16228_v50, %v4731_v22  ;;  %v4695_v49 = vadd.f32 %v12742_v54, %v16217_v6  ;;  %v4593_v26 = vpop.f32.mrb[57].mxu1  ;;  %v14558_v22 = vld [vmem:[%s14995_s17 + $0x20] sm:$0xff]  ;;  %v18255_v54 = vld [vmem:[#allocation18_spill] sm:$0xff] }
 0x457   : > { %v4768_v28 = vadd.f32 %v16228_v50, %v4730_v32  ;;  %v4694_v36 = vadd.f32 %v16217_v6, %v4593_v26  ;;  %12790 = vmatprep.mubr.msk.f32.mxu0 %vm597_vm0, %v4798_v25  ;;  %v18254_v25 = vld [vmem:[#allocation17_spill] sm:$0xff]  ;;  %v14563_v26 = vld [vmem:[%s14995_s17 + $0x48] sm:$0xff] }
 0x458   : > { %v4733_v37 = vmul.f32 %v16222_v42, %v4695_v49  ;;  %12791 = vmatmul.mubr.msk.f32.gmra.mrb[20].mxu0 %vm597_vm0, %v4799_v24  ;;  %v4801_v44 = vmax.f32 %v4769_v45, 0.0  ;;  %v14560_v32 = vld [vmem:[%s14995_s17 + $0x30] sm:$0xff]  ;;  %v14561_v24 = vld [vmem:[%s14995_s17 + $0x38] sm:$0xff]  ;;  %v14562_v45 = vld [vmem:[%s14995_s17 + $0x40] sm:$0xff] }
 0x459   : > { %v4800_v52 = vmax.f32 %v4768_v28, 0.0  ;;  %v4732_v56 = vmul.f32 %v16222_v42, %v4694_v36  ;;  %v12745_v1 = vpop.f32.mrb[58].mxu1  ;;  %v18256_v49 = vld [vmem:[#allocation19_spill] sm:$0xff]  ;;  %v14564_v28 = vld [vmem:[%s14995_s17 + $0x50] sm:$0xff]  ;;  %v14565_v36 = vld [vmem:[%s14995_s17 + $0x58] sm:$0xff] }
 0x45a   : > { %v4771_v3 = vadd.f32 %v16228_v50, %v4733_v37  ;;  %v4697_v8 = vadd.f32 %v12745_v1, %v16217_v6  ;;  %v4603_v48 = vpop.f32.mrb[59].mxu1  ;;  %v14566_v37 = vld [vmem:[%s14995_s17 + $0x60] sm:$0xff]  ;;  %v14569_v1 = vld [vmem:[%s14995_s17 + $0x78] sm:$0xff] }
 0x45b   : > { %v4770_v62 = vadd.f32 %v16228_v50, %v4732_v56  ;;  %v4696_v2 = vadd.f32 %v16217_v6, %v4603_v48  ;;  %12793 = vmatprep.mubr.msk.f32.mxu0 %vm597_vm0, %v4800_v52  ;;  %v14567_v52 = vld [vmem:[%s14995_s17 + $0x68] sm:$0xff]  ;;  %v14568_v56 = vld [vmem:[%s14995_s17 + $0x70] sm:$0xff]  ;;  %v14573_v48 = vld [vmem:[%s14995_s17 + $0x98] sm:$0xff] }
 0x45c   : > { %v4735_v51 = vmul.f32 %v16222_v42, %v4697_v8  ;;  %12794 = vmatmul.mubr.msk.f32.gmra.mrb[22].mxu0 %vm597_vm0, %v4801_v44  ;;  %v4803_v35 = vmax.f32 %v4771_v3, 0.0  ;;  %v14570_v44 = vld [vmem:[%s14995_s17 + $0x80] sm:$0xff]  ;;  %v14571_v3 = vld [vmem:[%s14995_s17 + $0x88] sm:$0xff]  ;;  %v14572_v8 = vld [vmem:[%s14995_s17 + $0x90] sm:$0xff] }
 0x45d   : > { %v4802_v17 = vmax.f32 %v4770_v62, 0.0  ;;  %v4734_v27 = vmul.f32 %v16222_v42, %v4696_v2  ;;  %v12748_v18 = vpop.f32.mrb[60].mxu1  ;;  %v14574_v62 = vld [vmem:[%s14995_s17 + $0xa0] sm:$0xff]  ;;  %v14575_v2 = vld [vmem:[%s14995_s17 + $0xa8] sm:$0xff] }
 0x45e   : > { %v4773_v38 = vadd.f32 %v16228_v50, %v4735_v51  ;;  %v4699_v55 = vadd.f32 %v12748_v18, %v16217_v6  ;;  %v4613_v59 = vpop.f32.mrb[61].mxu1  ;;  %v14576_v51 = vld [vmem:[%s14995_s17 + $0xb0] sm:$0xff]  ;;  %v10846_v18 = vld [vmem:[%s14995_s17 + $0x100] sm:$0xff] }
 0x45f   : > { %v4772_v7 = vadd.f32 %v16228_v50, %v4734_v27  ;;  %v4698_v23 = vadd.f32 %v16217_v6, %v4613_v59  ;;  %12796 = vmatprep.mubr.msk.f32.mxu0 %vm597_vm0, %v4802_v17  ;;  %v14577_v17 = vld [vmem:[%s14995_s17 + $0xb8] sm:$0xff]  ;;  %v14578_v27 = vld [vmem:[%s14995_s17 + $0xc0] sm:$0xff] }
 0x460   : > { %v4737_v29 = vmul.f32 %v16222_v42, %v4699_v55  ;;  %12797 = vmatmul.mubr.msk.f32.gmra.mrb[24].mxu0 %vm597_vm0, %v4803_v35  ;;  %v4805_v34 = vmax.f32 %v4773_v38, 0.0  ;;  %v14579_v35 = vld [vmem:[%s14995_s17 + $0xc8] sm:$0xff]  ;;  %v14580_v38 = vld [vmem:[%s14995_s17 + $0xd0] sm:$0xff] }
 0x461   : > { %v4804_v10 = vmax.f32 %v4772_v7, 0.0  ;;  %v4736_v47 = vmul.f32 %v16222_v42, %v4698_v23  ;;  %v12751_v31 = vpop.f32.mrb[62].mxu1  ;;  %v16455_v55 = vld [vmem:[%s17927_s1] ss:$0 sm:$0xff]  ;;  %v10847_v7 = vld [vmem:[%s14995_s17 + $0x108] sm:$0xff] }
 0x462   : > { %v4775_v46 = vadd.f32 %v16228_v50, %v4737_v29  ;;  %v4701_v61 = vadd.f32 %v12751_v31, %v16217_v6  ;;  %v4623_v0 = vpop.f32.mrb[63].mxu1  ;;  %v5561_v59 = vmul.f32 %v16455_v55, %v10846_v18  ;;  %v10848_v23 = vld [vmem:[%s14995_s17 + $0x110] sm:$0xff]  ;;  %v14582_v29 = vld [vmem:[%s14995_s17 + $0xd8] sm:$0xff] }
 0x463   : > { %v4774_v13 = vadd.f32 %v16228_v50, %v4736_v47  ;;  %v4700_v30 = vadd.f32 %v16217_v6, %v4623_v0  ;;  %12799 = vmatprep.mubr.msk.f32.mxu0 %vm597_vm0, %v4804_v10  ;;  %v5562_v10 = vmul.f32 %v16455_v55, %v10847_v7  ;;  %v14583_v47 = vld [vmem:[%s14995_s17 + $0xe0] sm:$0xff]  ;;  %v16468_v31 = vld [vmem:[%s17928_s2] ss:$0 sm:$0xff] }
 0x464   : > { %v4739_v41 = vmul.f32 %v16222_v42, %v4701_v61  ;;  %12800 = vmatmul.mubr.msk.f32.gmra.mrb[26].mxu0 %vm597_vm0, %v4805_v34  ;;  %v4807_v43 = vmax.f32 %v4775_v46, 0.0  ;;  %v5593_v34 = vadd.f32 %v16468_v31, %v5561_v59  ;;  %v5563_v46 = vmul.f32 %v16455_v55, %v10848_v23  ;;  %v10849_v61 = vld [vmem:[%s14995_s17 + $0x118] sm:$0xff]  ;;  %v10850_v0 = vld [vmem:[%s14995_s17 + $0x120] sm:$0xff]  ;;  %v10859_v59 = vld [vmem:[%s14995_s17 + $0x168] sm:$0xff] }
 0x465   : > { %v4806_v40 = vmax.f32 %v4774_v13, 0.0  ;;  %v4738_v39 = vmul.f32 %v16222_v42, %v4700_v30  ;;  %v14555_v42 = vld [vmem:[%s14995_s17 + $0x8] sm:$0xff]  ;;  %v5594_v30 = vadd.f32 %v16468_v31, %v5562_v10  ;;  %v10860_v7 = vld [vmem:[%s14995_s17 + $0x170] sm:$0xff]  ;;  %v5574_v10 = vmul.f32 %v16455_v55, %v10859_v59 }
 0x466   : > { %v4777_v60 = vadd.f32 %v16228_v50, %v4739_v41  ;;  %v14585_v13 = vld [vmem:[%s14995_s17 + $0xe8] sm:$0xff]  ;;  %v5564_v41 = vmul.f32 %v16455_v55, %v10849_v61  ;;  %v10861_v61 = vld [vmem:[%s14995_s17 + $0x178] sm:$0xff] }
 0x467   : > { %v4776_v14 = vadd.f32 %v16228_v50, %v4738_v39  ;;  %12802 = vmatprep.mubr.msk.f32.mxu0 %vm597_vm0, %v4806_v40  ;;  %v14556_v50 = vld [vmem:[%s14995_s17 + $0x10] sm:$0xff]  ;;  %v5625_v39 = vmax.f32 %v5593_v34, 0.0 }
 0x468   : > { %12803 = vmatmul.mubr.msk.f32.gmra.mrb[28].mxu0 %vm597_vm0, %v4807_v43  ;;  %v4809_v63 = vmax.f32 %v4777_v60, 0.0  ;;  %v14586_v40 = vld [vmem:[%s14995_s17 + $0xf0] sm:$0xff]  ;;  %v5595_v43 = vadd.f32 %v16468_v31, %v5563_v46  ;;  %v5565_v60 = vmul.f32 %v16455_v55, %v10850_v0  ;;  %v5575_v46 = vmul.f32 %v16455_v55, %v10860_v7  ;;  %v10862_v0 = vld [vmem:[%s14995_s17 + $0x180] sm:$0xff] }
 0x469   : > { %v4808_v6 = vmax.f32 %v4776_v14, 0.0  ;;  %v10851_v14 = vld [vmem:[%s14995_s17 + $0x128] sm:$0xff] }
 0x46b   : > { %12805 = vmatprep.mubr.msk.f32.mxu0 %vm597_vm0, %v4808_v6  ;;  %v10852_v6 = vld [vmem:[%s14995_s17 + $0x130] sm:$0xff] }
 0x46c   : > { %12806 = vmatmul.mubr.msk.f32.gmra.mrb[30].mxu0 %vm597_vm0, %v4809_v63  ;;  %v14587_v63 = vld [vmem:[%s14995_s17 + $0xf8] sm:$0xff] }
 0x46d   : > { %12824 = vmatprep.mubr.msk.f32.mxu0 %vm799_vm2, %v14554_v11  ;;  %v5626_v11 = vmax.f32 %v5594_v30, 0.0  ;;  %v5606_v30 = vadd.f32 %v16468_v31, %v5574_v10 }
 0x470   : > { %12825 = vmatmul.mubr.msk.f32.vlgmr.msra.gmra.mrb[0].mxu0 %vm799_vm2, %v14555_v42  ;;  %v5596_v42 = vadd.f32 %v16468_v31, %v5564_v41  ;;  %v5576_v41 = vmul.f32 %v16455_v55, %v10861_v61 }
 0x471   : > { %13675 = vmatpush3.bf16.msra.mxu0 %v18252_v12  ;;  %12827 = vmatprep.mubr.msk.f32.mxu0 %vm799_vm2, %v14556_v50  ;;  %v14559_v12 = vld [vmem:[%s14995_s17 + $0x28] sm:$0xff]  ;;  %v5566_v50 = vmul.f32 %v16455_v55, %v10851_v14  ;;  %v10864_v14 = vld [vmem:[%s14995_s17 + $0x190] sm:$0xff] }
 0x472   : > { %13677 = vmatprep.subr.bf16.mxu0 %v18253_v16 }
 0x474   : > { %12828 = vmatmul.mubr.msk.f32.gmra.mrb[2].mxu0 %vm799_vm2, %v14557_v19  ;;  %v5597_v19 = vadd.f32 %v16468_v31, %v5565_v60  ;;  %v10863_v60 = vld [vmem:[%s14995_s17 + $0x188] sm:$0xff] }
 0x475   : > { %12830 = vmatprep.mubr.msk.f32.mxu0 %vm799_vm2, %v14558_v22  ;;  %13679 = vmatpush3.bf16.msra.mxu0 %v18253_v16  ;;  %v5627_v16 = vmax.f32 %v5595_v43, 0.0  ;;  %v5567_v22 = vmul.f32 %v16455_v55, %v10852_v6  ;;  %v5577_v43 = vmul.f32 %v16455_v55, %v10862_v0  ;;  %v5638_v6 = vmax.f32 %v5606_v30, 0.0 }
 0x476   : > { %13681 = vmatprep.subr.bf16.mxu0 %v18254_v25 }
 0x478   : > { %12831 = vmatmul.mubr.msk.f32.gmra.mrb[4].mxu0 %vm799_vm2, %v14559_v12  ;;  %v10854_v12 = vld [vmem:[%s14995_s17 + $0x140] sm:$0xff] }
 0x479   : > { %12833 = vmatprep.mubr.msk.f32.mxu0 %vm799_vm2, %v14560_v32  ;;  %13683 = vmatpush3.bf16.msra.mxu0 %v18254_v25  ;;  %v10853_v25 = vld [vmem:[%s14995_s17 + $0x138] sm:$0xff]  ;;  %v5628_v32 = vmax.f32 %v5596_v42, 0.0 }
 0x47a   : > { %13685 = vmatprep.subr.bf16.mxu0 %v18255_v54 }
 0x47c   : > { %12834 = vmatmul.mubr.msk.f32.gmra.mrb[6].mxu0 %vm799_vm2, %v14561_v24  ;;  %v5568_v24 = vmul.f32 %v16455_v55, %v10853_v25 }
 0x47d   : > { %12836 = vmatprep.mubr.msk.f32.mxu0 %vm799_vm2, %v14562_v45  ;;  %13687 = vmatpush3.bf16.msra.mxu0 %v18255_v54  ;;  %v5598_v54 = vadd.f32 %v16468_v31, %v5566_v50  ;;  %v5629_v45 = vmax.f32 %v5597_v19, 0.0  ;;  %v5609_v50 = vadd.f32 %v16468_v31, %v5577_v43  ;;  %v10865_v19 = vld [vmem:[%s14995_s17 + $0x198] sm:$0xff] }
 0x47e   : > { %13689 = vmatprep.subr.bf16.mxu0 %v18256_v49 }
 0x480   : > { %12837 = vmatmul.mubr.msk.f32.gmra.mrb[8].mxu0 %vm799_vm2, %v14563_v26  ;;  %v5599_v26 = vadd.f32 %v16468_v31, %v5567_v22  ;;  %v10866_v22 = vld [vmem:[%s14995_s17 + $0x1a0] sm:$0xff] }
 0x481   : > { %12839 = vmatprep.mubr.msk.f32.mxu0 %vm799_vm2, %v14564_v28  ;;  %v5569_v28 = vmul.f32 %v16455_v55, %v10854_v12 }
 0x484   : > { %12840 = vmatmul.mubr.msk.f32.gmra.mrb[10].mxu0 %vm799_vm2, %v14565_v36  ;;  %v10855_v36 = vld [vmem:[%s14995_s17 + $0x148] sm:$0xff] }
 0x485   : > { %12842 = vmatprep.mubr.msk.f32.mxu0 %vm799_vm2, %v14566_v37  ;;  %v10856_v37 = vld [vmem:[%s14995_s17 + $0x150] sm:$0xff] }
 0x488   : > { %12843 = vmatmul.mubr.msk.f32.gmra.mrb[12].mxu0 %vm799_vm2, %v14567_v52  ;;  %v18257_v52 = vld [vmem:[#allocation20_spill] sm:$0xff] }
 0x489   : > { %12845 = vmatprep.mubr.msk.f32.mxu0 %vm799_vm2, %v14568_v56  ;;  %v5630_v56 = vmax.f32 %v5598_v54, 0.0  ;;  %v5641_v54 = vmax.f32 %v5609_v50, 0.0 }
 0x48c   : > { %12846 = vmatmul.mubr.msk.f32.gmra.mrb[14].mxu0 %vm799_vm2, %v14569_v1  ;;  %v5600_v1 = vadd.f32 %v16468_v31, %v5568_v24 }
 0x48d   : > { %12848 = vmatprep.mubr.msk.f32.mxu0 %vm799_vm2, %v14570_v44  ;;  %v5570_v44 = vmul.f32 %v16455_v55, %v10855_v36 }
 0x490   : > { %12849 = vmatmul.mubr.msk.f32.gmra.mrb[16].mxu0 %vm799_vm2, %v14571_v3  ;;  %v5631_v3 = vmax.f32 %v5599_v26, 0.0  ;;  %v10867_v26 = vld [vmem:[%s14995_s17 + $0x1a8] sm:$0xff] }
 0x491   : > { %12851 = vmatprep.mubr.msk.f32.mxu0 %vm799_vm2, %v14572_v8  ;;  %v5601_v8 = vadd.f32 %v16468_v31, %v5569_v28  ;;  %v10868_v28 = vld [vmem:[%s14995_s17 + $0x1b0] sm:$0xff] }
 0x493   : > { %v5633_v18 = vmax.f32 %v5601_v8, 0.0  ;;  %v10870_v8 = vld [vmem:[%s14995_s17 + $0x1c0] sm:$0xff] }
 0x494   : > { %12852 = vmatmul.mubr.msk.f32.gmra.mrb[18].mxu0 %vm799_vm2, %v14573_v48  ;;  %v5571_v48 = vmul.f32 %v16455_v55, %v10856_v37 }
 0x495   : > { %12854 = vmatprep.mubr.msk.f32.mxu0 %vm799_vm2, %v14574_v62  ;;  %v10858_v62 = vld [vmem:[%s14995_s17 + $0x160] sm:$0xff] }
 0x498   : > { %12855 = vmatmul.mubr.msk.f32.gmra.mrb[20].mxu0 %vm799_vm2, %v14575_v2  ;;  %v18258_v2 = vld [vmem:[#allocation21_spill] sm:$0xff] }
 0x499   : > { %12857 = vmatprep.mubr.msk.f32.mxu0 %vm799_vm2, %v14576_v51  ;;  %v5632_v51 = vmax.f32 %v5600_v1, 0.0 }
 0x49c   : > { %12858 = vmatmul.mubr.msk.f32.gmra.mrb[22].mxu0 %vm799_vm2, %v14577_v17  ;;  %v5602_v17 = vadd.f32 %v16468_v31, %v5570_v44  ;;  %v5583_v44 = vmul.f32 %v16455_v55, %v10868_v28  ;;  %v10780_v28 = vld [vmem:[%s18261_s12] ss:$0 sm:$0xff] }
 0x49d   : > { %12860 = vmatprep.mubr.msk.f32.mxu0 %vm799_vm2, %v14578_v27 }
 0x49e   : > { %v5634_v23 = vmax.f32 %v5602_v17, 0.0  ;;  %v5615_v17 = vadd.f32 %v16468_v31, %v5583_v44 }
 0x4a0   : > { %12861 = vmatmul.mubr.msk.f32.gmra.mrb[24].mxu0 %vm799_vm2, %v14579_v35  ;;  %v5603_v35 = vadd.f32 %v16468_v31, %v5571_v48 }
 0x4a1   : > { %12863 = vmatprep.mubr.msk.f32.mxu0 %vm799_vm2, %v14580_v38  ;;  %v5573_v38 = vmul.f32 %v16455_v55, %v10858_v62 }
 0x4a3   : > { %v5605_v34 = vadd.f32 %v16468_v31, %v5573_v38 }
 0x4a4   : > { %12864 = vmatmul.mubr.msk.f32.gmra.mrb[26].mxu0 %vm799_vm2, %v14582_v29 }
 0x4a5   : > { %12866 = vmatprep.mubr.msk.f32.mxu0 %vm799_vm2, %v14583_v47  ;;  %v5635_v47 = vmax.f32 %v5603_v35, 0.0  ;;  %v10872_v35 = vld [vmem:[%s14995_s17 + $0x1d0] sm:$0xff] }
 0x4a6   : > { %v5587_v10 = vmul.f32 %v16455_v55, %v10872_v35 }
 0x4a8   : > { %12867 = vmatmul.mubr.msk.f32.gmra.mrb[28].mxu0 %vm799_vm2, %v14585_v13  ;;  %v5619_v30 = vadd.f32 %v16468_v31, %v5587_v10 }
 0x4a9   : > { %12869 = vmatprep.mubr.msk.f32.mxu0 %vm799_vm2, %v14586_v40  ;;  %v5637_v40 = vmax.f32 %v5605_v34, 0.0  ;;  %v10874_v34 = vld [vmem:[%s14995_s17 + $0x1e0] sm:$0xff] }
 0x4ac   : > { %12870 = vmatmul.mubr.msk.f32.gmra.mrb[30].mxu0 %vm799_vm2, %v14587_v63  ;;  %v5608_v63 = vadd.f32 %v16468_v31, %v5576_v41  ;;  %v5589_v41 = vmul.f32 %v16455_v55, %v10874_v34 }
 0x4ad   : > { %12888 = vmatprep.mubr.msk.f32.mxu0 %vm799_vm2, %v5625_v39  ;;  %v5607_v39 = vadd.f32 %v16468_v31, %v5575_v46 }
 0x4ae   : > { %v5640_v25 = vmax.f32 %v5608_v63, 0.0 }
 0x4af   : > { %v5639_v42 = vmax.f32 %v5607_v39, 0.0 }
 0x4b0   : > { %12889 = vmatmul.mubr.msk.f32.vlgmr.msra.gmra.mrb[32].mxu0 %vm799_vm2, %v5626_v11  ;;  %v5578_v11 = vmul.f32 %v16455_v55, %v10863_v60 }
 0x4b1   : > { %12891 = vmatprep.mubr.msk.f32.mxu0 %vm799_vm2, %v5627_v16  ;;  %13691 = vmatpush3.bf16.msra.mxu0 %v18256_v49  ;;  %v10857_v49 = vld [vmem:[%s14995_s17 + $0x158] sm:$0xff]  ;;  %v5579_v16 = vmul.f32 %v16455_v55, %v10864_v14  ;;  %v5651_v14 = vmax.f32 %v5619_v30, 0.0 }
 0x4b2   : > { %13693 = vmatprep.subr.bf16.mxu0 %v18257_v52  ;;  %v5572_v27 = vmul.f32 %v16455_v55, %v10857_v49  ;;  %v5610_v12 = vadd.f32 %v16468_v31, %v5578_v11 }
 0x4b3   : > { %v5611_v24 = vadd.f32 %v16468_v31, %v5579_v16  ;;  %v10876_v16 = vld [vmem:[%s14995_s17 + $0x1f0] sm:$0xff] }
 0x4b4   : > { %12892 = vmatmul.mubr.msk.f32.gmra.mrb[34].mxu0 %vm799_vm2, %v5628_v32  ;;  %v5604_v29 = vadd.f32 %v16468_v31, %v5572_v27  ;;  %v5580_v32 = vmul.f32 %v16455_v55, %v10865_v19  ;;  %v5642_v36 = vmax.f32 %v5610_v12, 0.0  ;;  %v5585_v27 = vmul.f32 %v16455_v55, %v10870_v8 }
 0x4b5   : > { %12894 = vmatprep.mubr.msk.f32.mxu0 %vm799_vm2, %v5629_v45  ;;  %13695 = vmatpush3.bf16.msra.mxu0 %v18257_v52  ;;  %v5581_v45 = vmul.f32 %v16455_v55, %v10866_v22  ;;  %v5582_v52 = vmul.f32 %v16455_v55, %v10867_v26  ;;  %v5591_v19 = vmul.f32 %v16455_v55, %v10876_v16  ;;  %v10877_v22 = vld [vmem:[%s14995_s17 + $0x1f8] sm:$0xff] }
 0x4b6   : > { %13697 = vmatprep.subr.bf16.mxu0 %v18258_v2  ;;  %v5636_v13 = vmax.f32 %v5604_v29, 0.0  ;;  %v5612_v37 = vadd.f32 %v16468_v31, %v5580_v32  ;;  %v5617_v29 = vadd.f32 %v16468_v31, %v5585_v27  ;;  %v6139_v26 = vld [vmem:[#allocation2 + $0x9] sm:$0xff] }
 0x4b7   : > { %v5613_v1 = vadd.f32 %v16468_v31, %v5581_v45  ;;  %v5614_v49 = vadd.f32 %v16468_v31, %v5582_v52  ;;  %v5623_v12 = vadd.f32 %v16468_v31, %v5591_v19  ;;  %v6138_v45 = vld [vmem:[#allocation2 + $0x1] sm:$0xff] }
 0x4b8   : > { %12895 = vmatmul.mubr.msk.f32.gmra.mrb[36].mxu0 %vm799_vm2, %v5630_v56  ;;  %v5643_v56 = vmax.f32 %v5611_v24, 0.0  ;;  %v5644_v48 = vmax.f32 %v5612_v37, 0.0 }
 0x4b9   : > { %12897 = vmatprep.mubr.msk.f32.mxu0 %vm799_vm2, %v5631_v3  ;;  %v10869_v3 = vld [vmem:[%s14995_s17 + $0x1b8] sm:$0xff]  ;;  %v5646_v38 = vmax.f32 %v5614_v49, 0.0 }
 0x4ba   : > { %v5584_v62 = vmul.f32 %v16455_v55, %v10869_v3 }
 0x4bc   : > { %12898 = vmatmul.mubr.msk.f32.gmra.mrb[38].mxu0 %vm799_vm2, %v5632_v51  ;;  %v5645_v51 = vmax.f32 %v5613_v1, 0.0  ;;  %v5616_v59 = vadd.f32 %v16468_v31, %v5584_v62 }
 0x4bd   : > { %12900 = vmatprep.mubr.msk.f32.mxu0 %vm799_vm2, %v5633_v18  ;;  %v10871_v18 = vld [vmem:[%s14995_s17 + $0x1c8] sm:$0xff] }
 0x4be   : > { %v5586_v7 = vmul.f32 %v16455_v55, %v10871_v18  ;;  %v5648_v46 = vmax.f32 %v5616_v59, 0.0 }
 0x4c0   : > { %12901 = vmatmul.mubr.msk.f32.gmra.mrb[40].mxu0 %vm799_vm2, %v5634_v23  ;;  %v5647_v23 = vmax.f32 %v5615_v17, 0.0  ;;  %v5618_v61 = vadd.f32 %v16468_v31, %v5586_v7 }
 0x4c1   : > { %12903 = vmatprep.mubr.msk.f32.mxu0 %vm799_vm2, %v5635_v47  ;;  %v10873_v47 = vld [vmem:[%s14995_s17 + $0x1d8] sm:$0xff] }
 0x4c2   : > { %v5588_v0 = vmul.f32 %v16455_v55, %v10873_v47  ;;  %v5650_v39 = vmax.f32 %v5618_v61, 0.0 }
 0x4c4   : > { %12904 = vmatmul.mubr.msk.f32.gmra.mrb[42].mxu0 %vm799_vm2, %v5636_v13  ;;  %v5649_v13 = vmax.f32 %v5617_v29, 0.0  ;;  %v5620_v43 = vadd.f32 %v16468_v31, %v5588_v0 }
 0x4c5   : > { %12906 = vmatprep.mubr.msk.f32.mxu0 %vm799_vm2, %v5637_v40  ;;  %v10875_v40 = vld [vmem:[%s14995_s17 + $0x1e8] sm:$0xff] }
 0x4c6   : > { %v5590_v60 = vmul.f32 %v16455_v55, %v10875_v40  ;;  %v5652_v63 = vmax.f32 %v5620_v43, 0.0 }
 0x4c8   : > { %12907 = vmatmul.mubr.msk.f32.gmra.mrb[44].mxu0 %vm799_vm2, %v5638_v6  ;;  %v5621_v6 = vadd.f32 %v16468_v31, %v5589_v41  ;;  %v5622_v11 = vadd.f32 %v16468_v31, %v5590_v60 }
 0x4c9   : > { %12909 = vmatprep.mubr.msk.f32.mxu0 %vm799_vm2, %v5639_v42 }
 0x4ca   : > { %v5653_v42 = vmax.f32 %v5621_v6, 0.0  ;;  %v5654_v50 = vmax.f32 %v5622_v11, 0.0 }
 0x4cc   : > { %12910 = vmatmul.mubr.msk.f32.gmra.mrb[46].mxu0 %vm799_vm2, %v5640_v25  ;;  %v5592_v25 = vmul.f32 %v16455_v55, %v10877_v22  ;;  %v18259_v55 = vld [vmem:[#allocation22_spill] sm:$0xff] }
 0x4cd   : > { %12912 = vmatprep.mubr.msk.f32.mxu0 %vm799_vm2, %v5641_v54  ;;  %v5655_v54 = vmax.f32 %v5623_v12, 0.0 }
 0x4ce   : > { %v5624_v32 = vadd.f32 %v16468_v31, %v5592_v25  ;;  %v18260_v31 = vld [vmem:[#allocation23_spill] sm:$0xff] }
 0x4d0   : > { %12913 = vmatmul.mubr.msk.f32.gmra.mrb[48].mxu0 %vm799_vm2, %v5642_v36  ;;  %v5656_v24 = vmax.f32 %v5624_v32, 0.0  ;;  %v10813_v36 = vld [vmem:[%s18262_s18] ss:$0 sm:$0xff]  ;;  %s14684_s18 = scalar_lea.vmem %s17879_s29, 8192 }
 0x4d1   : > { %12915 = vmatprep.mubr.msk.f32.mxu0 %vm799_vm2, %v5643_v56  ;;  %v16615_v56 = vadd.f32 %v10813_v36, %v10780_v28  ;;  %p14685_p4 = scmp.ne.s32.totalorder %s17879_s29, %s14684_s18  ;;  %p14692_p13 = scmp.lt.s32.totalorder %s14690_s27, %s14684_s18 }
 0x4d3   : > { %18263 = vst [vmem:[#allocation40_spill] sm:$0xff] %v16615_v56  ;;  %p14686_p6 = pnand %p14685_p4, %p14938_p12  ;;  %p14693_p3 = por %p14692_p13, %p14691_p10 }
 0x4d4   : > { %12916 = vmatmul.mubr.msk.f32.gmra.mrb[50].mxu0 %vm799_vm2, %v5644_v48 }
 0x4d5   : > { %12918 = vmatprep.mubr.msk.f32.mxu0 %vm799_vm2, %v5645_v51  ;;  %p14687_p8 = pneg %p14686_p6 }
 0x4d7   : > { %p14694_p7 = pnand %p14693_p3, %p14687_p8 }
 0x4d8   : > { %12919 = vmatmul.mubr.msk.f32.gmra.mrb[52].mxu0 %vm799_vm2, %v5646_v38 }
 0x4d9   : > { %12921 = vmatprep.mubr.msk.f32.mxu0 %vm799_vm2, %v5647_v23 }
 0x4dc   : > { %12922 = vmatmul.mubr.msk.f32.gmra.mrb[54].mxu0 %vm799_vm2, %v5648_v46 }
 0x4dd   : > { %12924 = vmatprep.mubr.msk.f32.mxu0 %vm799_vm2, %v5649_v13 }
 0x4e0   : > { %12925 = vmatmul.mubr.msk.f32.gmra.mrb[56].mxu0 %vm799_vm2, %v5650_v39 }
 0x4e1   : > { %12927 = vmatprep.mubr.msk.f32.mxu0 %vm799_vm2, %v5651_v14 }
 0x4e4   : > { %12928 = vmatmul.mubr.msk.f32.gmra.mrb[58].mxu0 %vm799_vm2, %v5652_v63 }
 0x4e5   : > { %12930 = vmatprep.mubr.msk.f32.mxu0 %vm799_vm2, %v5653_v42 }
 0x4e8   : > { %12931 = vmatmul.mubr.msk.f32.gmra.mrb[60].mxu0 %vm799_vm2, %v5654_v50 }
 0x4e9   : > { %12933 = vmatprep.mubr.msk.f32.mxu0 %vm799_vm2, %v5655_v54 }
 0x4ec   : > { %12934 = vmatmul.mubr.msk.f32.gmra.mrb[62].mxu0 %vm799_vm2, %v5656_v24 }
 0x4ed   : > { %12944 = vmatprep.mubr.msk.f32.mxu0 %vm597_vm0, %v6138_v45 }
 0x4f0   : > { %12945 = vmatmul.mubr.msk.f32.vlgmr.msra.gmra.mrb[64].mxu0 %vm597_vm0, %v6139_v26 }
 0x4f1   : > { %13699 = vmatpush3.bf16.msra.mxu0 %v18258_v2 }
 0x4f2   : > { %13701 = vmatprep.subr.bf16.mxu0 %v18259_v55 }
 0x4f5   : > { %13703 = vmatpush3.bf16.msra.mxu0 %v18259_v55 }
 0x4f6   : > { %13705 = vmatprep.subr.bf16.mxu0 %v18260_v31 }
 0x543   : > { %v12826_v37 = vpop.f32.mrb[0].mxu0 }
 0x544   : > { %v13788_v52 = vadd.f32 %v12826_v37, %v10780_v28  ;;  %v5305_v1 = vpop.f32.mrb[1].mxu0 }
 0x545   : > { %v13790_v2 = vadd.f32 %v10780_v28, %v5305_v1 }
 0x546   : > { %v13789_v44 = vadd.f32 %v13788_v52, %v10813_v36 }
 0x547   : > { %v13791_v3 = vadd.f32 %v13790_v2, %v10813_v36  ;;  %v12829_v8 = vpop.f32.mrb[2].mxu0 }
 0x548   : > { %5497 = vst [vmem:[%s16619_s9 + $0x8] sm:$0xff] %v13789_v44  ;;  %v13793_v48 = vadd.f32 %v16615_v56, %v12829_v8  ;;  %v5315_v49 = vpop.f32.mrb[3].mxu0 }
 0x549   : > { %5496 = vst [vmem:[%s16619_s9] sm:$0xff] %v13791_v3  ;;  %v13795_v62 = vadd.f32 %v16615_v56, %v5315_v49 }
 0x54a   : > { %5499 = vst [vmem:[%s16619_s9 + $0x18] sm:$0xff] %v13793_v48 }
 0x54b   : > { %5498 = vst [vmem:[%s16619_s9 + $0x10] sm:$0xff] %v13795_v62  ;;  %v12832_v51 = vpop.f32.mrb[4].mxu0 }
 0x54c   : > { %v13797_v17 = vadd.f32 %v16615_v56, %v12832_v51  ;;  %v5325_v27 = vpop.f32.mrb[5].mxu0 }
 0x54d   : > { %v13799_v18 = vadd.f32 %v16615_v56, %v5325_v27 }
 0x54e   : > { %5501 = vst [vmem:[%s16619_s9 + $0x28] sm:$0xff] %v13797_v17 }
 0x54f   : > { %5500 = vst [vmem:[%s16619_s9 + $0x20] sm:$0xff] %v13799_v18  ;;  %v12835_v35 = vpop.f32.mrb[6].mxu0 }
 0x550   : > { %v13801_v38 = vadd.f32 %v16615_v56, %v12835_v35  ;;  %v5335_v59 = vpop.f32.mrb[7].mxu0 }
 0x551   : > { %v13803_v7 = vadd.f32 %v16615_v56, %v5335_v59 }
 0x552   : > { %5503 = vst [vmem:[%s16619_s9 + $0x38] sm:$0xff] %v13801_v38  ;;  %v16686_v38 = vld [vmem:[%s17930_s4] ss:$0 sm:$0xff] }
 0x553   : > { %5502 = vst [vmem:[%s16619_s9 + $0x30] sm:$0xff] %v13803_v7  ;;  %v12838_v23 = vpop.f32.mrb[8].mxu0 }
 0x554   : > { %v13805_v29 = vadd.f32 %v16615_v56, %v12838_v23  ;;  %v5345_v10 = vpop.f32.mrb[9].mxu0 }
 0x555   : > { %v13807_v47 = vadd.f32 %v16615_v56, %v5345_v10 }
 0x556   : > { %5505 = vst [vmem:[%s16619_s9 + $0x48] sm:$0xff] %v13805_v29  ;;  %v16693_v29 = vld [vmem:[%s17931_s5] ss:$0 sm:$0xff] }
 0x557   : > { %5504 = vst [vmem:[%s16619_s9 + $0x40] sm:$0xff] %v13807_v47  ;;  %v12841_v34 = vpop.f32.mrb[10].mxu0 }
 0x558   : > { %v13809_v46 = vadd.f32 %v16615_v56, %v12841_v34  ;;  %v5355_v61 = vpop.f32.mrb[11].mxu0 }
 0x559   : > { %v13811_v0 = vadd.f32 %v16615_v56, %v5355_v61 }
 0x55a   : > { %5507 = vst [vmem:[%s16619_s9 + $0x58] sm:$0xff] %v13809_v46  ;;  %v16700_v46 = vld [vmem:[%s17932_s6] ss:$0 sm:$0xff] }
 0x55b   : > { %5506 = vst [vmem:[%s16619_s9 + $0x50] sm:$0xff] %v13811_v0  ;;  %v12844_v13 = vpop.f32.mrb[12].mxu0 }
 0x55c   : > { %v13813_v30 = vadd.f32 %v16615_v56, %v12844_v13  ;;  %v5365_v41 = vpop.f32.mrb[13].mxu0 }
 0x55d   : > { %v13815_v40 = vadd.f32 %v16615_v56, %v5365_v41 }
 0x55e   : > { %5509 = vst [vmem:[%s16619_s9 + $0x68] sm:$0xff] %v13813_v30 }
 0x55f   : > { %5508 = vst [vmem:[%s16619_s9 + $0x60] sm:$0xff] %v13815_v40  ;;  %v12847_v39 = vpop.f32.mrb[14].mxu0 }
 0x560   : > { %v13817_v43 = vadd.f32 %v16615_v56, %v12847_v39  ;;  %v5375_v60 = vpop.f32.mrb[15].mxu0 }
 0x561   : > { %v13819_v14 = vadd.f32 %v16615_v56, %v5375_v60 }
 0x562   : > { %5511 = vst [vmem:[%s16619_s9 + $0x78] sm:$0xff] %v13817_v43 }
 0x563   : > { %5510 = vst [vmem:[%s16619_s9 + $0x70] sm:$0xff] %v13819_v14  ;;  %v12850_v6 = vpop.f32.mrb[16].mxu0 }
 0x564   : > { %v13821_v63 = vadd.f32 %v16615_v56, %v12850_v6  ;;  %v5385_v11 = vpop.f32.mrb[17].mxu0 }
 0x565   : > { %v13823_v42 = vadd.f32 %v16615_v56, %v5385_v11 }
 0x566   : > { %5513 = vst [vmem:[%s16619_s9 + $0x88] sm:$0xff] %v13821_v63 }
 0x567   : > { %5512 = vst [vmem:[%s16619_s9 + $0x80] sm:$0xff] %v13823_v42  ;;  %v12853_v50 = vpop.f32.mrb[18].mxu0 }
 0x568   : > { %v13825_v16 = vadd.f32 %v16615_v56, %v12853_v50  ;;  %v5395_v19 = vpop.f32.mrb[19].mxu0 }
 0x569   : > { %v13827_v22 = vadd.f32 %v16615_v56, %v5395_v19 }
 0x56a   : > { %5515 = vst [vmem:[%s16619_s9 + $0x98] sm:$0xff] %v13825_v16 }
 0x56b   : > { %5514 = vst [vmem:[%s16619_s9 + $0x90] sm:$0xff] %v13827_v22  ;;  %v12856_v25 = vpop.f32.mrb[20].mxu0 }
 0x56c   : > { %v13829_v12 = vadd.f32 %v16615_v56, %v12856_v25  ;;  %v5405_v32 = vpop.f32.mrb[21].mxu0 }
 0x56d   : > { %v13831_v54 = vadd.f32 %v16615_v56, %v5405_v32 }
 0x56e   : > { %5517 = vst [vmem:[%s16619_s9 + $0xa8] sm:$0xff] %v13829_v12 }
 0x56f   : > { %5516 = vst [vmem:[%s16619_s9 + $0xa0] sm:$0xff] %v13831_v54  ;;  %v12859_v24 = vpop.f32.mrb[22].mxu0 }
 0x570   : > { %v13833_v45 = vadd.f32 %v16615_v56, %v12859_v24  ;;  %v5415_v26 = vpop.f32.mrb[23].mxu0 }
 0x571   : > { %v13835_v55 = vadd.f32 %v16615_v56, %v5415_v26 }
 0x572   : > { %5519 = vst [vmem:[%s16619_s9 + $0xb8] sm:$0xff] %v13833_v45 }
 0x573   : > { %5518 = vst [vmem:[%s16619_s9 + $0xb0] sm:$0xff] %v13835_v55  ;;  %v12862_v28 = vpop.f32.mrb[24].mxu0 }
 0x574   : > { %v13837_v36 = vadd.f32 %v16615_v56, %v12862_v28  ;;  %v5425_v37 = vpop.f32.mrb[25].mxu0 }
 0x575   : > { %v13839_v52 = vadd.f32 %v16615_v56, %v5425_v37 }
 0x576   : > { %5521 = vst [vmem:[%s16619_s9 + $0xc8] sm:$0xff] %v13837_v36 }
 0x577   : > { %5520 = vst [vmem:[%s16619_s9 + $0xc0] sm:$0xff] %v13839_v52  ;;  %v12865_v1 = vpop.f32.mrb[26].mxu0 }
 0x578   : > { %v13841_v2 = vadd.f32 %v16615_v56, %v12865_v1  ;;  %v5435_v44 = vpop.f32.mrb[27].mxu0 }
 0x579   : > { %v13843_v3 = vadd.f32 %v16615_v56, %v5435_v44 }
 0x57a   : > { %5523 = vst [vmem:[%s16619_s9 + $0xd8] sm:$0xff] %v13841_v2 }
 0x57b   : > { %5522 = vst [vmem:[%s16619_s9 + $0xd0] sm:$0xff] %v13843_v3  ;;  %v12868_v8 = vpop.f32.mrb[28].mxu0 }
 0x57c   : > { %v13845_v48 = vadd.f32 %v16615_v56, %v12868_v8  ;;  %v5445_v49 = vpop.f32.mrb[29].mxu0 }
 0x57d   : > { %v13847_v62 = vadd.f32 %v16615_v56, %v5445_v49 }
 0x57e   : > { %5525 = vst [vmem:[%s16619_s9 + $0xe8] sm:$0xff] %v13845_v48 }
 0x57f   : > { %5524 = vst [vmem:[%s16619_s9 + $0xe0] sm:$0xff] %v13847_v62  ;;  %v12871_v51 = vpop.f32.mrb[30].mxu0 }
 0x580   : > { %v13849_v17 = vadd.f32 %v16615_v56, %v12871_v51  ;;  %v5455_v27 = vpop.f32.mrb[31].mxu0 }
 0x581   : > { %v13851_v18 = vadd.f32 %v16615_v56, %v5455_v27 }
 0x582   : > { %5527 = vst [vmem:[%s16619_s9 + $0xf8] sm:$0xff] %v13849_v17 }
 0x583   : > { %5526 = vst [vmem:[%s16619_s9 + $0xf0] sm:$0xff] %v13851_v18  ;;  %v12890_v35 = vpop.f32.mrb[32].mxu0 }
 0x584   : > { %v5825_v59 = vadd.f32 %v16686_v38, %v12890_v35  ;;  %v5819_v7 = vpop.f32.mrb[33].mxu0 }
 0x585   : > { %v5820_v23 = vadd.f32 %v16686_v38, %v5819_v7 }
 0x586   : > { %v5979_v10 = vmul.f32 %v16693_v29, %v5825_v59 }
 0x587   : > { %v5978_v47 = vmul.f32 %v16693_v29, %v5820_v23  ;;  %v12893_v34 = vpop.f32.mrb[34].mxu0 }
 0x588   : > { %v6011_v61 = vadd.f32 %v16700_v46, %v5979_v10  ;;  %v5835_v0 = vadd.f32 %v16686_v38, %v12893_v34  ;;  %v5829_v13 = vpop.f32.mrb[35].mxu0 }
 0x589   : > { %v6010_v30 = vadd.f32 %v16700_v46, %v5978_v47  ;;  %v5830_v41 = vadd.f32 %v16686_v38, %v5829_v13 }
 0x58a   : > { %v6043_v40 = vmax.f32 %v6011_v61, 0.0  ;;  %v5981_v39 = vmul.f32 %v16693_v29, %v5835_v0 }
 0x58b   : > { %v6042_v43 = vmax.f32 %v6010_v30, 0.0  ;;  %v5980_v60 = vmul.f32 %v16693_v29, %v5830_v41  ;;  %v12896_v14 = vpop.f32.mrb[36].mxu0 }
 0x58c   : > { %6075 = vst.msk [vmem:[#allocation2 + $0x21] sm:$0xff] %vm597_vm0, %v6043_v40  ;;  %v6013_v6 = vadd.f32 %v16700_v46, %v5981_v39  ;;  %v5845_v63 = vadd.f32 %v16686_v38, %v12896_v14  ;;  %v5839_v11 = vpop.f32.mrb[37].mxu0 }
 0x58d   : > { %6074 = vst.msk [vmem:[#allocation2 + $0x19] sm:$0xff] %vm597_vm0, %v6042_v43  ;;  %v6012_v42 = vadd.f32 %v16700_v46, %v5980_v60  ;;  %v5840_v50 = vadd.f32 %v16686_v38, %v5839_v11 }
 0x58e   : > { %v6045_v16 = vmax.f32 %v6013_v6, 0.0  ;;  %v5983_v19 = vmul.f32 %v16693_v29, %v5845_v63 }
 0x58f   : > { %v6044_v22 = vmax.f32 %v6012_v42, 0.0  ;;  %v5982_v25 = vmul.f32 %v16693_v29, %v5840_v50  ;;  %v12899_v12 = vpop.f32.mrb[38].mxu0 }
 0x590   : > { %6077 = vst.msk [vmem:[#allocation2 + $0x39] sm:$0xff] %vm597_vm0, %v6045_v16  ;;  %v6015_v32 = vadd.f32 %v16700_v46, %v5983_v19  ;;  %v5855_v54 = vadd.f32 %v16686_v38, %v12899_v12  ;;  %v5849_v24 = vpop.f32.mrb[39].mxu0 }
 0x591   : > { %6076 = vst.msk [vmem:[#allocation2 + $0x31] sm:$0xff] %vm597_vm0, %v6044_v22  ;;  %v6014_v45 = vadd.f32 %v16700_v46, %v5982_v25  ;;  %v5850_v26 = vadd.f32 %v16686_v38, %v5849_v24 }
 0x592   : > { %v6047_v55 = vmax.f32 %v6015_v32, 0.0  ;;  %v5985_v28 = vmul.f32 %v16693_v29, %v5855_v54 }
 0x593   : > { %v6046_v36 = vmax.f32 %v6014_v45, 0.0  ;;  %v5984_v37 = vmul.f32 %v16693_v29, %v5850_v26  ;;  %v12902_v52 = vpop.f32.mrb[40].mxu0  ;;  %v16734_v49 = vld [vmem:[#allocation2 + $0x21] sm:$0xff] }
 0x594   : > { %6079 = vst.msk [vmem:[#allocation2 + $0x51] sm:$0xff] %vm597_vm0, %v6047_v55  ;;  %v6017_v1 = vadd.f32 %v16700_v46, %v5985_v28  ;;  %v5865_v2 = vadd.f32 %v16686_v38, %v12902_v52  ;;  %v5859_v44 = vpop.f32.mrb[41].mxu0  ;;  %v16727_v3 = vld [vmem:[#allocation2 + $0x19] sm:$0xff] }
 0x595   : > { %6078 = vst.msk [vmem:[#allocation2 + $0x49] sm:$0xff] %vm597_vm0, %v6046_v36  ;;  %v6016_v8 = vadd.f32 %v16700_v46, %v5984_v37  ;;  %v5860_v48 = vadd.f32 %v16686_v38, %v5859_v44  ;;  %12947 = vmatprep.mubr.msk.f32.mxu0 %vm597_vm0, %v16727_v3  ;;  %v17074_v21 = vld [vmem:[#allocation2 + $0x1a] sm:$0xff] }
 0x596   : > { %v6049_v62 = vmax.f32 %v6017_v1, 0.0  ;;  %v5987_v51 = vmul.f32 %v16693_v29, %v5865_v2  ;;  %12948 = vmatmul.mubr.msk.f32.gmra.mrb[66].mxu0 %vm597_vm0, %v16734_v49 }
 0x597   : > { %v6048_v17 = vmax.f32 %v6016_v8, 0.0  ;;  %v5986_v27 = vmul.f32 %v16693_v29, %v5860_v48  ;;  %v12905_v18 = vpop.f32.mrb[42].mxu0  ;;  %v16750_v34 = vld [vmem:[#allocation2 + $0x39] sm:$0xff] }
 0x598   : > { %6081 = vst.msk [vmem:[#allocation2 + $0x69] sm:$0xff] %vm597_vm0, %v6049_v62  ;;  %v6019_v35 = vadd.f32 %v16700_v46, %v5987_v51  ;;  %v5875_v59 = vadd.f32 %v16686_v38, %v12905_v18  ;;  %v5869_v7 = vpop.f32.mrb[43].mxu0  ;;  %v16743_v23 = vld [vmem:[#allocation2 + $0x31] sm:$0xff] }
 0x599   : > { %6080 = vst.msk [vmem:[#allocation2 + $0x61] sm:$0xff] %vm597_vm0, %v6048_v17  ;;  %v6018_v10 = vadd.f32 %v16700_v46, %v5986_v27  ;;  %v5870_v47 = vadd.f32 %v16686_v38, %v5869_v7  ;;  %12950 = vmatprep.mubr.msk.f32.mxu0 %vm597_vm0, %v16743_v23 }
 0x59a   : > { %v6051_v61 = vmax.f32 %v6019_v35, 0.0  ;;  %v5989_v0 = vmul.f32 %v16693_v29, %v5875_v59  ;;  %12951 = vmatmul.mubr.msk.f32.gmra.mrb[68].mxu0 %vm597_vm0, %v16750_v34 }
 0x59b   : > { %v6050_v13 = vmax.f32 %v6018_v10, 0.0  ;;  %v5988_v30 = vmul.f32 %v16693_v29, %v5870_v47  ;;  %v12908_v41 = vpop.f32.mrb[44].mxu0  ;;  %v16766_v63 = vld [vmem:[#allocation2 + $0x51] sm:$0xff] }
 0x59c   : > { %6083 = vst.msk [vmem:[#allocation2 + $0x81] sm:$0xff] %vm597_vm0, %v6051_v61  ;;  %v6021_v40 = vadd.f32 %v16700_v46, %v5989_v0  ;;  %v5885_v39 = vadd.f32 %v16686_v38, %v12908_v41  ;;  %v5879_v43 = vpop.f32.mrb[45].mxu0  ;;  %v16759_v60 = vld [vmem:[#allocation2 + $0x49] sm:$0xff] }
 0x59d   : > { %6082 = vst.msk [vmem:[#allocation2 + $0x79] sm:$0xff] %vm597_vm0, %v6050_v13  ;;  %v6020_v14 = vadd.f32 %v16700_v46, %v5988_v30  ;;  %v5880_v6 = vadd.f32 %v16686_v38, %v5879_v43  ;;  %12953 = vmatprep.mubr.msk.f32.mxu0 %vm597_vm0, %v16759_v60 }
 0x59e   : > { %v6053_v11 = vmax.f32 %v6021_v40, 0.0  ;;  %v5991_v42 = vmul.f32 %v16693_v29, %v5885_v39  ;;  %12954 = vmatmul.mubr.msk.f32.gmra.mrb[70].mxu0 %vm597_vm0, %v16766_v63 }
 0x59f   : > { %v6052_v50 = vmax.f32 %v6020_v14, 0.0  ;;  %v5990_v16 = vmul.f32 %v16693_v29, %v5880_v6  ;;  %v12911_v19 = vpop.f32.mrb[46].mxu0  ;;  %v16782_v45 = vld [vmem:[#allocation2 + $0x69] sm:$0xff] }
 0x5a0   : > { %6085 = vst.msk [vmem:[#allocation2 + $0x99] sm:$0xff] %vm597_vm0, %v6053_v11  ;;  %v6023_v22 = vadd.f32 %v16700_v46, %v5991_v42  ;;  %v5895_v25 = vadd.f32 %v16686_v38, %v12911_v19  ;;  %v5889_v12 = vpop.f32.mrb[47].mxu0  ;;  %v16775_v32 = vld [vmem:[#allocation2 + $0x61] sm:$0xff] }
 0x5a1   : > { %6084 = vst.msk [vmem:[#allocation2 + $0x91] sm:$0xff] %vm597_vm0, %v6052_v50  ;;  %v6022_v54 = vadd.f32 %v16700_v46, %v5990_v16  ;;  %v5890_v24 = vadd.f32 %v16686_v38, %v5889_v12  ;;  %12956 = vmatprep.mubr.msk.f32.mxu0 %vm597_vm0, %v16775_v32 }
 0x5a2   : > { %v6055_v26 = vmax.f32 %v6023_v22, 0.0  ;;  %v5993_v55 = vmul.f32 %v16693_v29, %v5895_v25  ;;  %12957 = vmatmul.mubr.msk.f32.gmra.mrb[72].mxu0 %vm597_vm0, %v16782_v45 }
 0x5a3   : > { %v6054_v28 = vmax.f32 %v6022_v54, 0.0  ;;  %v5992_v36 = vmul.f32 %v16693_v29, %v5890_v24  ;;  %v12914_v37 = vpop.f32.mrb[48].mxu0  ;;  %v16798_v62 = vld [vmem:[#allocation2 + $0x81] sm:$0xff] }
 0x5a4   : > { %6087 = vst.msk [vmem:[#allocation2 + $0xb1] sm:$0xff] %vm597_vm0, %v6055_v26  ;;  %v6025_v52 = vadd.f32 %v16700_v46, %v5993_v55  ;;  %v5905_v1 = vadd.f32 %v16686_v38, %v12914_v37  ;;  %v5899_v2 = vpop.f32.mrb[49].mxu0  ;;  %v16791_v44 = vld [vmem:[#allocation2 + $0x79] sm:$0xff] }
 0x5a5   : > { %6086 = vst.msk [vmem:[#allocation2 + $0xa9] sm:$0xff] %vm597_vm0, %v6054_v28  ;;  %v6024_v8 = vadd.f32 %v16700_v46, %v5992_v36  ;;  %v5900_v48 = vadd.f32 %v16686_v38, %v5899_v2  ;;  %12959 = vmatprep.mubr.msk.f32.mxu0 %vm597_vm0, %v16791_v44 }
 0x5a6   : > { %v6057_v51 = vmax.f32 %v6025_v52, 0.0  ;;  %v5995_v17 = vmul.f32 %v16693_v29, %v5905_v1  ;;  %12960 = vmatmul.mubr.msk.f32.gmra.mrb[74].mxu0 %vm597_vm0, %v16798_v62 }
 0x5a7   : > { %v6056_v27 = vmax.f32 %v6024_v8, 0.0  ;;  %v5994_v18 = vmul.f32 %v16693_v29, %v5900_v48  ;;  %v12917_v35 = vpop.f32.mrb[50].mxu0  ;;  %v16814_v13 = vld [vmem:[#allocation2 + $0x99] sm:$0xff] }
 0x5a8   : > { %6089 = vst.msk [vmem:[#allocation2 + $0xc9] sm:$0xff] %vm597_vm0, %v6057_v51  ;;  %v6027_v59 = vadd.f32 %v16700_v46, %v5995_v17  ;;  %v5915_v7 = vadd.f32 %v16686_v38, %v12917_v35  ;;  %v5909_v10 = vpop.f32.mrb[51].mxu0  ;;  %v16807_v47 = vld [vmem:[#allocation2 + $0x91] sm:$0xff] }
 0x5a9   : > { %6088 = vst.msk [vmem:[#allocation2 + $0xc1] sm:$0xff] %vm597_vm0, %v6056_v27  ;;  %v6026_v61 = vadd.f32 %v16700_v46, %v5994_v18  ;;  %v5910_v0 = vadd.f32 %v16686_v38, %v5909_v10  ;;  %12962 = vmatprep.mubr.msk.f32.mxu0 %vm597_vm0, %v16807_v47 }
 0x5aa   : > { %v6059_v30 = vmax.f32 %v6027_v59, 0.0  ;;  %v5997_v41 = vmul.f32 %v16693_v29, %v5915_v7  ;;  %12963 = vmatmul.mubr.msk.f32.gmra.mrb[76].mxu0 %vm597_vm0, %v16814_v13 }
 0x5ab   : > { %v6058_v40 = vmax.f32 %v6026_v61, 0.0  ;;  %v5996_v39 = vmul.f32 %v16693_v29, %v5910_v0  ;;  %v12920_v43 = vpop.f32.mrb[52].mxu0  ;;  %v16830_v19 = vld [vmem:[#allocation2 + $0xb1] sm:$0xff] }
 0x5ac   : > { %6091 = vst.msk [vmem:[#allocation2 + $0xe1] sm:$0xff] %vm597_vm0, %v6059_v30  ;;  %v6029_v14 = vadd.f32 %v16700_v46, %v5997_v41  ;;  %v5925_v6 = vadd.f32 %v16686_v38, %v12920_v43  ;;  %v5919_v11 = vpop.f32.mrb[53].mxu0  ;;  %v16823_v42 = vld [vmem:[#allocation2 + $0xa9] sm:$0xff] }
 0x5ad   : > { %6090 = vst.msk [vmem:[#allocation2 + $0xd9] sm:$0xff] %vm597_vm0, %v6058_v40  ;;  %v6028_v50 = vadd.f32 %v16700_v46, %v5996_v39  ;;  %v5920_v16 = vadd.f32 %v16686_v38, %v5919_v11  ;;  %12965 = vmatprep.mubr.msk.f32.mxu0 %vm597_vm0, %v16823_v42  ;;  %v17003_v56 = vld [vmem:[#allocation2 + $0xb0] sm:$0xff] }
 0x5ae   : > { %v6061_v22 = vmax.f32 %v6029_v14, 0.0  ;;  %v5999_v25 = vmul.f32 %v16693_v29, %v5925_v6  ;;  %12966 = vmatmul.mubr.msk.f32.gmra.mrb[78].mxu0 %vm597_vm0, %v16830_v19 }
 0x5af   : > { %v6060_v12 = vmax.f32 %v6028_v50, 0.0  ;;  %v5998_v54 = vmul.f32 %v16693_v29, %v5920_v16  ;;  %v12923_v24 = vpop.f32.mrb[54].mxu0  ;;  %v16846_v1 = vld [vmem:[#allocation2 + $0xc9] sm:$0xff] }
 0x5b0   : > { %6093 = vst.msk [vmem:[#allocation2 + $0xf9] sm:$0xff] %vm597_vm0, %v6061_v22  ;;  %v6031_v26 = vadd.f32 %v16700_v46, %v5999_v25  ;;  %v5935_v55 = vadd.f32 %v16686_v38, %v12923_v24  ;;  %v5929_v28 = vpop.f32.mrb[55].mxu0  ;;  %v16839_v36 = vld [vmem:[#allocation2 + $0xc1] sm:$0xff] }
 0x5b1   : > { %6092 = vst.msk [vmem:[#allocation2 + $0xf1] sm:$0xff] %vm597_vm0, %v6060_v12  ;;  %v6030_v37 = vadd.f32 %v16700_v46, %v5998_v54  ;;  %v5930_v52 = vadd.f32 %v16686_v38, %v5929_v28  ;;  %12968 = vmatprep.mubr.msk.f32.mxu0 %vm597_vm0, %v16839_v36 }
 0x5b2   : > { %v6063_v2 = vmax.f32 %v6031_v26, 0.0  ;;  %v6001_v8 = vmul.f32 %v16693_v29, %v5935_v55  ;;  %12969 = vmatmul.mubr.msk.f32.gmra.mrb[80].mxu0 %vm597_vm0, %v16846_v1 }
 0x5b3   : > { %v6062_v48 = vmax.f32 %v6030_v37, 0.0  ;;  %v6000_v51 = vmul.f32 %v16693_v29, %v5930_v52  ;;  %v12926_v17 = vpop.f32.mrb[56].mxu0  ;;  %v16862_v61 = vld [vmem:[#allocation2 + $0xe1] sm:$0xff] }
 0x5b4   : > { %6095 = vst.msk [vmem:[#allocation2 + $0x111] sm:$0xff] %vm597_vm0, %v6063_v2  ;;  %v6033_v27 = vadd.f32 %v16700_v46, %v6001_v8  ;;  %v5945_v18 = vadd.f32 %v16686_v38, %v12926_v17  ;;  %v5939_v35 = vpop.f32.mrb[57].mxu0  ;;  %v16855_v59 = vld [vmem:[#allocation2 + $0xd9] sm:$0xff] }
 0x5b5   : > { %6094 = vst.msk [vmem:[#allocation2 + $0x109] sm:$0xff] %vm597_vm0, %v6062_v48  ;;  %v6032_v7 = vadd.f32 %v16700_v46, %v6000_v51  ;;  %v5940_v10 = vadd.f32 %v16686_v38, %v5939_v35  ;;  %12971 = vmatprep.mubr.msk.f32.mxu0 %vm597_vm0, %v16855_v59 }
 0x5b6   : > { %v6065_v0 = vmax.f32 %v6033_v27, 0.0  ;;  %v6003_v30 = vmul.f32 %v16693_v29, %v5945_v18  ;;  %12972 = vmatmul.mubr.msk.f32.gmra.mrb[82].mxu0 %vm597_vm0, %v16862_v61 }
 0x5b7   : > { %v6064_v41 = vmax.f32 %v6032_v7, 0.0  ;;  %v6002_v40 = vmul.f32 %v16693_v29, %v5940_v10  ;;  %v12929_v39 = vpop.f32.mrb[58].mxu0  ;;  %v16878_v22 = vld [vmem:[#allocation2 + $0xf9] sm:$0xff] }
 0x5b8   : > { %6097 = vst.msk [vmem:[#allocation2 + $0x129] sm:$0xff] %vm597_vm0, %v6065_v0  ;;  %v6035_v43 = vadd.f32 %v16700_v46, %v6003_v30  ;;  %v5955_v14 = vadd.f32 %v16686_v38, %v12929_v39  ;;  %v5949_v6 = vpop.f32.mrb[59].mxu0  ;;  %v16871_v11 = vld [vmem:[#allocation2 + $0xf1] sm:$0xff] }
 0x5b9   : > { %6096 = vst.msk [vmem:[#allocation2 + $0x121] sm:$0xff] %vm597_vm0, %v6064_v41  ;;  %v6034_v50 = vadd.f32 %v16700_v46, %v6002_v40  ;;  %v5950_v16 = vadd.f32 %v16686_v38, %v5949_v6  ;;  %12974 = vmatprep.mubr.msk.f32.mxu0 %vm597_vm0, %v16871_v11 }
 0x5ba   : > { %v6067_v25 = vmax.f32 %v6035_v43, 0.0  ;;  %v6005_v12 = vmul.f32 %v16693_v29, %v5955_v14  ;;  %12975 = vmatmul.mubr.msk.f32.gmra.mrb[84].mxu0 %vm597_vm0, %v16878_v22 }
 0x5bb   : > { %v6066_v54 = vmax.f32 %v6034_v50, 0.0  ;;  %v6004_v24 = vmul.f32 %v16693_v29, %v5950_v16  ;;  %v12932_v26 = vpop.f32.mrb[60].mxu0  ;;  %v16894_v48 = vld [vmem:[#allocation2 + $0x111] sm:$0xff]  ;;  %v6106_v50 = vld [vmem:[#allocation2] sm:$0xff] }
 0x5bc   : > { %6099 = vst.msk [vmem:[#allocation2 + $0x141] sm:$0xff] %vm597_vm0, %v6067_v25  ;;  %v6037_v55 = vadd.f32 %v16700_v46, %v6005_v12  ;;  %v5965_v28 = vadd.f32 %v16686_v38, %v12932_v26  ;;  %v5959_v37 = vpop.f32.mrb[61].mxu0  ;;  %v16887_v52 = vld [vmem:[#allocation2 + $0x109] sm:$0xff]  ;;  %v16940_v12 = vld [vmem:[#allocation2 + $0x18] sm:$0xff] }
 0x5bd   : > { %6098 = vst.msk [vmem:[#allocation2 + $0x139] sm:$0xff] %vm597_vm0, %v6066_v54  ;;  %v6036_v2 = vadd.f32 %v16700_v46, %v6004_v24  ;;  %v5960_v8 = vadd.f32 %v16686_v38, %v5959_v37  ;;  %12977 = vmatprep.mubr.msk.f32.mxu0 %vm597_vm0, %v16887_v52  ;;  %v6107_v25 = vld [vmem:[#allocation2 + $0x8] sm:$0xff]  ;;  %v18267_v54 = vld [vmem:[#allocation31_spill] sm:$0xff]  ;;  %v16946_v24 = vld [vmem:[#allocation2 + $0x20] sm:$0xff] }
 0x5be   : > { %v6069_v51 = vmax.f32 %v6037_v55, 0.0  ;;  %v6007_v17 = vmul.f32 %v16693_v29, %v5965_v28  ;;  %12978 = vmatmul.mubr.msk.f32.gmra.mrb[86].mxu0 %vm597_vm0, %v16894_v48  ;;  %v16950_v26 = vld [vmem:[#allocation2 + $0x30] sm:$0xff]  ;;  %v18268_v55 = vld [vmem:[#allocation32_spill] sm:$0xff]  ;;  %v16960_v28 = vld [vmem:[#allocation2 + $0x48] sm:$0xff] }
 0x5bf   : > { %v6068_v27 = vmax.f32 %v6036_v2, 0.0  ;;  %v6006_v18 = vmul.f32 %v16693_v29, %v5960_v8  ;;  %v16908_v0 = vld [vmem:[#allocation2 + $0x129] sm:$0xff]  ;;  %v16968_v2 = vld [vmem:[#allocation2 + $0x60] sm:$0xff] }
 0x5c0   : > { %6101 = vst.msk [vmem:[#allocation2 + $0x159] sm:$0xff] %vm597_vm0, %v6069_v51  ;;  %v6039_v35 = vadd.f32 %v16700_v46, %v6007_v17  ;;  %v16902_v7 = vld [vmem:[#allocation2 + $0x121] sm:$0xff]  ;;  %v16964_v37 = vld [vmem:[#allocation2 + $0x50] sm:$0xff]  ;;  %v16976_v51 = vld [vmem:[#allocation2 + $0x78] sm:$0xff]  ;;  %v12935_v17 = vpop.f32.mrb[62].mxu0 }
 0x5c1   : > { %6100 = vst.msk [vmem:[#allocation2 + $0x151] sm:$0xff] %vm597_vm0, %v6068_v27  ;;  %v6038_v10 = vadd.f32 %v16700_v46, %v6006_v18  ;;  %12980 = vmatprep.mubr.msk.f32.mxu0 %vm597_vm0, %v16902_v7  ;;  %v16972_v8 = vld [vmem:[#allocation2 + $0x68] sm:$0xff]  ;;  %v5975_v27 = vadd.f32 %v16686_v38, %v12935_v17  ;;  %v5969_v18 = vpop.f32.mrb[63].mxu0 }
 0x5c2   : > { %v6071_v30 = vmax.f32 %v6039_v35, 0.0  ;;  %12981 = vmatmul.mubr.msk.f32.gmra.mrb[88].mxu0 %vm597_vm0, %v16908_v0  ;;  %v16981_v35 = vld [vmem:[#allocation2 + $0x80] sm:$0xff]  ;;  %v17044_v15 = vld [vmem:[#allocation2 + $0x128] sm:$0xff] }
 0x5c3   : > { %v6070_v41 = vmax.f32 %v6038_v10, 0.0  ;;  %v16918_v39 = vld [vmem:[#allocation2 + $0x141] sm:$0xff]  ;;  %v5970_v10 = vadd.f32 %v16686_v38, %v5969_v18 }
 0x5c4   : > { %6103 = vst.msk [vmem:[#allocation2 + $0x171] sm:$0xff] %vm597_vm0, %v6071_v30  ;;  %v16913_v40 = vld [vmem:[#allocation2 + $0x139] sm:$0xff]  ;;  %v16986_v30 = vld [vmem:[#allocation2 + $0x90] sm:$0xff]  ;;  %v16998_v38 = vld [vmem:[#allocation2 + $0xa8] sm:$0xff] }
 0x5c5   : > { %6102 = vst.msk [vmem:[#allocation2 + $0x169] sm:$0xff] %vm597_vm0, %v6070_v41  ;;  %12983 = vmatprep.mubr.msk.f32.mxu0 %vm597_vm0, %v16913_v40  ;;  %v6009_v41 = vmul.f32 %v16693_v29, %v5975_v27  ;;  %v17048_v5 = vld [vmem:[#allocation2 + $0x138] sm:$0xff]  ;;  %v17052_v57 = vld [vmem:[#allocation2 + $0x140] sm:$0xff] }
 0x5c6   : > { %12984 = vmatmul.mubr.msk.f32.gmra.mrb[90].mxu0 %vm597_vm0, %v16918_v39 }
 0x5c7   : > { %v16926_v14 = vld [vmem:[#allocation2 + $0x159] sm:$0xff] }
 0x5c8   : > { %v16922_v43 = vld [vmem:[#allocation2 + $0x151] sm:$0xff]  ;;  %18264 = vst [vmem:[#allocation41_spill] sm:$0xff] %v16926_v14 }
 0x5c9   : > { %12986 = vmatprep.mubr.msk.f32.mxu0 %vm597_vm0, %v16922_v43  ;;  %v17056_v4 = vld [vmem:[#allocation2 + $0x150] sm:$0xff]  ;;  %v17060_v33 = vld [vmem:[#allocation2 + $0x158] sm:$0xff] }
 0x5ca   : > { %12987 = vmatmul.mubr.msk.f32.gmra.mrb[92].mxu0 %vm597_vm0, %v16926_v14  ;;  %v17084_v14 = vld [vmem:[#allocation2 + $0x32] sm:$0xff] }
 0x5cb   : > { %v16934_v16 = vld [vmem:[#allocation2 + $0x171] sm:$0xff]  ;;  %18271 = vst [vmem:[#allocation45_spill] sm:$0xff] %v17084_v14 }
 0x5cc   : > { %v16930_v6 = vld [vmem:[#allocation2 + $0x169] sm:$0xff]  ;;  %18266 = vst [vmem:[#allocation43_spill] sm:$0xff] %v16934_v16 }
 0x5cd   : > { %18265 = vst [vmem:[#allocation42_spill] sm:$0xff] %v16930_v6  ;;  %12989 = vmatprep.mubr.msk.f32.mxu0 %vm597_vm0, %v16930_v6  ;;  %v17064_v20 = vld [vmem:[#allocation2 + $0x168] sm:$0xff]  ;;  %v17068_v9 = vld [vmem:[#allocation2 + $0x170] sm:$0xff] }
 0x5ce   : > { %12990 = vmatmul.mubr.msk.f32.gmra.mrb[94].mxu0 %vm597_vm0, %v16934_v16  ;;  %v18269_v16 = vld [vmem:[#allocation33_spill] sm:$0xff] }
 0x5cf   : > { %13000 = vmatprep.mubr.msk.f32.mxu0 %vm597_vm0, %v6106_v50  ;;  %v6008_v50 = vmul.f32 %v16693_v29, %v5970_v10  ;;  %v17008_v29 = vld [vmem:[#allocation2 + $0xc0] sm:$0xff]  ;;  %v17016_v10 = vld [vmem:[#allocation2 + $0xd8] sm:$0xff] }
 0x5d0   : > { %v17080_v6 = vld [vmem:[#allocation2 + $0x22] sm:$0xff] }
 0x5d1   : > { %v6040_v17 = vadd.f32 %v16700_v46, %v6008_v50  ;;  %v17024_v50 = vld [vmem:[#allocation2 + $0xf0] sm:$0xff]  ;;  %18270 = vst [vmem:[#allocation44_spill] sm:$0xff] %v17080_v6 }
 0x5d2   : > { %13001 = vmatmul.mubr.msk.f32.vlgmr.msra.gmra.mrb[64].mxu0 %vm597_vm0, %v6107_v25  ;;  %v6041_v25 = vadd.f32 %v16700_v46, %v6009_v41  ;;  %v17012_v46 = vld [vmem:[#allocation2 + $0xc8] sm:$0xff]  ;;  %v17020_v41 = vld [vmem:[#allocation2 + $0xe0] sm:$0xff] }
 0x5d3   : > { %13707 = vmatpush3.bf16.msra.mxu0 %v18260_v31  ;;  %13003 = vmatprep.mubr.msk.f32.mxu0 %vm597_vm0, %v16940_v12  ;;  %v16956_v31 = vld [vmem:[#allocation2 + $0x38] sm:$0xff]  ;;  %v6072_v27 = vmax.f32 %v6040_v17, 0.0  ;;  %v17032_v17 = vld [vmem:[#allocation2 + $0x108] sm:$0xff] }
 0x5d4   : > { %13709 = vmatprep.subr.bf16.mxu0 %v18267_v54  ;;  %v6073_v18 = vmax.f32 %v6041_v25, 0.0  ;;  %v17028_v25 = vld [vmem:[#allocation2 + $0xf8] sm:$0xff] }
 0x5d5   : > { %6104 = vst.msk [vmem:[#allocation2 + $0x181] sm:$0xff] %vm597_vm0, %v6072_v27  ;;  %v17040_v27 = vld [vmem:[#allocation2 + $0x120] sm:$0xff] }
 0x5d6   : > { %13004 = vmatmul.mubr.msk.f32.gmra.mrb[66].mxu0 %vm597_vm0, %v16946_v24  ;;  %6105 = vst.msk [vmem:[#allocation2 + $0x189] sm:$0xff] %vm597_vm0, %v6073_v18  ;;  %v17036_v18 = vld [vmem:[#allocation2 + $0x110] sm:$0xff] }
 0x5d7   : > { %13006 = vmatprep.mubr.msk.f32.mxu0 %vm597_vm0, %v16950_v26  ;;  %13711 = vmatpush3.bf16.msra.mxu0 %v18267_v54  ;;  %v16993_v54 = vld [vmem:[#allocation2 + $0x98] sm:$0xff] }
 0x5d8   : > { %13713 = vmatprep.subr.bf16.mxu0 %v18268_v55 }
 0x5da   : > { %13007 = vmatmul.mubr.msk.f32.gmra.mrb[68].mxu0 %vm597_vm0, %v16956_v31 }
 0x5db   : > { %13009 = vmatprep.mubr.msk.f32.mxu0 %vm597_vm0, %v16960_v28 }
 0x5de   : > { %13010 = vmatmul.mubr.msk.f32.gmra.mrb[70].mxu0 %vm597_vm0, %v16964_v37 }
 0x5df   : > { %13012 = vmatprep.mubr.msk.f32.mxu0 %vm597_vm0, %v16968_v2 }
 0x5e2   : > { %13013 = vmatmul.mubr.msk.f32.gmra.mrb[72].mxu0 %vm597_vm0, %v16972_v8 }
 0x5e3   : > { %13015 = vmatprep.mubr.msk.f32.mxu0 %vm597_vm0, %v16976_v51 }
 0x5e6   : > { %13016 = vmatmul.mubr.msk.f32.gmra.mrb[74].mxu0 %vm597_vm0, %v16981_v35 }
 0x5e7   : > { %13018 = vmatprep.mubr.msk.f32.mxu0 %vm597_vm0, %v16986_v30 }
 0x5ea   : > { %13019 = vmatmul.mubr.msk.f32.gmra.mrb[76].mxu0 %vm597_vm0, %v16993_v54 }
 0x5eb   : > { %13021 = vmatprep.mubr.msk.f32.mxu0 %vm597_vm0, %v16998_v38 }
 0x5ee   : > { %13022 = vmatmul.mubr.msk.f32.gmra.mrb[78].mxu0 %vm597_vm0, %v17003_v56 }
 0x5ef   : > { %13024 = vmatprep.mubr.msk.f32.mxu0 %vm597_vm0, %v17008_v29 }
 0x5f2   : > { %13025 = vmatmul.mubr.msk.f32.gmra.mrb[80].mxu0 %vm597_vm0, %v17012_v46 }
 0x5f3   : > { %13027 = vmatprep.mubr.msk.f32.mxu0 %vm597_vm0, %v17016_v10 }
 0x5f6   : > { %13028 = vmatmul.mubr.msk.f32.gmra.mrb[82].mxu0 %vm597_vm0, %v17020_v41 }
 0x5f7   : > { %13030 = vmatprep.mubr.msk.f32.mxu0 %vm597_vm0, %v17024_v50 }
 0x5fa   : > { %13031 = vmatmul.mubr.msk.f32.gmra.mrb[84].mxu0 %vm597_vm0, %v17028_v25 }
 0x5fb   : > { %13033 = vmatprep.mubr.msk.f32.mxu0 %vm597_vm0, %v17032_v17 }
 0x5fe   : > { %13034 = vmatmul.mubr.msk.f32.gmra.mrb[86].mxu0 %vm597_vm0, %v17036_v18 }
 0x5ff   : > { %13036 = vmatprep.mubr.msk.f32.mxu0 %vm597_vm0, %v17040_v27 }
 0x602   : > { %13037 = vmatmul.mubr.msk.f32.gmra.mrb[88].mxu0 %vm597_vm0, %v17044_v15 }
 0x603   : > { %13039 = vmatprep.mubr.msk.f32.mxu0 %vm597_vm0, %v17048_v5 }
 0x606   : > { %13040 = vmatmul.mubr.msk.f32.gmra.mrb[90].mxu0 %vm597_vm0, %v17052_v57 }
 0x607   : > { %13042 = vmatprep.mubr.msk.f32.mxu0 %vm597_vm0, %v17056_v4 }
 0x60a   : > { %13043 = vmatmul.mubr.msk.f32.gmra.mrb[92].mxu0 %vm597_vm0, %v17060_v33 }
 0x60b   : > { %13045 = vmatprep.mubr.msk.f32.mxu0 %vm597_vm0, %v17064_v20 }
 0x60e   : > { %13046 = vmatmul.mubr.msk.f32.gmra.mrb[94].mxu0 %vm597_vm0, %v17068_v9 }
 0x60f   : > { %13056 = vmatprep.mubr.msk.f32.mxu0 %vm597_vm0, %v6812_v58  ;;  %v17090_v58 = vld [vmem:[#allocation2 + $0x3a] sm:$0xff] }
 0x610   : > { %18273 = vst [vmem:[#allocation46_spill] sm:$0xff] %v17090_v58 }
 0x612   : > { %13057 = vmatmul.mubr.msk.f32.vlgmr.msra.gmra.mrb[64].mxu0 %vm597_vm0, %v6813_v53  ;;  %v18272_v53 = vld [vmem:[#allocation34_spill] sm:$0xff] }
 0x613   : > { %13715 = vmatpush3.bf16.msra.mxu0 %v18268_v55  ;;  %13059 = vmatprep.mubr.msk.f32.mxu0 %vm597_vm0, %v17074_v21  ;;  %v17094_v55 = vld [vmem:[#allocation2 + $0x4a] sm:$0xff] }
 0x614   : > { %13717 = vmatprep.subr.bf16.mxu0 %v18269_v16  ;;  %18274 = vst [vmem:[#allocation47_spill] sm:$0xff] %v17094_v55 }
 0x616   : > { %13060 = vmatmul.mubr.msk.f32.gmra.mrb[66].mxu0 %vm597_vm0, %v17080_v6  ;;  %v17098_v6 = vld [vmem:[#allocation2 + $0x52] sm:$0xff] }
 0x617   : > { %13062 = vmatprep.mubr.msk.f32.mxu0 %vm597_vm0, %v17084_v14  ;;  %13719 = vmatpush3.bf16.msra.mxu0 %v18269_v16  ;;  %18275 = vst [vmem:[#allocation48_spill] sm:$0xff] %v17098_v6  ;;  %v17102_v14 = vld [vmem:[#allocation2 + $0x62] sm:$0xff]  ;;  %v17106_v16 = vld [vmem:[#allocation2 + $0x6a] sm:$0xff] }
 0x618   : > { %13721 = vmatprep.subr.bf16.mxu0 %v18272_v53  ;;  %18276 = vst [vmem:[#allocation49_spill] sm:$0xff] %v17102_v14  ;;  %18277 = vst [vmem:[#allocation50_spill] sm:$0xff] %v17106_v16 }
 0x61a   : > { %13063 = vmatmul.mubr.msk.f32.gmra.mrb[68].mxu0 %vm597_vm0, %v17090_v58  ;;  %v17110_v58 = vld [vmem:[#allocation2 + $0x7a] sm:$0xff] }
 0x61b   : > { %13065 = vmatprep.mubr.msk.f32.mxu0 %vm597_vm0, %v17094_v55  ;;  %18278 = vst [vmem:[#allocation51_spill] sm:$0xff] %v17110_v58  ;;  %v17114_v55 = vld [vmem:[#allocation2 + $0x82] sm:$0xff] }
 0x61c   : > { %18279 = vst [vmem:[#allocation52_spill] sm:$0xff] %v17114_v55 }
 0x61e   : > { %13066 = vmatmul.mubr.msk.f32.gmra.mrb[70].mxu0 %vm597_vm0, %v17098_v6  ;;  %v17118_v6 = vld [vmem:[#allocation2 + $0x92] sm:$0xff] }
 0x61f   : > { %13068 = vmatprep.mubr.msk.f32.mxu0 %vm597_vm0, %v17102_v14  ;;  %18280 = vst [vmem:[#allocation53_spill] sm:$0xff] %v17118_v6  ;;  %v17122_v14 = vld [vmem:[#allocation2 + $0x9a] sm:$0xff] }
 0x620   : > { %18281 = vst [vmem:[#allocation54_spill] sm:$0xff] %v17122_v14 }
 0x622   : > { %13069 = vmatmul.mubr.msk.f32.gmra.mrb[72].mxu0 %vm597_vm0, %v17106_v16  ;;  %v17126_v16 = vld [vmem:[#allocation2 + $0xaa] sm:$0xff] }
 0x623   : > { %13071 = vmatprep.mubr.msk.f32.mxu0 %vm597_vm0, %v17110_v58  ;;  %18282 = vst [vmem:[#allocation55_spill] sm:$0xff] %v17126_v16  ;;  %v17130_v58 = vld [vmem:[#allocation2 + $0xb2] sm:$0xff] }
 0x624   : > { %18283 = vst [vmem:[#allocation56_spill] sm:$0xff] %v17130_v58 }
 0x626   : > { %13072 = vmatmul.mubr.msk.f32.gmra.mrb[74].mxu0 %vm597_vm0, %v17114_v55  ;;  %v17134_v55 = vld [vmem:[#allocation2 + $0xc2] sm:$0xff] }
 0x627   : > { %13074 = vmatprep.mubr.msk.f32.mxu0 %vm597_vm0, %v17118_v6  ;;  %18284 = vst [vmem:[#allocation57_spill] sm:$0xff] %v17134_v55  ;;  %v17138_v6 = vld [vmem:[#allocation2 + $0xca] sm:$0xff] }
 0x628   : > { %18285 = vst [vmem:[#allocation58_spill] sm:$0xff] %v17138_v6 }
 0x62a   : > { %13075 = vmatmul.mubr.msk.f32.gmra.mrb[76].mxu0 %vm597_vm0, %v17122_v14  ;;  %v17142_v14 = vld [vmem:[#allocation2 + $0xda] sm:$0xff] }
 0x62b   : > { %13077 = vmatprep.mubr.msk.f32.mxu0 %vm597_vm0, %v17126_v16  ;;  %18286 = vst [vmem:[#allocation59_spill] sm:$0xff] %v17142_v14  ;;  %v17146_v16 = vld [vmem:[#allocation2 + $0xe2] sm:$0xff] }
 0x62c   : > { %18287 = vst [vmem:[#allocation60_spill] sm:$0xff] %v17146_v16 }
 0x62e   : > { %13078 = vmatmul.mubr.msk.f32.gmra.mrb[78].mxu0 %vm597_vm0, %v17130_v58  ;;  %v17150_v58 = vld [vmem:[#allocation2 + $0xf2] sm:$0xff] }
 0x62f   : > { %13080 = vmatprep.mubr.msk.f32.mxu0 %vm597_vm0, %v17134_v55  ;;  %18288 = vst [vmem:[#allocation61_spill] sm:$0xff] %v17150_v58  ;;  %v17154_v55 = vld [vmem:[#allocation2 + $0xfa] sm:$0xff] }
 0x630   : > { %18289 = vst [vmem:[#allocation26_spill] sm:$0xff] %v17154_v55 }
 0x632   : > { %13081 = vmatmul.mubr.msk.f32.gmra.mrb[80].mxu0 %vm597_vm0, %v17138_v6  ;;  %v17158_v6 = vld [vmem:[#allocation2 + $0x10a] sm:$0xff] }
 0x633   : > { %13083 = vmatprep.mubr.msk.f32.mxu0 %vm597_vm0, %v17142_v14  ;;  %18290 = vst [vmem:[#allocation15_spill] sm:$0xff] %v17158_v6  ;;  %v17162_v14 = vld [vmem:[#allocation2 + $0x112] sm:$0xff] }
 0x634   : > { %18291 = vst [vmem:[#allocation16_spill] sm:$0xff] %v17162_v14 }
 0x636   : > { %13084 = vmatmul.mubr.msk.f32.gmra.mrb[82].mxu0 %vm597_vm0, %v17146_v16  ;;  %v17166_v16 = vld [vmem:[#allocation2 + $0x122] sm:$0xff] }
 0x637   : > { %13086 = vmatprep.mubr.msk.f32.mxu0 %vm597_vm0, %v17150_v58  ;;  %18292 = vst [vmem:[#allocation17_spill] sm:$0xff] %v17166_v16  ;;  %v17170_v58 = vld [vmem:[#allocation2 + $0x12a] sm:$0xff] }
 0x638   : > { %18293 = vst [vmem:[#allocation18_spill] sm:$0xff] %v17170_v58 }
 0x63a   : > { %13087 = vmatmul.mubr.msk.f32.gmra.mrb[84].mxu0 %vm597_vm0, %v17154_v55  ;;  %v17174_v55 = vld [vmem:[#allocation2 + $0x13a] sm:$0xff] }
 0x63b   : > { %13089 = vmatprep.mubr.msk.f32.mxu0 %vm597_vm0, %v17158_v6  ;;  %18294 = vst [vmem:[#allocation19_spill] sm:$0xff] %v17174_v55  ;;  %v17178_v6 = vld [vmem:[#allocation2 + $0x142] sm:$0xff] }
 0x63e   : > { %13090 = vmatmul.mubr.msk.f32.gmra.mrb[86].mxu0 %vm597_vm0, %v17162_v14  ;;  %v17182_v14 = vld [vmem:[#allocation2 + $0x152] sm:$0xff] }
 0x63f   : > { %13092 = vmatprep.mubr.msk.f32.mxu0 %vm597_vm0, %v17166_v16  ;;  %v17186_v16 = vld [vmem:[#allocation2 + $0x15a] sm:$0xff] }
 0x640   : > { %18295 = vst [vmem:[#allocation20_spill] sm:$0xff] %v17186_v16 }
 0x642   : > { %13093 = vmatmul.mubr.msk.f32.gmra.mrb[88].mxu0 %vm597_vm0, %v17170_v58  ;;  %v17190_v58 = vld [vmem:[#allocation2 + $0x16a] sm:$0xff] }
 0x643   : > { %13095 = vmatprep.mubr.msk.f32.mxu0 %vm597_vm0, %v17174_v55  ;;  %v17194_v55 = vld [vmem:[#allocation2 + $0x172] sm:$0xff] }
 0x644   : > { %18296 = vst [vmem:[#allocation21_spill] sm:$0xff] %v17194_v55 }
 0x646   : > { %13096 = vmatmul.mubr.msk.f32.gmra.mrb[90].mxu0 %vm597_vm0, %v17178_v6 }
 0x647   : > { %13098 = vmatprep.mubr.msk.f32.mxu0 %vm597_vm0, %v17182_v14 }
 0x64a   : > { %13099 = vmatmul.mubr.msk.f32.gmra.mrb[92].mxu0 %vm597_vm0, %v17186_v16  ;;  %v18297_v16 = vld [vmem:[#allocation62_spill] sm:$0xff] }
 0x64b   : > { %13101 = vmatprep.mubr.msk.f32.mxu0 %vm597_vm0, %v17190_v58 }
 0x64e   : > { %13102 = vmatmul.mubr.msk.f32.gmra.mrb[94].mxu0 %vm597_vm0, %v17194_v55  ;;  %v18298_v55 = vld [vmem:[#allocation63_spill] sm:$0xff] }
 0x64f   : > { %13112 = vmatprep.mubr.msk.f32.mxu0 %vm597_vm0, %v16940_v12  ;;  %v17262_v12 = vld [vmem:[#allocation2 + $0x180] sm:$0xff] }
 0x652   : > { %13113 = vmatmul.mubr.msk.f32.vlgmr.msra.gmra.mrb[64].mxu0 %vm597_vm0, %v16946_v24  ;;  %v17266_v24 = vld [vmem:[#allocation2 + $0x188] sm:$0xff] }
 0x653   : > { %13723 = vmatpush3.bf16.msra.mxu0 %v18272_v53  ;;  %13115 = vmatprep.mubr.msk.f32.mxu0 %vm597_vm0, %v16950_v26  ;;  %v18299_v53 = vld [vmem:[#allocation64_spill] sm:$0xff] }
 0x654   : > { %13725 = vmatprep.subr.bf16.mxu0 %v18297_v16 }
 0x656   : > { %13116 = vmatmul.mubr.msk.f32.gmra.mrb[66].mxu0 %vm597_vm0, %v16956_v31 }
 0x657   : > { %13118 = vmatprep.mubr.msk.f32.mxu0 %vm597_vm0, %v16960_v28  ;;  %13727 = vmatpush3.bf16.msra.mxu0 %v18297_v16  ;;  %v18300_v16 = vld [vmem:[#allocation65_spill] sm:$0xff] }
 0x658   : > { %13729 = vmatprep.subr.bf16.mxu0 %v18298_v55 }
 0x65a   : > { %13119 = vmatmul.mubr.msk.f32.gmra.mrb[68].mxu0 %vm597_vm0, %v16964_v37 }
 0x65b   : > { %13121 = vmatprep.mubr.msk.f32.mxu0 %vm597_vm0, %v16968_v2 }
 0x65e   : > { %13122 = vmatmul.mubr.msk.f32.gmra.mrb[70].mxu0 %vm597_vm0, %v16972_v8 }
 0x65f   : > { %13124 = vmatprep.mubr.msk.f32.mxu0 %vm597_vm0, %v16976_v51 }
 0x662   : > { %13125 = vmatmul.mubr.msk.f32.gmra.mrb[72].mxu0 %vm597_vm0, %v16981_v35 }
 0x663   : > { %13127 = vmatprep.mubr.msk.f32.mxu0 %vm597_vm0, %v16986_v30 }
 0x666   : > { %13128 = vmatmul.mubr.msk.f32.gmra.mrb[74].mxu0 %vm597_vm0, %v16993_v54 }
 0x667   : > { %13130 = vmatprep.mubr.msk.f32.mxu0 %vm597_vm0, %v16998_v38 }
 0x66a   : > { %13131 = vmatmul.mubr.msk.f32.gmra.mrb[76].mxu0 %vm597_vm0, %v17003_v56 }
 0x66b   : > { %13133 = vmatprep.mubr.msk.f32.mxu0 %vm597_vm0, %v17008_v29 }
 0x66e   : > { %13134 = vmatmul.mubr.msk.f32.gmra.mrb[78].mxu0 %vm597_vm0, %v17012_v46 }
 0x66f   : > { %13136 = vmatprep.mubr.msk.f32.mxu0 %vm597_vm0, %v17016_v10 }
 0x672   : > { %13137 = vmatmul.mubr.msk.f32.gmra.mrb[80].mxu0 %vm597_vm0, %v17020_v41 }
 0x673   : > { %13139 = vmatprep.mubr.msk.f32.mxu0 %vm597_vm0, %v17024_v50 }
 0x676   : > { %13140 = vmatmul.mubr.msk.f32.gmra.mrb[82].mxu0 %vm597_vm0, %v17028_v25 }
 0x677   : > { %13142 = vmatprep.mubr.msk.f32.mxu0 %vm597_vm0, %v17032_v17 }
 0x67a   : > { %13143 = vmatmul.mubr.msk.f32.gmra.mrb[84].mxu0 %vm597_vm0, %v17036_v18 }
 0x67b   : > { %13145 = vmatprep.mubr.msk.f32.mxu0 %vm597_vm0, %v17040_v27 }
 0x67e   : > { %13146 = vmatmul.mubr.msk.f32.gmra.mrb[86].mxu0 %vm597_vm0, %v17044_v15 }
 0x67f   : > { %13148 = vmatprep.mubr.msk.f32.mxu0 %vm597_vm0, %v17048_v5 }
 0x682   : > { %13149 = vmatmul.mubr.msk.f32.gmra.mrb[88].mxu0 %vm597_vm0, %v17052_v57 }
 0x683   : > { %13151 = vmatprep.mubr.msk.f32.mxu0 %vm597_vm0, %v17056_v4 }
 0x686   : > { %13152 = vmatmul.mubr.msk.f32.gmra.mrb[90].mxu0 %vm597_vm0, %v17060_v33 }
 0x687   : > { %13154 = vmatprep.mubr.msk.f32.mxu0 %vm597_vm0, %v17064_v20 }
 0x68a   : > { %13155 = vmatmul.mubr.msk.f32.gmra.mrb[92].mxu0 %vm597_vm0, %v17068_v9 }
 0x68b   : > { %13157 = vmatprep.mubr.msk.f32.mxu0 %vm597_vm0, %v17262_v12 }
 0x68e   : > { %13158 = vmatmul.mubr.msk.f32.gmra.mrb[94].mxu0 %vm597_vm0, %v17266_v24 }
 0x68f   : > { %13168 = vmatprep.mubr.msk.f32.mxu0 %vm597_vm0, %v16727_v3  ;;  %v18301_v3 = vld [vmem:[#allocation41_spill] sm:$0xff] }
 0x692   : > { %13169 = vmatmul.mubr.msk.f32.vlgmr.msra.gmra.mrb[64].mxu0 %vm597_vm0, %v16734_v49  ;;  %v18302_v49 = vld [vmem:[#allocation42_spill] sm:$0xff] }
 0x693   : > { %13731 = vmatpush3.bf16.msra.mxu0 %v18298_v55  ;;  %13171 = vmatprep.mubr.msk.f32.mxu0 %vm597_vm0, %v16743_v23  ;;  %v18303_v23 = vld [vmem:[#allocation43_spill] sm:$0xff]  ;;  %v18316_v55 = vld [vmem:[#allocation54_spill] sm:$0xff] }
 0x694   : > { %13733 = vmatprep.subr.bf16.mxu0 %v18299_v53 }
 0x696   : > { %13172 = vmatmul.mubr.msk.f32.gmra.mrb[66].mxu0 %vm597_vm0, %v16750_v34  ;;  %v17334_v34 = vld [vmem:[#allocation2 + $0x181] sm:$0xff] }
 0x697   : > { %13174 = vmatprep.mubr.msk.f32.mxu0 %vm597_vm0, %v16759_v60  ;;  %13735 = vmatpush3.bf16.msra.mxu0 %v18299_v53  ;;  %v17338_v60 = vld [vmem:[#allocation2 + $0x189] sm:$0xff] }
 0x698   : > { %13737 = vmatprep.subr.bf16.mxu0 %v18300_v16  ;;  %v18317_v53 = vld [vmem:[#allocation55_spill] sm:$0xff] }
 0x69a   : > { %13175 = vmatmul.mubr.msk.f32.gmra.mrb[68].mxu0 %vm597_vm0, %v16766_v63  ;;  %v18304_v63 = vld [vmem:[#allocation44_spill] sm:$0xff] }
 0x69b   : > { %13177 = vmatprep.mubr.msk.f32.mxu0 %vm597_vm0, %v16775_v32  ;;  %v18305_v32 = vld [vmem:[#allocation45_spill] sm:$0xff] }
 0x69e   : > { %13178 = vmatmul.mubr.msk.f32.gmra.mrb[70].mxu0 %vm597_vm0, %v16782_v45  ;;  %v18306_v45 = vld [vmem:[#allocation24_spill] sm:$0xff] }
 0x69f   : > { %13180 = vmatprep.mubr.msk.f32.mxu0 %vm597_vm0, %v16791_v44  ;;  %v18307_v44 = vld [vmem:[#allocation46_spill] sm:$0xff] }
 0x6a2   : > { %13181 = vmatmul.mubr.msk.f32.gmra.mrb[72].mxu0 %vm597_vm0, %v16798_v62  ;;  %v18308_v62 = vld [vmem:[#allocation47_spill] sm:$0xff] }
 0x6a3   : > { %13183 = vmatprep.mubr.msk.f32.mxu0 %vm597_vm0, %v16807_v47  ;;  %v18309_v47 = vld [vmem:[#allocation25_spill] sm:$0xff] }
 0x6a6   : > { %13184 = vmatmul.mubr.msk.f32.gmra.mrb[74].mxu0 %vm597_vm0, %v16814_v13  ;;  %v18311_v13 = vld [vmem:[#allocation49_spill] sm:$0xff] }
 0x6a7   : > { %13186 = vmatprep.mubr.msk.f32.mxu0 %vm597_vm0, %v16823_v42  ;;  %v18312_v42 = vld [vmem:[#allocation50_spill] sm:$0xff] }
 0x6aa   : > { %13187 = vmatmul.mubr.msk.f32.gmra.mrb[76].mxu0 %vm597_vm0, %v16830_v19  ;;  %v18313_v19 = vld [vmem:[#allocation51_spill] sm:$0xff] }
 0x6ab   : > { %13189 = vmatprep.mubr.msk.f32.mxu0 %vm597_vm0, %v16839_v36  ;;  %v18314_v36 = vld [vmem:[#allocation52_spill] sm:$0xff] }
 0x6ae   : > { %13190 = vmatmul.mubr.msk.f32.gmra.mrb[78].mxu0 %vm597_vm0, %v16846_v1  ;;  %v18315_v1 = vld [vmem:[#allocation53_spill] sm:$0xff] }
 0x6af   : > { %13192 = vmatprep.mubr.msk.f32.mxu0 %vm597_vm0, %v16855_v59 }
 0x6b2   : > { %13193 = vmatmul.mubr.msk.f32.gmra.mrb[80].mxu0 %vm597_vm0, %v16862_v61 }
 0x6b3   : > { %13195 = vmatprep.mubr.msk.f32.mxu0 %vm597_vm0, %v16871_v11 }
 0x6b6   : > { %13196 = vmatmul.mubr.msk.f32.gmra.mrb[82].mxu0 %vm597_vm0, %v16878_v22 }
 0x6b7   : > { %13198 = vmatprep.mubr.msk.f32.mxu0 %vm597_vm0, %v16887_v52 }
 0x6ba   : > { %13199 = vmatmul.mubr.msk.f32.gmra.mrb[84].mxu0 %vm597_vm0, %v16894_v48 }
 0x6bb   : > { %13201 = vmatprep.mubr.msk.f32.mxu0 %vm597_vm0, %v16902_v7 }
 0x6be   : > { %13202 = vmatmul.mubr.msk.f32.gmra.mrb[86].mxu0 %vm597_vm0, %v16908_v0 }
 0x6bf   : > { %13204 = vmatprep.mubr.msk.f32.mxu0 %vm597_vm0, %v16913_v40 }
 0x6c2   : > { %13205 = vmatmul.mubr.msk.f32.gmra.mrb[88].mxu0 %vm597_vm0, %v16918_v39 }
 0x6c3   : > { %13207 = vmatprep.mubr.msk.f32.mxu0 %vm597_vm0, %v16922_v43 }
 0x6c6   : > { %13208 = vmatmul.mubr.msk.f32.gmra.mrb[90].mxu0 %vm597_vm0, %v18301_v3 }
 0x6c7   : > { %13210 = vmatprep.mubr.msk.f32.mxu0 %vm597_vm0, %v18302_v49 }
 0x6ca   : > { %13211 = vmatmul.mubr.msk.f32.gmra.mrb[92].mxu0 %vm597_vm0, %v18303_v23 }
 0x6cb   : > { %13213 = vmatprep.mubr.msk.f32.mxu0 %vm597_vm0, %v17334_v34 }
 0x6ce   : > { %13214 = vmatmul.mubr.msk.f32.gmra.mrb[94].mxu0 %vm597_vm0, %v17338_v60 }
 0x6cf   : > { %13224 = vmatprep.mubr.msk.f32.mxu0 %vm597_vm0, %v17074_v21  ;;  %v18310_v21 = vld [vmem:[#allocation48_spill] sm:$0xff] }
 0x6d2   : > { %13225 = vmatmul.mubr.msk.f32.vlgmr.msra.gmra.mrb[64].mxu0 %vm597_vm0, %v18304_v63  ;;  %v18319_v63 = vld [vmem:[#allocation57_spill] sm:$0xff] }
 0x6d3   : > { %13739 = vmatpush3.bf16.msra.mxu0 %v18300_v16  ;;  %13227 = vmatprep.mubr.msk.f32.mxu0 %vm597_vm0, %v18305_v32  ;;  %v18318_v16 = vld [vmem:[#allocation56_spill] sm:$0xff] }
 0x6d4   : > { %13741 = vmatprep.subr.bf16.mxu0 %v18306_v45 }
 0x6d6   : > { %13228 = vmatmul.mubr.msk.f32.gmra.mrb[66].mxu0 %vm597_vm0, %v18307_v44 }
 0x6d7   : > { %13230 = vmatprep.mubr.msk.f32.mxu0 %vm597_vm0, %v18308_v62  ;;  %13743 = vmatpush3.bf16.msra.mxu0 %v18306_v45  ;;  %v18320_v45 = vld [vmem:[#allocation58_spill] sm:$0xff] }
 0x6d8   : > { %13745 = vmatprep.subr.bf16.mxu0 %v18309_v47 }
 0x6da   : > { %13231 = vmatmul.mubr.msk.f32.gmra.mrb[68].mxu0 %vm597_vm0, %v18310_v21 }
 0x6db   : > { %13233 = vmatprep.mubr.msk.f32.mxu0 %vm597_vm0, %v18311_v13 }
 0x6de   : > { %13234 = vmatmul.mubr.msk.f32.gmra.mrb[70].mxu0 %vm597_vm0, %v18312_v42 }
 0x6df   : > { %13236 = vmatprep.mubr.msk.f32.mxu0 %vm597_vm0, %v18313_v19  ;;  %v18321_v19 = vld [vmem:[#allocation59_spill] sm:$0xff] }
 0x6e2   : > { %13237 = vmatmul.mubr.msk.f32.gmra.mrb[72].mxu0 %vm597_vm0, %v18314_v36  ;;  %v18322_v36 = vld [vmem:[#allocation60_spill] sm:$0xff] }
 0x6e3   : > { %13239 = vmatprep.mubr.msk.f32.mxu0 %vm597_vm0, %v18315_v1  ;;  %v18323_v1 = vld [vmem:[#allocation61_spill] sm:$0xff] }
 0x6e6   : > { %13240 = vmatmul.mubr.msk.f32.gmra.mrb[74].mxu0 %vm597_vm0, %v18316_v55  ;;  %v18324_v55 = vld [vmem:[#allocation26_spill] sm:$0xff] }
 0x6e7   : > { %13242 = vmatprep.mubr.msk.f32.mxu0 %vm597_vm0, %v18317_v53  ;;  %v18325_v53 = vld [vmem:[#allocation15_spill] sm:$0xff] }
 0x6ea   : > { %13243 = vmatmul.mubr.msk.f32.gmra.mrb[76].mxu0 %vm597_vm0, %v18318_v16  ;;  %v18326_v16 = vld [vmem:[#allocation16_spill] sm:$0xff] }
 0x6eb   : > { %13245 = vmatprep.mubr.msk.f32.mxu0 %vm597_vm0, %v18319_v63  ;;  %v18327_v63 = vld [vmem:[#allocation17_spill] sm:$0xff] }
 0x6ee   : > { %13246 = vmatmul.mubr.msk.f32.gmra.mrb[78].mxu0 %vm597_vm0, %v18320_v45  ;;  %v18328_v45 = vld [vmem:[#allocation18_spill] sm:$0xff] }
 0x6ef   : > { %13248 = vmatprep.mubr.msk.f32.mxu0 %vm597_vm0, %v18321_v19  ;;  %v18329_v19 = vld [vmem:[#allocation19_spill] sm:$0xff] }
 0x6f2   : > { %13249 = vmatmul.mubr.msk.f32.gmra.mrb[80].mxu0 %vm597_vm0, %v18322_v36 }
 0x6f3   : > { %13251 = vmatprep.mubr.msk.f32.mxu0 %vm597_vm0, %v18323_v1 }
 0x6f6   : > { %13252 = vmatmul.mubr.msk.f32.gmra.mrb[82].mxu0 %vm597_vm0, %v18324_v55  ;;  %v18330_v55 = vld [vmem:[#allocation20_spill] sm:$0xff] }
 0x6f7   : > { %13254 = vmatprep.mubr.msk.f32.mxu0 %vm597_vm0, %v18325_v53 }
 0x6fa   : > { %13255 = vmatmul.mubr.msk.f32.gmra.mrb[84].mxu0 %vm597_vm0, %v18326_v16  ;;  %v18331_v16 = vld [vmem:[#allocation21_spill] sm:$0xff] }
 0x6fb   : > { %13257 = vmatprep.mubr.msk.f32.mxu0 %vm597_vm0, %v18327_v63  ;;  %v17406_v63 = vld [vmem:[#allocation2 + $0x182] sm:$0xff] }
 0x6fe   : > { %13258 = vmatmul.mubr.msk.f32.gmra.mrb[86].mxu0 %vm597_vm0, %v18328_v45 }
 0x6ff   : > { %13260 = vmatprep.mubr.msk.f32.mxu0 %vm597_vm0, %v18329_v19  ;;  %v17410_v19 = vld [vmem:[#allocation2 + $0x18a] sm:$0xff] }
 0x700   : > { %18332 = vst [vmem:[#allocation22_spill] sm:$0xff] %v17410_v19 }
 0x702   : > { %13261 = vmatmul.mubr.msk.f32.gmra.mrb[88].mxu0 %vm597_vm0, %v17178_v6 }
 0x703   : > { %13263 = vmatprep.mubr.msk.f32.mxu0 %vm597_vm0, %v17182_v14 }
 0x706   : > { %13264 = vmatmul.mubr.msk.f32.gmra.mrb[90].mxu0 %vm597_vm0, %v18330_v55 }
 0x707   : > { %13266 = vmatprep.mubr.msk.f32.mxu0 %vm597_vm0, %v17190_v58 }
 0x70a   : > { %13267 = vmatmul.mubr.msk.f32.gmra.mrb[92].mxu0 %vm597_vm0, %v18331_v16  ;;  %v18333_v16 = vld [vmem:[#allocation27_spill] sm:$0xff] }
 0x70b   : > { %13269 = vmatprep.mubr.msk.f32.mxu0 %vm597_vm0, %v17406_v63 }
 0x70e   : > { %13270 = vmatmul.mubr.msk.f32.gmra.mrb[94].mxu0 %vm597_vm0, %v17410_v19  ;;  %v18334_v19 = vld [vmem:[#allocation28_spill] sm:$0xff] }
 0x70f   : > { %13280 = vmatprep.mubr.msk.f32.mxu0 %vm597_vm0, %v16950_v26  ;;  %v18336_v26 = vld [vmem:[#allocation30_spill] sm:$0xff] }
 0x712   : > { %13281 = vmatmul.mubr.msk.f32.vlgmr.msra.gmra.mrb[64].mxu0 %vm597_vm0, %v16956_v31  ;;  %v8742_v31 = vld [vmem:[#allocation2 + $0x69] sm:$0xff] }
 0x713   : > { %13747 = vmatpush3.bf16.msra.mxu0 %v18309_v47  ;;  %13283 = vmatprep.mubr.msk.f32.mxu0 %vm597_vm0, %v16960_v28  ;;  %v8743_v28 = vld [vmem:[#allocation2 + $0x79] sm:$0xff] }
 0x714   : > { %13749 = vmatprep.subr.bf16.mxu0 %v18333_v16 }
 0x716   : > { %13284 = vmatmul.mubr.msk.f32.gmra.mrb[66].mxu0 %vm597_vm0, %v16964_v37  ;;  %v8744_v37 = vld [vmem:[#allocation2 + $0x81] sm:$0xff] }
 0x717   : > { %13286 = vmatprep.mubr.msk.f32.mxu0 %vm597_vm0, %v16968_v2  ;;  %13751 = vmatpush3.bf16.msra.mxu0 %v18333_v16  ;;  %v8745_v2 = vld [vmem:[#allocation2 + $0x91] sm:$0xff] }
 0x718   : > { %13753 = vmatprep.subr.bf16.mxu0 %v18334_v19 }
 0x71a   : > { %13287 = vmatmul.mubr.msk.f32.gmra.mrb[68].mxu0 %vm597_vm0, %v16972_v8  ;;  %v8746_v8 = vld [vmem:[#allocation2 + $0x99] sm:$0xff] }
 0x71b   : > { %13289 = vmatprep.mubr.msk.f32.mxu0 %vm597_vm0, %v16976_v51  ;;  %v8747_v51 = vld [vmem:[#allocation2 + $0xa9] sm:$0xff] }
 0x71e   : > { %13290 = vmatmul.mubr.msk.f32.gmra.mrb[70].mxu0 %vm597_vm0, %v16981_v35  ;;  %v8748_v35 = vld [vmem:[#allocation2 + $0xb1] sm:$0xff] }
 0x71f   : > { %13292 = vmatprep.mubr.msk.f32.mxu0 %vm597_vm0, %v16986_v30  ;;  %v8749_v30 = vld [vmem:[#allocation2 + $0xc1] sm:$0xff] }
 0x722   : > { %13293 = vmatmul.mubr.msk.f32.gmra.mrb[72].mxu0 %vm597_vm0, %v16993_v54  ;;  %v8750_v54 = vld [vmem:[#allocation2 + $0xc9] sm:$0xff] }
 0x723   : > { %13295 = vmatprep.mubr.msk.f32.mxu0 %vm597_vm0, %v16998_v38  ;;  %v18346_v38 = vld [vmem:[#allocation59_spill] sm:$0xff] }
 0x726   : > { %13296 = vmatmul.mubr.msk.f32.gmra.mrb[74].mxu0 %vm597_vm0, %v17003_v56  ;;  %v8741_v56 = vld [vmem:[#allocation2 + $0x61] sm:$0xff] }
 0x727   : > { %13298 = vmatprep.mubr.msk.f32.mxu0 %vm597_vm0, %v17008_v29  ;;  %v18347_v29 = vld [vmem:[#allocation26_spill] sm:$0xff] }
 0x72a   : > { %13299 = vmatmul.mubr.msk.f32.gmra.mrb[76].mxu0 %vm597_vm0, %v17012_v46  ;;  %v18348_v46 = vld [vmem:[#allocation16_spill] sm:$0xff] }
 0x72b   : > { %13301 = vmatprep.mubr.msk.f32.mxu0 %vm597_vm0, %v17016_v10  ;;  %v18349_v10 = vld [vmem:[#allocation17_spill] sm:$0xff] }
 0x72e   : > { %13302 = vmatmul.mubr.msk.f32.gmra.mrb[78].mxu0 %vm597_vm0, %v17020_v41  ;;  %v18350_v41 = vld [vmem:[#allocation19_spill] sm:$0xff] }
 0x72f   : > { %13304 = vmatprep.mubr.msk.f32.mxu0 %vm597_vm0, %v17024_v50  ;;  %v18351_v50 = vld [vmem:[#allocation21_spill] sm:$0xff] }
 0x732   : > { %13305 = vmatmul.mubr.msk.f32.gmra.mrb[80].mxu0 %vm597_vm0, %v17028_v25  ;;  %v9152_v25 = vld [vmem:[#allocation2 + $0x19a] sm:$0xff] }
 0x733   : > { %13307 = vmatprep.mubr.msk.f32.mxu0 %vm597_vm0, %v17032_v17  ;;  %v18352_v17 = vld [vmem:[#allocation22_spill] sm:$0xff] }
 0x736   : > { %13308 = vmatmul.mubr.msk.f32.gmra.mrb[82].mxu0 %vm597_vm0, %v17036_v18  ;;  %v17600_v18 = vld [vmem:[%s17934_s8] ss:$0 sm:$0xff] }
 0x737   : > { %13310 = vmatprep.mubr.msk.f32.mxu0 %vm597_vm0, %v17040_v27 }
 0x73a   : > { %13311 = vmatmul.mubr.msk.f32.gmra.mrb[84].mxu0 %vm597_vm0, %v17044_v15  ;;  %v8382_v15 = vld [vmem:[#allocation2 + $0x198] sm:$0xff] }
 0x73b   : > { %13313 = vmatprep.mubr.msk.f32.mxu0 %vm597_vm0, %v17048_v5  ;;  %v8740_v5 = vld [vmem:[#allocation2 + $0x51] sm:$0xff] }
 0x73e   : > { %13314 = vmatmul.mubr.msk.f32.gmra.mrb[86].mxu0 %vm597_vm0, %v17052_v57  ;;  %v8383_v57 = vld [vmem:[#allocation2 + $0x1a0] sm:$0xff] }
 0x73f   : > { %13316 = vmatprep.mubr.msk.f32.mxu0 %vm597_vm0, %v17056_v4  ;;  %v8737_v4 = vld [vmem:[#allocation2 + $0x31] sm:$0xff] }
 0x742   : > { %13317 = vmatmul.mubr.msk.f32.gmra.mrb[88].mxu0 %vm597_vm0, %v17060_v33  ;;  %v8738_v33 = vld [vmem:[#allocation2 + $0x39] sm:$0xff] }
 0x743   : > { %13319 = vmatprep.mubr.msk.f32.mxu0 %vm597_vm0, %v17064_v20  ;;  %v8739_v20 = vld [vmem:[#allocation2 + $0x49] sm:$0xff] }
 0x746   : > { %13320 = vmatmul.mubr.msk.f32.gmra.mrb[90].mxu0 %vm597_vm0, %v17068_v9  ;;  %v18335_v9 = vld [vmem:[#allocation29_spill] sm:$0xff] }
 0x747   : > { %13322 = vmatprep.mubr.msk.f32.mxu0 %vm597_vm0, %v17262_v12 }
 0x74a   : > { %13323 = vmatmul.mubr.msk.f32.gmra.mrb[92].mxu0 %vm597_vm0, %v17266_v24  ;;  %v17607_v24 = vld [vmem:[%s18247_s15] ss:$0 sm:$0xff] }
 0x74b   : > { %13325 = vmatprep.mubr.msk.f32.mxu0 %vm597_vm0, %v8382_v15 }
 0x74e   : > { %13326 = vmatmul.mubr.msk.f32.gmra.mrb[94].mxu0 %vm597_vm0, %v8383_v57 }
 0x74f   : > { %13336 = vmatprep.mubr.msk.f32.mxu0 %vm597_vm0, %v8737_v4 }
 0x752   : > { %13337 = vmatmul.mubr.msk.f32.vlgmr.msra.gmra.mrb[64].mxu0 %vm597_vm0, %v8738_v33 }
 0x753   : > { %13755 = vmatpush3.bf16.msra.mxu0 %v18334_v19  ;;  %13339 = vmatprep.mubr.msk.f32.mxu0 %vm597_vm0, %v8739_v20 }
 0x754   : > { %13757 = vmatprep.subr.bf16.mxu0 %v18335_v9 }
 0x756   : > { %13340 = vmatmul.mubr.msk.f32.gmra.mrb[66].mxu0 %vm597_vm0, %v8740_v5 }
 0x757   : > { %13342 = vmatprep.mubr.msk.f32.mxu0 %vm597_vm0, %v8741_v56  ;;  %13759 = vmatpush3.bf16.msra.mxu0 %v18335_v9 }
 0x758   : > { %13761 = vmatprep.subr.bf16.mxu0 %v18336_v26 }
 0x75a   : > { %13343 = vmatmul.mubr.msk.f32.gmra.mrb[68].mxu0 %vm597_vm0, %v8742_v31 }
 0x75b   : > { %13345 = vmatprep.mubr.msk.f32.mxu0 %vm597_vm0, %v8743_v28 }
 0x75e   : > { %13346 = vmatmul.mubr.msk.f32.gmra.mrb[70].mxu0 %vm597_vm0, %v8744_v37 }
 0x75f   : > { %13348 = vmatprep.mubr.msk.f32.mxu0 %vm597_vm0, %v8745_v2  ;;  %v18353_v2 = vld [vmem:[#allocation36_spill] sm:$0xff] }
 0x762   : > { %13349 = vmatmul.mubr.msk.f32.gmra.mrb[72].mxu0 %vm597_vm0, %v8746_v8 }
 0x763   : > { %13351 = vmatprep.mubr.msk.f32.mxu0 %vm597_vm0, %v8747_v51 }
 0x766   : > { %13352 = vmatmul.mubr.msk.f32.gmra.mrb[74].mxu0 %vm597_vm0, %v8748_v35 }
 0x767   : > { %13354 = vmatprep.mubr.msk.f32.mxu0 %vm597_vm0, %v8749_v30 }
 0x76a   : > { %13355 = vmatmul.mubr.msk.f32.gmra.mrb[76].mxu0 %vm597_vm0, %v8750_v54 }
 0x76b   : > { %13357 = vmatprep.mubr.msk.f32.mxu0 %vm597_vm0, %v16855_v59  ;;  %v8767_v59 = vld [vmem:[#allocation2 + $0x199] sm:$0xff] }
 0x76e   : > { %13358 = vmatmul.mubr.msk.f32.gmra.mrb[78].mxu0 %vm597_vm0, %v16862_v61  ;;  %v8768_v61 = vld [vmem:[#allocation2 + $0x1a1] sm:$0xff] }
 0x76f   : > { %13360 = vmatprep.mubr.msk.f32.mxu0 %vm597_vm0, %v16871_v11  ;;  %v18337_v11 = vld [vmem:[#allocation35_spill] sm:$0xff] }
 0x772   : > { %13361 = vmatmul.mubr.msk.f32.gmra.mrb[80].mxu0 %vm597_vm0, %v16878_v22  ;;  %v18338_v22 = vld [vmem:[#allocation51_spill] sm:$0xff] }
 0x773   : > { %13363 = vmatprep.mubr.msk.f32.mxu0 %vm597_vm0, %v16887_v52  ;;  %v18339_v52 = vld [vmem:[#allocation52_spill] sm:$0xff] }
 0x776   : > { %13364 = vmatmul.mubr.msk.f32.gmra.mrb[82].mxu0 %vm597_vm0, %v16894_v48  ;;  %v18340_v48 = vld [vmem:[#allocation53_spill] sm:$0xff] }
 0x777   : > { %13366 = vmatprep.mubr.msk.f32.mxu0 %vm597_vm0, %v16902_v7  ;;  %v18341_v7 = vld [vmem:[#allocation54_spill] sm:$0xff] }
 0x77a   : > { %13367 = vmatmul.mubr.msk.f32.gmra.mrb[84].mxu0 %vm597_vm0, %v16908_v0  ;;  %v18342_v0 = vld [vmem:[#allocation55_spill] sm:$0xff] }
 0x77b   : > { %13369 = vmatprep.mubr.msk.f32.mxu0 %vm597_vm0, %v16913_v40  ;;  %v18343_v40 = vld [vmem:[#allocation56_spill] sm:$0xff] }
 0x77e   : > { %13370 = vmatmul.mubr.msk.f32.gmra.mrb[86].mxu0 %vm597_vm0, %v16918_v39  ;;  %v18344_v39 = vld [vmem:[#allocation57_spill] sm:$0xff] }
 0x77f   : > { %13372 = vmatprep.mubr.msk.f32.mxu0 %vm597_vm0, %v16922_v43  ;;  %v18345_v43 = vld [vmem:[#allocation58_spill] sm:$0xff] }
 0x782   : > { %13373 = vmatmul.mubr.msk.f32.gmra.mrb[88].mxu0 %vm597_vm0, %v18301_v3 }
 0x783   : > { %13375 = vmatprep.mubr.msk.f32.mxu0 %vm597_vm0, %v18302_v49 }
 0x786   : > { %13376 = vmatmul.mubr.msk.f32.gmra.mrb[90].mxu0 %vm597_vm0, %v18303_v23 }
 0x787   : > { %13378 = vmatprep.mubr.msk.f32.mxu0 %vm597_vm0, %v17334_v34  ;;  %v17614_v34 = vld [vmem:[%s18248_s26] ss:$0 sm:$0xff] }
 0x78a   : > { %13379 = vmatmul.mubr.msk.f32.gmra.mrb[92].mxu0 %vm597_vm0, %v17338_v60 }
 0x78b   : > { %13381 = vmatprep.mubr.msk.f32.mxu0 %vm597_vm0, %v8767_v59  ;;  %v18354_v59 = vld [vmem:[#allocation37_spill] sm:$0xff] }
 0x78e   : > { %13382 = vmatmul.mubr.msk.f32.gmra.mrb[94].mxu0 %vm597_vm0, %v8768_v61 }
 0x78f   : > { %13392 = vmatprep.mubr.msk.f32.mxu0 %vm597_vm0, %v18305_v32 }
 0x792   : > { %13393 = vmatmul.mubr.msk.f32.vlgmr.msra.gmra.mrb[64].mxu0 %vm597_vm0, %v18307_v44 }
 0x793   : > { %13395 = vmatprep.mubr.msk.f32.mxu0 %vm597_vm0, %v18308_v62  ;;  %13763 = vmatpush3.bf16.msra.mxu0 %v18336_v26 }
 0x794   : > { %13765 = vmatprep.subr.bf16.mxu0 %v18337_v11 }
 0x796   : > { %13396 = vmatmul.mubr.msk.f32.gmra.mrb[66].mxu0 %vm597_vm0, %v18310_v21 }
 0x797   : > { %13398 = vmatprep.mubr.msk.f32.mxu0 %vm597_vm0, %v18311_v13  ;;  %13767 = vmatpush3.bf16.msra.mxu0 %v18337_v11 }
 0x79a   : > { %13399 = vmatmul.mubr.msk.f32.gmra.mrb[68].mxu0 %vm597_vm0, %v18312_v42 }
 0x79b   : > { %13401 = vmatprep.mubr.msk.f32.mxu0 %vm597_vm0, %v18338_v22 }
 0x79e   : > { %13402 = vmatmul.mubr.msk.f32.gmra.mrb[70].mxu0 %vm597_vm0, %v18339_v52 }
 0x79f   : > { %13404 = vmatprep.mubr.msk.f32.mxu0 %vm597_vm0, %v18340_v48 }
 0x7a2   : > { %13405 = vmatmul.mubr.msk.f32.gmra.mrb[72].mxu0 %vm597_vm0, %v18341_v7 }
 0x7a3   : > { %13407 = vmatprep.mubr.msk.f32.mxu0 %vm597_vm0, %v18342_v0 }
 0x7a6   : > { %13408 = vmatmul.mubr.msk.f32.gmra.mrb[74].mxu0 %vm597_vm0, %v18343_v40 }
 0x7a7   : > { %13410 = vmatprep.mubr.msk.f32.mxu0 %vm597_vm0, %v18344_v39 }
 0x7aa   : > { %13411 = vmatmul.mubr.msk.f32.gmra.mrb[76].mxu0 %vm597_vm0, %v18345_v43 }
 0x7ab   : > { %13413 = vmatprep.mubr.msk.f32.mxu0 %vm597_vm0, %v18346_v38  ;;  %v18355_v38 = vld [vmem:[#allocation38_spill] sm:$0xff] }
 0x7ae   : > { %13414 = vmatmul.mubr.msk.f32.gmra.mrb[78].mxu0 %vm597_vm0, %v18322_v36 }
 0x7af   : > { %13416 = vmatprep.mubr.msk.f32.mxu0 %vm597_vm0, %v18323_v1 }
 0x7b2   : > { %13417 = vmatmul.mubr.msk.f32.gmra.mrb[80].mxu0 %vm597_vm0, %v18347_v29 }
 0x7b3   : > { %13419 = vmatprep.mubr.msk.f32.mxu0 %vm597_vm0, %v18325_v53 }
 0x7b6   : > { %13420 = vmatmul.mubr.msk.f32.gmra.mrb[82].mxu0 %vm597_vm0, %v18348_v46 }
 0x7b7   : > { %13422 = vmatprep.mubr.msk.f32.mxu0 %vm597_vm0, %v18349_v10 }
 0x7ba   : > { %13423 = vmatmul.mubr.msk.f32.gmra.mrb[84].mxu0 %vm597_vm0, %v18328_v45 }
 0x7bb   : > { %13425 = vmatprep.mubr.msk.f32.mxu0 %vm597_vm0, %v18350_v41 }
 0x7be   : > { %13426 = vmatmul.mubr.msk.f32.gmra.mrb[86].mxu0 %vm597_vm0, %v17178_v6  ;;  %v9153_v6 = vld [vmem:[#allocation2 + $0x1a2] sm:$0xff] }
 0x7bf   : > { %13428 = vmatprep.mubr.msk.f32.mxu0 %vm597_vm0, %v17182_v14 }
 0x7c2   : > { %13429 = vmatmul.mubr.msk.f32.gmra.mrb[88].mxu0 %vm597_vm0, %v18330_v55 }
 0x7c3   : > { %13431 = vmatprep.mubr.msk.f32.mxu0 %vm597_vm0, %v17190_v58 }
 0x7c6   : > { %13432 = vmatmul.mubr.msk.f32.gmra.mrb[90].mxu0 %vm597_vm0, %v18351_v50 }
 0x7c7   : > { %13434 = vmatprep.mubr.msk.f32.mxu0 %vm597_vm0, %v17406_v63 }
 0x7ca   : > { %13435 = vmatmul.mubr.msk.f32.gmra.mrb[92].mxu0 %vm597_vm0, %v18352_v17 }
 0x7cb   : > { %13437 = vmatprep.mubr.msk.f32.mxu0 %vm597_vm0, %v9152_v25 }
 0x7ce   : > { %13438 = vmatmul.mubr.msk.f32.gmra.mrb[94].mxu0 %vm597_vm0, %v9153_v6 }
 0x865   : > { %v13394_v14 = vpop.f32.mrb[64].mxu0 }
 0x866   : > { %v9508_v27 = vadd.f32 %v17600_v18, %v13394_v14  ;;  %v9316_v58 = vpop.f32.mrb[65].mxu0 }
 0x867   : > { %v9507_v12 = vadd.f32 %v17600_v18, %v9316_v58  ;;  %v18356_v58 = vld [vmem:[#allocation39_spill] sm:$0xff] }
 0x868   : > { %v9540_v3 = vmul.f32 %v17607_v24, %v9508_v27 }
 0x869   : > { %v9539_v49 = vmul.f32 %v17607_v24, %v9507_v12  ;;  %v13397_v23 = vpop.f32.mrb[66].mxu0 }
 0x86a   : > { %v9572_v60 = vadd.f32 %v17614_v34, %v9540_v3  ;;  %v9510_v32 = vadd.f32 %v17600_v18, %v13397_v23  ;;  %v9326_v44 = vpop.f32.mrb[67].mxu0 }
 0x86b   : > { %v9571_v62 = vadd.f32 %v17614_v34, %v9539_v49  ;;  %v9509_v47 = vadd.f32 %v17600_v18, %v9326_v44 }
 0x86c   : > { %v9542_v21 = vmul.f32 %v17607_v24, %v9510_v32  ;;  %v9604_v36 = vmax.f32 %v9572_v60, 0.0 }
 0x86d   : > { %v9603_v13 = vmax.f32 %v9571_v62, 0.0  ;;  %v9541_v42 = vmul.f32 %v17607_v24, %v9509_v47  ;;  %v13400_v19 = vpop.f32.mrb[68].mxu0 }
 0x86e   : > { %v9574_v1 = vadd.f32 %v17614_v34, %v9542_v21  ;;  %v9512_v55 = vadd.f32 %v17600_v18, %v13400_v19  ;;  %v9336_v53 = vpop.f32.mrb[69].mxu0 }
 0x86f   : > { %v9573_v16 = vadd.f32 %v17614_v34, %v9541_v42  ;;  %v9511_v63 = vadd.f32 %v17600_v18, %v9336_v53  ;;  %13448 = vmatprep.mubr.msk.f32.mxu0 %vm597_vm0, %v9603_v13 }
 0x870   : > { %v9544_v45 = vmul.f32 %v17607_v24, %v9512_v55  ;;  %13449 = vmatmul.mubr.msk.f32.vlgmr.msra.gmra.mrb[96].mxu0 %vm597_vm0, %v9604_v36  ;;  %v9606_v33 = vmax.f32 %v9574_v1, 0.0 }
 0x871   : > { %v9605_v15 = vmax.f32 %v9573_v16, 0.0  ;;  %v9543_v57 = vmul.f32 %v17607_v24, %v9511_v63  ;;  %v13403_v4 = vpop.f32.mrb[70].mxu0 }
 0x872   : > { %v9576_v20 = vadd.f32 %v17614_v34, %v9544_v45  ;;  %v9514_v9 = vadd.f32 %v17600_v18, %v13403_v4  ;;  %v9346_v5 = vpop.f32.mrb[71].mxu0 }
 0x873   : > { %v9575_v56 = vadd.f32 %v17614_v34, %v9543_v57  ;;  %v9513_v26 = vadd.f32 %v17600_v18, %v9346_v5  ;;  %13451 = vmatprep.mubr.msk.f32.mxu1 %vm597_vm0, %v9605_v15 }
 0x874   : > { %v9546_v31 = vmul.f32 %v17607_v24, %v9514_v9  ;;  %13452 = vmatmul.mubr.msk.f32.vlgmr.msra.gmra.mrb[64].mxu1 %vm597_vm0, %v9606_v33  ;;  %v9608_v51 = vmax.f32 %v9576_v20, 0.0 }
 0x875   : > { %v9607_v28 = vmax.f32 %v9575_v56, 0.0  ;;  %v9545_v37 = vmul.f32 %v17607_v24, %v9513_v26  ;;  %13771 = vmatpush3.bf16.msra.mxu1 %v18353_v2  ;;  %v13406_v8 = vpop.f32.mrb[72].mxu0 }
 0x876   : > { %v9578_v35 = vadd.f32 %v17614_v34, %v9546_v31  ;;  %v9516_v30 = vadd.f32 %v17600_v18, %v13406_v8  ;;  %v9356_v54 = vpop.f32.mrb[73].mxu0  ;;  %13773 = vmatprep.subr.bf16.mxu1 %v18354_v59 }
 0x877   : > { %v9577_v61 = vadd.f32 %v17614_v34, %v9545_v37  ;;  %v9515_v11 = vadd.f32 %v17600_v18, %v9356_v54  ;;  %13454 = vmatprep.mubr.msk.f32.mxu1 %vm597_vm0, %v9607_v28 }
 0x878   : > { %v9548_v22 = vmul.f32 %v17607_v24, %v9516_v30  ;;  %13455 = vmatmul.mubr.msk.f32.gmra.mrb[66].mxu1 %vm597_vm0, %v9608_v51  ;;  %v9610_v0 = vmax.f32 %v9578_v35, 0.0 }
 0x879   : > { %v9609_v52 = vmax.f32 %v9577_v61, 0.0  ;;  %v9547_v48 = vmul.f32 %v17607_v24, %v9515_v11  ;;  %v13409_v7 = vpop.f32.mrb[74].mxu0  ;;  %13775 = vmatpush3.bf16.msra.mxu1 %v18354_v59 }
 0x87a   : > { %v9580_v40 = vadd.f32 %v17614_v34, %v9548_v22  ;;  %v9518_v39 = vadd.f32 %v17600_v18, %v13409_v7  ;;  %v9366_v43 = vpop.f32.mrb[75].mxu0  ;;  %13777 = vmatprep.subr.bf16.mxu1 %v18355_v38 }
 0x87b   : > { %v9579_v29 = vadd.f32 %v17614_v34, %v9547_v48  ;;  %v9517_v46 = vadd.f32 %v17600_v18, %v9366_v43  ;;  %13457 = vmatprep.mubr.msk.f32.mxu1 %vm597_vm0, %v9609_v52 }
 0x87c   : > { %v9550_v10 = vmul.f32 %v17607_v24, %v9518_v39  ;;  %13458 = vmatmul.mubr.msk.f32.gmra.mrb[68].mxu1 %vm597_vm0, %v9610_v0  ;;  %v9612_v17 = vmax.f32 %v9580_v40, 0.0 }
 0x87d   : > { %v9611_v41 = vmax.f32 %v9579_v29, 0.0  ;;  %v9549_v50 = vmul.f32 %v17607_v24, %v9517_v46  ;;  %v13412_v25 = vpop.f32.mrb[76].mxu0  ;;  %13779 = vmatpush3.bf16.msra.mxu1 %v18355_v38 }
 0x87e   : > { %v9582_v6 = vadd.f32 %v17614_v34, %v9550_v10  ;;  %v9520_v14 = vadd.f32 %v17600_v18, %v13412_v25  ;;  %v9376_v27 = vpop.f32.mrb[77].mxu0  ;;  %13781 = vmatprep.subr.bf16.mxu1 %v18356_v58 }
 0x87f   : > { %v9581_v12 = vadd.f32 %v17614_v34, %v9549_v50  ;;  %v9519_v3 = vadd.f32 %v17600_v18, %v9376_v27  ;;  %13460 = vmatprep.mubr.msk.f32.mxu1 %vm597_vm0, %v9611_v41 }
 0x880   : > { %v9552_v49 = vmul.f32 %v17607_v24, %v9520_v14  ;;  %13461 = vmatmul.mubr.msk.f32.gmra.mrb[70].mxu1 %vm597_vm0, %v9612_v17  ;;  %v9614_v44 = vmax.f32 %v9582_v6, 0.0 }
 0x881   : > { %v9613_v23 = vmax.f32 %v9581_v12, 0.0  ;;  %v9551_v60 = vmul.f32 %v17607_v24, %v9519_v3  ;;  %v13415_v32 = vpop.f32.mrb[78].mxu0  ;;  %13783 = vmatpush3.bf16.msra.mxu1 %v18356_v58 }
 0x882   : > { %v9584_v62 = vadd.f32 %v17614_v34, %v9552_v49  ;;  %v9522_v47 = vadd.f32 %v17600_v18, %v13415_v32  ;;  %v9386_v21 = vpop.f32.mrb[79].mxu0 }
 0x883   : > { %v9583_v13 = vadd.f32 %v17614_v34, %v9551_v60  ;;  %v9521_v42 = vadd.f32 %v17600_v18, %v9386_v21  ;;  %13463 = vmatprep.mubr.msk.f32.mxu1 %vm597_vm0, %v9613_v23 }
 0x884   : > { %v9554_v19 = vmul.f32 %v17607_v24, %v9522_v47  ;;  %13464 = vmatmul.mubr.msk.f32.gmra.mrb[72].mxu1 %vm597_vm0, %v9614_v44  ;;  %v9616_v53 = vmax.f32 %v9584_v62, 0.0 }
 0x885   : > { %v9615_v36 = vmax.f32 %v9583_v13, 0.0  ;;  %v9553_v1 = vmul.f32 %v17607_v24, %v9521_v42  ;;  %v13418_v55 = vpop.f32.mrb[80].mxu0 }
 0x886   : > { %v9586_v16 = vadd.f32 %v17614_v34, %v9554_v19  ;;  %v9524_v63 = vadd.f32 %v17600_v18, %v13418_v55  ;;  %v9396_v45 = vpop.f32.mrb[81].mxu0 }
 0x887   : > { %v9585_v15 = vadd.f32 %v17614_v34, %v9553_v1  ;;  %v9523_v57 = vadd.f32 %v17600_v18, %v9396_v45  ;;  %13466 = vmatprep.mubr.msk.f32.mxu1 %vm597_vm0, %v9615_v36 }
 0x888   : > { %v9556_v4 = vmul.f32 %v17607_v24, %v9524_v63  ;;  %13467 = vmatmul.mubr.msk.f32.gmra.mrb[74].mxu1 %vm597_vm0, %v9616_v53  ;;  %v9618_v5 = vmax.f32 %v9586_v16, 0.0 }
 0x889   : > { %v9617_v33 = vmax.f32 %v9585_v15, 0.0  ;;  %v9555_v20 = vmul.f32 %v17607_v24, %v9523_v57  ;;  %v13421_v9 = vpop.f32.mrb[82].mxu0 }
 0x88a   : > { %v9588_v56 = vadd.f32 %v17614_v34, %v9556_v4  ;;  %v9526_v26 = vadd.f32 %v17600_v18, %v13421_v9  ;;  %v9406_v31 = vpop.f32.mrb[83].mxu0 }
 0x88b   : > { %v9587_v28 = vadd.f32 %v17614_v34, %v9555_v20  ;;  %v9525_v37 = vadd.f32 %v17600_v18, %v9406_v31  ;;  %13469 = vmatprep.mubr.msk.f32.mxu1 %vm597_vm0, %v9617_v33 }
 0x88c   : > { %v9558_v2 = vmul.f32 %v17607_v24, %v9526_v26  ;;  %13470 = vmatmul.mubr.msk.f32.gmra.mrb[76].mxu1 %vm597_vm0, %v9618_v5  ;;  %v9620_v30 = vmax.f32 %v9588_v56, 0.0 }
 0x88d   : > { %v9619_v8 = vmax.f32 %v9587_v28, 0.0  ;;  %v9557_v51 = vmul.f32 %v17607_v24, %v9525_v37  ;;  %v13424_v35 = vpop.f32.mrb[84].mxu0 }
 0x88e   : > { %v9590_v54 = vadd.f32 %v17614_v34, %v9558_v2  ;;  %v9528_v59 = vadd.f32 %v17600_v18, %v13424_v35  ;;  %v9416_v61 = vpop.f32.mrb[85].mxu0 }
 0x88f   : > { %v9589_v11 = vadd.f32 %v17614_v34, %v9557_v51  ;;  %v9527_v22 = vadd.f32 %v17600_v18, %v9416_v61  ;;  %13472 = vmatprep.mubr.msk.f32.mxu1 %vm597_vm0, %v9619_v8  ;;  %v14597_v61 = vld [vmem:[%s14995_s17 + $0x118] sm:$0xff] }
 0x890   : > { %v9560_v52 = vmul.f32 %v17607_v24, %v9528_v59  ;;  %13473 = vmatmul.mubr.msk.f32.gmra.mrb[78].mxu1 %vm597_vm0, %v9620_v30  ;;  %v9622_v40 = vmax.f32 %v9590_v54, 0.0  ;;  %v14595_v59 = vld [vmem:[%s14995_s17 + $0x108] sm:$0xff] }
 0x891   : > { %v9621_v48 = vmax.f32 %v9589_v11, 0.0  ;;  %v9559_v7 = vmul.f32 %v17607_v24, %v9527_v22  ;;  %v13427_v0 = vpop.f32.mrb[86].mxu0  ;;  %v14598_v11 = vld [vmem:[%s14995_s17 + $0x120] sm:$0xff]  ;;  %v14599_v22 = vld [vmem:[%s14995_s17 + $0x128] sm:$0xff] }
 0x892   : > { %v9592_v39 = vadd.f32 %v17614_v34, %v9560_v52  ;;  %v9530_v43 = vadd.f32 %v17600_v18, %v13427_v0  ;;  %v9426_v38 = vpop.f32.mrb[87].mxu0  ;;  %v14600_v52 = vld [vmem:[%s14995_s17 + $0x130] sm:$0xff]  ;;  %v14603_v0 = vld [vmem:[%s14995_s17 + $0x148] sm:$0xff] }
 0x893   : > { %v9591_v29 = vadd.f32 %v17614_v34, %v9559_v7  ;;  %v9529_v46 = vadd.f32 %v17600_v18, %v9426_v38  ;;  %13475 = vmatprep.mubr.msk.f32.mxu1 %vm597_vm0, %v9621_v48  ;;  %v14601_v48 = vld [vmem:[%s14995_s17 + $0x138] sm:$0xff]  ;;  %v14602_v7 = vld [vmem:[%s14995_s17 + $0x140] sm:$0xff]  ;;  %v14607_v38 = vld [vmem:[%s14995_s17 + $0x168] sm:$0xff] }
 0x894   : > { %v9562_v10 = vmul.f32 %v17607_v24, %v9530_v43  ;;  %13476 = vmatmul.mubr.msk.f32.gmra.mrb[80].mxu1 %vm597_vm0, %v9622_v40  ;;  %v9624_v17 = vmax.f32 %v9592_v39, 0.0  ;;  %v14604_v40 = vld [vmem:[%s14995_s17 + $0x150] sm:$0xff]  ;;  %v14605_v39 = vld [vmem:[%s14995_s17 + $0x158] sm:$0xff]  ;;  %v14606_v43 = vld [vmem:[%s14995_s17 + $0x160] sm:$0xff] }
 0x895   : > { %v9623_v41 = vmax.f32 %v9591_v29, 0.0  ;;  %v9561_v50 = vmul.f32 %v17607_v24, %v9529_v46  ;;  %v13430_v25 = vpop.f32.mrb[88].mxu0  ;;  %v14608_v29 = vld [vmem:[%s14995_s17 + $0x170] sm:$0xff]  ;;  %v14609_v46 = vld [vmem:[%s14995_s17 + $0x178] sm:$0xff] }
 0x896   : > { %v9594_v6 = vadd.f32 %v17614_v34, %v9562_v10  ;;  %v9532_v14 = vadd.f32 %v17600_v18, %v13430_v25  ;;  %v9436_v27 = vpop.f32.mrb[89].mxu0  ;;  %v14610_v10 = vld [vmem:[%s14995_s17 + $0x180] sm:$0xff]  ;;  %v14613_v25 = vld [vmem:[%s14995_s17 + $0x198] sm:$0xff] }
 0x897   : > { %v9593_v58 = vadd.f32 %v17614_v34, %v9561_v50  ;;  %v9531_v12 = vadd.f32 %v17600_v18, %v9436_v27  ;;  %13478 = vmatprep.mubr.msk.f32.mxu1 %vm597_vm0, %v9623_v41  ;;  %v14611_v41 = vld [vmem:[%s14995_s17 + $0x188] sm:$0xff]  ;;  %v14612_v50 = vld [vmem:[%s14995_s17 + $0x190] sm:$0xff]  ;;  %v14617_v27 = vld [vmem:[%s14995_s17 + $0x1b8] sm:$0xff] }
 0x898   : > { %v9564_v3 = vmul.f32 %v17607_v24, %v9532_v14  ;;  %13479 = vmatmul.mubr.msk.f32.gmra.mrb[82].mxu1 %vm597_vm0, %v9624_v17  ;;  %v9626_v32 = vmax.f32 %v9594_v6, 0.0  ;;  %v14614_v17 = vld [vmem:[%s14995_s17 + $0x1a0] sm:$0xff]  ;;  %v14615_v6 = vld [vmem:[%s14995_s17 + $0x1a8] sm:$0xff]  ;;  %v14616_v14 = vld [vmem:[%s14995_s17 + $0x1b0] sm:$0xff] }
 0x899   : > { %v9625_v49 = vmax.f32 %v9593_v58, 0.0  ;;  %v9563_v23 = vmul.f32 %v17607_v24, %v9531_v12  ;;  %v13433_v60 = vpop.f32.mrb[90].mxu0  ;;  %v14618_v58 = vld [vmem:[%s14995_s17 + $0x1c0] sm:$0xff]  ;;  %v14619_v12 = vld [vmem:[%s14995_s17 + $0x1c8] sm:$0xff] }
 0x89a   : > { %v9596_v44 = vadd.f32 %v17614_v34, %v9564_v3  ;;  %v9534_v62 = vadd.f32 %v17600_v18, %v13433_v60  ;;  %v9446_v47 = vpop.f32.mrb[91].mxu0  ;;  %v14620_v3 = vld [vmem:[%s14995_s17 + $0x1d0] sm:$0xff]  ;;  %v14623_v60 = vld [vmem:[%s14995_s17 + $0x1e8] sm:$0xff] }
 0x89b   : > { %v9595_v21 = vadd.f32 %v17614_v34, %v9563_v23  ;;  %v9533_v13 = vadd.f32 %v17600_v18, %v9446_v47  ;;  %13481 = vmatprep.mubr.msk.f32.mxu1 %vm597_vm0, %v9625_v49  ;;  %v14621_v49 = vld [vmem:[%s14995_s17 + $0x1d8] sm:$0xff]  ;;  %v14622_v23 = vld [vmem:[%s14995_s17 + $0x1e0] sm:$0xff] }
 0x89c   : > { %v9566_v42 = vmul.f32 %v17607_v24, %v9534_v62  ;;  %13482 = vmatmul.mubr.msk.f32.gmra.mrb[84].mxu1 %vm597_vm0, %v9626_v32  ;;  %v9628_v55 = vmax.f32 %v9596_v44, 0.0  ;;  %v14624_v32 = vld [vmem:[%s14995_s17 + $0x1f0] sm:$0xff]  ;;  %v14625_v44 = vld [vmem:[%s14995_s17 + $0x1f8] sm:$0xff] }
 0x89d   : > { %v9627_v19 = vmax.f32 %v9595_v21, 0.0  ;;  %v9565_v36 = vmul.f32 %v17607_v24, %v9533_v13  ;;  %v13436_v1 = vpop.f32.mrb[92].mxu0  ;;  %v18357_v21 = vld [vmem:[#allocation40_spill] sm:$0xff] }
 0x89e   : > { %v9598_v53 = vadd.f32 %v17614_v34, %v9566_v42  ;;  %v9536_v16 = vadd.f32 %v17600_v18, %v13436_v1  ;;  %v9456_v63 = vpop.f32.mrb[93].mxu0 }
 0x89f   : > { %v9597_v45 = vadd.f32 %v17614_v34, %v9565_v36  ;;  %v9535_v15 = vadd.f32 %v17600_v18, %v9456_v63  ;;  %13484 = vmatprep.mubr.msk.f32.mxu1 %vm597_vm0, %v9627_v19 }
 0x8a0   : > { %v9568_v57 = vmul.f32 %v17607_v24, %v9536_v16  ;;  %13485 = vmatmul.mubr.msk.f32.gmra.mrb[86].mxu1 %vm597_vm0, %v9628_v55  ;;  %v9630_v9 = vmax.f32 %v9598_v53, 0.0 }
 0x8a1   : > { %v9629_v4 = vmax.f32 %v9597_v45, 0.0  ;;  %v9567_v33 = vmul.f32 %v17607_v24, %v9535_v15  ;;  %v13439_v20 = vpop.f32.mrb[94].mxu0 }
 0x8a2   : > { %v9600_v5 = vadd.f32 %v17614_v34, %v9568_v57  ;;  %v9538_v56 = vadd.f32 %v17600_v18, %v13439_v20  ;;  %v9466_v26 = vpop.f32.mrb[95].mxu0 }
 0x8a3   : > { %v9599_v31 = vadd.f32 %v17614_v34, %v9567_v33  ;;  %v9537_v28 = vadd.f32 %v17600_v18, %v9466_v26  ;;  %13487 = vmatprep.mubr.msk.f32.mxu1 %vm597_vm0, %v9629_v4 }
 0x8a4   : > { %v9570_v37 = vmul.f32 %v17607_v24, %v9538_v56  ;;  %13488 = vmatmul.mubr.msk.f32.gmra.mrb[88].mxu1 %vm597_vm0, %v9630_v9  ;;  %v9632_v51 = vmax.f32 %v9600_v5, 0.0 }
 0x8a5   : > { %v9631_v2 = vmax.f32 %v9599_v31, 0.0  ;;  %v9569_v8 = vmul.f32 %v17607_v24, %v9537_v28  ;;  %v14594_v24 = vld [vmem:[%s14995_s17 + $0x100] sm:$0xff] }
 0x8a6   : > { %v9602_v35 = vadd.f32 %v17614_v34, %v9570_v37 }
 0x8a7   : > { %v9601_v30 = vadd.f32 %v17614_v34, %v9569_v8  ;;  %13490 = vmatprep.mubr.msk.f32.mxu1 %vm597_vm0, %v9631_v2  ;;  %v14596_v34 = vld [vmem:[%s14995_s17 + $0x110] sm:$0xff]  ;;  %s11303_s17 = sshll.u32 %s14865_s22, 13  ;;  %s10343_s22 = scalar_lea.sflag [#allocation5], %s14989_s23 }
 0x8a8   : > { %13491 = vmatmul.mubr.msk.f32.gmra.mrb[90].mxu1 %vm597_vm0, %v9632_v51  ;;  %v9634_v54 = vmax.f32 %v9602_v35, 0.0  ;;  %s17877_s16 = scalar_lea.hbm %s18358_s14, %s11303_s17 }
 0x8a9   : > { %v9633_v18 = vmax.f32 %v9601_v30, 0.0 }
 0x8ab   : > { %13493 = vmatprep.mubr.msk.f32.mxu1 %vm597_vm0, %v9633_v18 }
 0x8ac   : > { %13494 = vmatmul.mubr.msk.f32.gmra.mrb[92].mxu1 %vm597_vm0, %v9634_v54 }
 0x8ad   : > { %13512 = vmatprep.mubr.msk.f32.mxu1 %vm799_vm2, %v14594_v24 }
 0x8b0   : > { %13513 = vmatmul.mubr.msk.f32.vlgmr.msra.gmra.mrb[94].mxu1 %vm799_vm2, %v14595_v59 }
 0x8b1   : > { %13515 = vmatprep.mubr.msk.f32.mxu1 %vm799_vm2, %v14596_v34 }
 0x8b4   : > { %13516 = vmatmul.mubr.msk.f32.gmra.mrb[64].mxu1 %vm799_vm2, %v14597_v61 }
 0x8b5   : > { %13518 = vmatprep.mubr.msk.f32.mxu1 %vm799_vm2, %v14598_v11 }
 0x8b8   : > { %13519 = vmatmul.mubr.msk.f32.gmra.mrb[66].mxu1 %vm799_vm2, %v14599_v22 }
 0x8b9   : > { %13521 = vmatprep.mubr.msk.f32.mxu1 %vm799_vm2, %v14600_v52 }
 0x8bc   : > { %13522 = vmatmul.mubr.msk.f32.gmra.mrb[68].mxu1 %vm799_vm2, %v14601_v48 }
 0x8bd   : > { %13524 = vmatprep.mubr.msk.f32.mxu1 %vm799_vm2, %v14602_v7 }
 0x8c0   : > { %13525 = vmatmul.mubr.msk.f32.gmra.mrb[70].mxu1 %vm799_vm2, %v14603_v0 }
 0x8c1   : > { %13527 = vmatprep.mubr.msk.f32.mxu1 %vm799_vm2, %v14604_v40 }
 0x8c4   : > { %13528 = vmatmul.mubr.msk.f32.gmra.mrb[72].mxu1 %vm799_vm2, %v14605_v39 }
 0x8c5   : > { %13530 = vmatprep.mubr.msk.f32.mxu1 %vm799_vm2, %v14606_v43 }
 0x8c8   : > { %13531 = vmatmul.mubr.msk.f32.gmra.mrb[74].mxu1 %vm799_vm2, %v14607_v38 }
 0x8c9   : > { %13533 = vmatprep.mubr.msk.f32.mxu1 %vm799_vm2, %v14608_v29 }
 0x8cc   : > { %13534 = vmatmul.mubr.msk.f32.gmra.mrb[76].mxu1 %vm799_vm2, %v14609_v46 }
 0x8cd   : > { %13536 = vmatprep.mubr.msk.f32.mxu1 %vm799_vm2, %v14610_v10 }
 0x8d0   : > { %13537 = vmatmul.mubr.msk.f32.gmra.mrb[78].mxu1 %vm799_vm2, %v14611_v41 }
 0x8d1   : > { %13539 = vmatprep.mubr.msk.f32.mxu1 %vm799_vm2, %v14612_v50 }
 0x8d4   : > { %13540 = vmatmul.mubr.msk.f32.gmra.mrb[80].mxu1 %vm799_vm2, %v14613_v25 }
 0x8d5   : > { %13542 = vmatprep.mubr.msk.f32.mxu1 %vm799_vm2, %v14614_v17 }
 0x8d8   : > { %13543 = vmatmul.mubr.msk.f32.gmra.mrb[82].mxu1 %vm799_vm2, %v14615_v6 }
 0x8d9   : > { %13545 = vmatprep.mubr.msk.f32.mxu1 %vm799_vm2, %v14616_v14 }
 0x8dc   : > { %13546 = vmatmul.mubr.msk.f32.gmra.mrb[84].mxu1 %vm799_vm2, %v14617_v27 }
 0x8dd   : > { %13548 = vmatprep.mubr.msk.f32.mxu1 %vm799_vm2, %v14618_v58 }
 0x8e0   : > { %13549 = vmatmul.mubr.msk.f32.gmra.mrb[86].mxu1 %vm799_vm2, %v14619_v12 }
 0x8e1   : > { %13551 = vmatprep.mubr.msk.f32.mxu1 %vm799_vm2, %v14620_v3 }
 0x8e4   : > { %13552 = vmatmul.mubr.msk.f32.gmra.mrb[88].mxu1 %vm799_vm2, %v14621_v49 }
 0x8e5   : > { %13554 = vmatprep.mubr.msk.f32.mxu1 %vm799_vm2, %v14622_v23 }
 0x8e8   : > { %13555 = vmatmul.mubr.msk.f32.gmra.mrb[90].mxu1 %vm799_vm2, %v14623_v60 }
 0x8e9   : > { %13557 = vmatprep.mubr.msk.f32.mxu1 %vm799_vm2, %v14624_v32 }
 0x8ec   : > { %13558 = vmatmul.mubr.msk.f32.gmra.mrb[92].mxu1 %vm799_vm2, %v14625_v44 }
 0x943   : > { %v13450_v62 = vpop.f32.mrb[96].mxu0 }
 0x944   : > { %v9797_v47 = vpop.f32.mrb[97].mxu0  ;;  %v13853_v13 = vadd.f32 %v18357_v21, %v13450_v62 }
 0x945   : > { %v13856_v42 = vadd.f32 %v18357_v21, %v9797_v47 }
 0x983   : > { %v13514_v19 = vpop.f32.mrb[94].mxu1 }
 0x984   : > { %v13854_v36 = vadd.f32 %v13853_v13, %v13514_v19  ;;  %v10118_v1 = vpop.f32.mrb[95].mxu1 }
 0x985   : > { %v13857_v55 = vadd.f32 %v13856_v42, %v10118_v1 }
 0x986   : > { %11263 = vst [vmem:[%s16619_s9 + $0x108] sm:$0xff] %v13854_v36 }
 0x987   : > { %11262 = vst [vmem:[%s16619_s9 + $0x100] sm:$0xff] %v13857_v55  ;;  %v13517_v53 = vpop.f32.mrb[64].mxu1 }
 0x988   : > { %v13859_v16 = vadd.f32 %v18357_v21, %v13517_v53  ;;  %v10128_v63 = vpop.f32.mrb[65].mxu1 }
 0x989   : > { %v13861_v45 = vadd.f32 %v18357_v21, %v10128_v63 }
 0x98a   : > { %11265 = vst [vmem:[%s16619_s9 + $0x118] sm:$0xff] %v13859_v16 }
 0x98b   : > { %11264 = vst [vmem:[%s16619_s9 + $0x110] sm:$0xff] %v13861_v45  ;;  %v13520_v15 = vpop.f32.mrb[66].mxu1 }
 0x98c   : > { %v13863_v57 = vadd.f32 %v18357_v21, %v13520_v15  ;;  %v10138_v4 = vpop.f32.mrb[67].mxu1 }
 0x98d   : > { %v13865_v33 = vadd.f32 %v18357_v21, %v10138_v4 }
 0x98e   : > { %11267 = vst [vmem:[%s16619_s9 + $0x128] sm:$0xff] %v13863_v57 }
 0x98f   : > { %11266 = vst [vmem:[%s16619_s9 + $0x120] sm:$0xff] %v13865_v33  ;;  %v13523_v20 = vpop.f32.mrb[68].mxu1 }
 0x990   : > { %v13867_v9 = vadd.f32 %v18357_v21, %v13523_v20  ;;  %v10148_v5 = vpop.f32.mrb[69].mxu1 }
 0x991   : > { %v13869_v56 = vadd.f32 %v18357_v21, %v10148_v5 }
 0x992   : > { %11269 = vst [vmem:[%s16619_s9 + $0x138] sm:$0xff] %v13867_v9 }
 0x993   : > { %11268 = vst [vmem:[%s16619_s9 + $0x130] sm:$0xff] %v13869_v56  ;;  %v13526_v26 = vpop.f32.mrb[70].mxu1 }
 0x994   : > { %v13871_v31 = vadd.f32 %v18357_v21, %v13526_v26  ;;  %v10158_v28 = vpop.f32.mrb[71].mxu1 }
 0x995   : > { %v13873_v37 = vadd.f32 %v18357_v21, %v10158_v28 }
 0x996   : > { %11271 = vst [vmem:[%s16619_s9 + $0x148] sm:$0xff] %v13871_v31 }
 0x997   : > { %11270 = vst [vmem:[%s16619_s9 + $0x140] sm:$0xff] %v13873_v37  ;;  %v13529_v2 = vpop.f32.mrb[72].mxu1 }
 0x998   : > { %v13875_v8 = vadd.f32 %v18357_v21, %v13529_v2  ;;  %v10168_v51 = vpop.f32.mrb[73].mxu1 }
 0x999   : > { %v13877_v35 = vadd.f32 %v18357_v21, %v10168_v51 }
 0x99a   : > { %11273 = vst [vmem:[%s16619_s9 + $0x158] sm:$0xff] %v13875_v8 }
 0x99b   : > { %11272 = vst [vmem:[%s16619_s9 + $0x150] sm:$0xff] %v13877_v35  ;;  %v13532_v30 = vpop.f32.mrb[74].mxu1 }
 0x99c   : > { %v13879_v18 = vadd.f32 %v18357_v21, %v13532_v30  ;;  %v10178_v54 = vpop.f32.mrb[75].mxu1 }
 0x99d   : > { %v13881_v24 = vadd.f32 %v18357_v21, %v10178_v54 }
 0x99e   : > { %11275 = vst [vmem:[%s16619_s9 + $0x168] sm:$0xff] %v13879_v18 }
 0x99f   : > { %11274 = vst [vmem:[%s16619_s9 + $0x160] sm:$0xff] %v13881_v24  ;;  %v13535_v59 = vpop.f32.mrb[76].mxu1 }
 0x9a0   : > { %v13883_v34 = vadd.f32 %v18357_v21, %v13535_v59  ;;  %v10188_v61 = vpop.f32.mrb[77].mxu1 }
 0x9a1   : > { %v13885_v11 = vadd.f32 %v18357_v21, %v10188_v61 }
 0x9a2   : > { %11277 = vst [vmem:[%s16619_s9 + $0x178] sm:$0xff] %v13883_v34 }
 0x9a3   : > { %11276 = vst [vmem:[%s16619_s9 + $0x170] sm:$0xff] %v13885_v11  ;;  %v13538_v22 = vpop.f32.mrb[78].mxu1 }
 0x9a4   : > { %v13887_v52 = vadd.f32 %v18357_v21, %v13538_v22  ;;  %v10198_v48 = vpop.f32.mrb[79].mxu1 }
 0x9a5   : > { %v13889_v7 = vadd.f32 %v18357_v21, %v10198_v48 }
 0x9a6   : > { %11279 = vst [vmem:[%s16619_s9 + $0x188] sm:$0xff] %v13887_v52 }
 0x9a7   : > { %11278 = vst [vmem:[%s16619_s9 + $0x180] sm:$0xff] %v13889_v7  ;;  %v13541_v0 = vpop.f32.mrb[80].mxu1 }
 0x9a8   : > { %v13891_v40 = vadd.f32 %v18357_v21, %v13541_v0  ;;  %v10208_v39 = vpop.f32.mrb[81].mxu1 }
 0x9a9   : > { %v13893_v43 = vadd.f32 %v18357_v21, %v10208_v39 }
 0x9aa   : > { %11281 = vst [vmem:[%s16619_s9 + $0x198] sm:$0xff] %v13891_v40 }
 0x9ab   : > { %11280 = vst [vmem:[%s16619_s9 + $0x190] sm:$0xff] %v13893_v43  ;;  %v13544_v38 = vpop.f32.mrb[82].mxu1 }
 0x9ac   : > { %v13895_v29 = vadd.f32 %v18357_v21, %v13544_v38  ;;  %v10218_v46 = vpop.f32.mrb[83].mxu1 }
 0x9ad   : > { %v13897_v10 = vadd.f32 %v18357_v21, %v10218_v46 }
 0x9ae   : > { %11283 = vst [vmem:[%s16619_s9 + $0x1a8] sm:$0xff] %v13895_v29 }
 0x9af   : > { %11282 = vst [vmem:[%s16619_s9 + $0x1a0] sm:$0xff] %v13897_v10  ;;  %v13547_v41 = vpop.f32.mrb[84].mxu1 }
 0x9b0   : > { %v13899_v50 = vadd.f32 %v18357_v21, %v13547_v41  ;;  %v10228_v25 = vpop.f32.mrb[85].mxu1 }
 0x9b1   : > { %v13901_v17 = vadd.f32 %v18357_v21, %v10228_v25 }
 0x9b2   : > { %11285 = vst [vmem:[%s16619_s9 + $0x1b8] sm:$0xff] %v13899_v50 }
 0x9b3   : > { %11284 = vst [vmem:[%s16619_s9 + $0x1b0] sm:$0xff] %v13901_v17  ;;  %v13550_v6 = vpop.f32.mrb[86].mxu1 }
 0x9b4   : > { %v13903_v14 = vadd.f32 %v18357_v21, %v13550_v6  ;;  %v10238_v27 = vpop.f32.mrb[87].mxu1 }
 0x9b5   : > { %v13905_v58 = vadd.f32 %v18357_v21, %v10238_v27 }
 0x9b6   : > { %11287 = vst [vmem:[%s16619_s9 + $0x1c8] sm:$0xff] %v13903_v14 }
 0x9b7   : > { %11286 = vst [vmem:[%s16619_s9 + $0x1c0] sm:$0xff] %v13905_v58  ;;  %v13553_v12 = vpop.f32.mrb[88].mxu1 }
 0x9b8   : > { %v13907_v3 = vadd.f32 %v18357_v21, %v13553_v12  ;;  %v10248_v49 = vpop.f32.mrb[89].mxu1 }
 0x9b9   : > { %v13909_v23 = vadd.f32 %v18357_v21, %v10248_v49 }
 0x9ba   : > { %11289 = vst [vmem:[%s16619_s9 + $0x1d8] sm:$0xff] %v13907_v3 }
 0x9bb   : > { %11288 = vst [vmem:[%s16619_s9 + $0x1d0] sm:$0xff] %v13909_v23  ;;  %v13556_v60 = vpop.f32.mrb[90].mxu1 }
 0x9bc   : > { %v13911_v32 = vadd.f32 %v18357_v21, %v13556_v60  ;;  %v10258_v44 = vpop.f32.mrb[91].mxu1 }
 0x9bd   : > { %v13913_v62 = vadd.f32 %v18357_v21, %v10258_v44 }
 0x9be   : > { %11291 = vst [vmem:[%s16619_s9 + $0x1e8] sm:$0xff] %v13911_v32 }
 0x9bf   : > { %11290 = vst [vmem:[%s16619_s9 + $0x1e0] sm:$0xff] %v13913_v62  ;;  %v13559_v47 = vpop.f32.mrb[92].mxu1 }
 0x9c0   : > { %v13915_v13 = vadd.f32 %v18357_v21, %v13559_v47  ;;  %v10268_v42 = vpop.f32.mrb[93].mxu1 }
 0x9c1   : > { %v13917_v19 = vadd.f32 %v18357_v21, %v10268_v42 }
 0x9c2   : > { %11293 = vst [vmem:[%s16619_s9 + $0x1f8] sm:$0xff] %v13915_v13 }
 0x9c3   : > { %11292 = vst [vmem:[%s16619_s9 + $0x1f0] sm:$0xff] %v13917_v19 }
 0x9c4   : > { %14697 = shalt.err (!%p14694_p7)
}
 0x9c5   : > { %s14698_s9 = scalar_lea.hbm %s17877_s16, 8192  ;;  %s14702_s12 = scalar_lea.hbm %s18358_s14, 16384 }
 0x9c6   : > { %p14699_p9 = scmp.ne.s32.totalorder %s17877_s16, %s14698_s9  ;;  %p14703_p5 = scmp.lt.u32.totalorder %s17877_s16, %s18358_s14 }
 0x9c7   : > { %p14704_p11 = scmp.lt.u32.totalorder %s14702_s12, %s14698_s9  ;;  %p14706_p4 = scmp.lt.u32.totalorder %s14698_s9, %s17877_s16 }
 0x9c8   : > { %p14700_p1 = pnand %p14699_p9, %p14938_p12 }
 0x9c9   : > { %p14705_p2 = por %p14704_p11, %p14703_p5 }
 0x9ca   : > { %p14701_p0 = pneg %p14700_p1 }
 0x9cb   : > { %p14707_p6 = por %p14706_p4, %p14705_p2 }
 0x9cd   : > { %p14708_p8 = pnand %p14707_p6, %p14701_p0 }
 0x9cf   : > { %14711 = shalt.err (!%p14708_p8)
}
 0x9d0   : > { %s14762_s18 = smov 128   ;;  %s14763_s27 = smov 8  }
 0x9d1   : > { %14498 = dma.vmem_to_hbm [thread:$0]  (%p14938_p12), %s17879_s29, 8192, %s17877_s16, %s10343_s22, %s14762_s18, %s14762_s18, %s14763_s27  }
 0x9d2 PF: > { %s18359_s17 = sld [smem:[#allocation12_spill]]  ;;  %s18360_s24 = sld [smem:[#allocation13_spill]] }
 0x9d3   : > { %p18362_p13 = scmp.ge.s32.totalorder %s14754_s21, 2 }
 0x9d8   : > { %s10372_s28 = sand.u32 1, %s18359_s17   ;;  %p18361_p10 = scmp.ne.s32.totalorder %s18360_s24, 0 }
 0x9d9   : > { %s10373_s9 = scalar_lea.sflag [#allocation5], %s10372_s28 }
 0x9da   : > { %p14509_p3 = pnand %p18362_p13, %p18361_p10 }
 0x9dc   : > { %14737 = dma.done.wait (!%p14509_p3), %s10373_s9, 8192  }
 0x9dd   : > { %14739 = vsyncadd (!%p14509_p3), %s10373_s9, 4294959104  ;;  %s18363_s21 = sld [smem:[#allocation14_spill]]  ;;  %s18364_s18 = smov %s14746_s19 }
 0x9de   : > { %s18365_s19 = smov %s14750_s20  ;;  %s18366_s20 = smov %s14934_s25 }
 0x9e3   : > { %p29_p7 = scmp.ge.s32.totalorder %s18363_s21, 4  }
 0x9e5   :  { %31 = sbr.rel (!%p29_p7) target bundleno = 12 (0xc), region = 133 }
 0x9ec   :  { %10378 = vsyncpa [#allocation4], 1 }
 0x9ed   :  { %10380 = vsyncpa [#allocation4 + $0x1], 1 }
 0x9ee   :  { %10381 = vsyncpa [#allocation7], 1 }
 0x9ef   :  { %10382 = vsyncpa [#allocation5], 1 }
 0x9f0   :  { %10384 = vsyncpa [#allocation5 + $0x1], 1 }

</bundles_post_ra>
